<compile_context>
chip_gen: v7x
topology: tpu7x:2x2x1
jax: 0.10.0
libtpu: 0.0.40
codegen_flags: <defaults>
</compile_context>

<pallas_src>
import functools

import jax
import jax.numpy as jnp
import numpy as np
from jax import lax
from jax.experimental import pallas as pl
from jax.experimental.pallas import tpu as pltpu


def _round_up(x, m):
    return (x + m - 1) // m * m


def _basic_block_kernel(xpad_ref, xres_ref, w1_ref, w2_ref,
                        s1_ref, b1_ref, s2_ref, b2_ref,
                        out_ref, mid_pad, *, H, W, Cp):
    """One batch element per grid step.

    xpad_ref : (1, H+2, W+2, Cp) bf16  spatially + channel padded input (NHWC)
    xres_ref : (1, H, W, Cp)     f32   unpadded input for the residual add
    w1_ref   : (9*Cp, Cp)        bf16  conv1 weights, taps folded into K
    w2_ref   : (9*Cp, Cp)        bf16  conv2 weights, taps folded into K
    s*_ref   : (1, Cp)           f32   folded BN scale
    b*_ref   : (1, Cp)           f32   folded BN shift
    out_ref  : (1, H, W, Cp)     f32
    mid_pad  : VMEM scratch (H+2, W+2, Cp) f32 for the padded intermediate
    """

    def im2col_bf16(src):
        # src: (H+2, W+2, Cp). Tap order (kh, kw) matches the weight reshape
        # (3, 3, Cp, Cp) -> (9*Cp, Cp) done in the wrapper.
        taps = []
        for kh in range(3):
            for kw in range(3):
                taps.append(src[kh:kh + H, kw:kw + W, :]
                            .astype(jnp.bfloat16).reshape(H * W, Cp))
        return jnp.concatenate(taps, axis=1)          # (H*W, 9*Cp) bf16

    # ---- conv1: single MXU matmul over the fused tap axis ----
    xpad = xpad_ref[0]                                # (H+2, W+2, Cp) bf16
    acc1 = jnp.dot(im2col_bf16(xpad), w1_ref[...],
                   preferred_element_type=jnp.float32)   # (H*W, Cp) f32
    # bn1 + relu (f32 epilogue)
    out1 = jnp.maximum(acc1 * s1_ref[0] + b1_ref[0], 0.0)

    # ---- re-pad the intermediate: only the 1-px halo needs zeroing ----
    zrow = jnp.zeros((1, W + 2, Cp), mid_pad.dtype)
    zcol = jnp.zeros((H, 1, Cp), mid_pad.dtype)
    mid_pad[0:1, :, :] = zrow
    mid_pad[H + 1:H + 2, :, :] = zrow
    mid_pad[1:H + 1, 0:1, :] = zcol
    mid_pad[1:H + 1, W + 1:W + 2, :] = zcol
    mid_pad[1:H + 1, 1:W + 1, :] = out1.reshape(H, W, Cp)

    # ---- conv2: single MXU matmul ----
    mid = mid_pad[...]                                # (H+2, W+2, Cp) f32
    acc2 = jnp.dot(im2col_bf16(mid), w2_ref[...],
                   preferred_element_type=jnp.float32)   # (H*W, Cp) f32
    out2 = acc2 * s2_ref[0] + b2_ref[0]               # bn2

    # ---- residual add (exact f32 identity) + relu ----
    identity = xres_ref[0].reshape(H * W, Cp)
    out_ref[0] = jnp.maximum(out2 + identity, 0.0).reshape(H, W, Cp)


def basic_block_forward(x_nchw, w1, w2, bn1, bn2, eps=1e-5):
    """x_nchw: (B, C, H, W) float32.  w1, w2: (Cout, Cin, 3, 3) PyTorch OIHW.

    bn1/bn2: dicts with 'gamma', 'beta', 'mean', 'var' of shape (C,).
    Implements stride=1, downsample=None (the BasicBlock defaults).
    """
    B, C, H, W = x_nchw.shape
    Cp = _round_up(max(C, 128), 128)   # lane-dense channel count

    # NCHW -> NHWC, channel-pad to Cp, spatial pad=1 for the conv halo.
    x = jnp.transpose(x_nchw, (0, 2, 3, 1)).astype(jnp.float32)
    x_cp = jnp.pad(x, ((0, 0), (0, 0), (0, 0), (0, Cp - C)))
    xpad = jnp.pad(x_cp, ((0, 0), (1, 1), (1, 1), (0, 0))).astype(jnp.bfloat16)
    xres = x_cp                                        # f32, aligned residual

    def prep_w(w):
        # OIHW -> HWIO, channel-pad both dims, fold taps into K: (9*Cp, Cp).
        wh = jnp.transpose(w, (2, 3, 1, 0)).astype(jnp.float32)
        wh = jnp.pad(wh, ((0, 0), (0, 0), (0, Cp - C), (0, Cp - C)))
        return wh.reshape(9 * Cp, Cp).astype(jnp.bfloat16)

    w1_k = prep_w(w1)
    w2_k = prep_w(w2)

    def fold(bn):
        scale = bn["gamma"] / jnp.sqrt(bn["var"] + eps)
        shift = bn["beta"] - bn["mean"] * scale
        scale = jnp.pad(scale, (0, Cp - C)).reshape(1, Cp).astype(jnp.float32)
        shift = jnp.pad(shift, (0, Cp - C)).reshape(1, Cp).astype(jnp.float32)
        return scale, shift

    s1, b1 = fold(bn1)
    s2, b2 = fold(bn2)

    kernel = functools.partial(_basic_block_kernel, H=H, W=W, Cp=Cp)

    out_nhwc = pl.pallas_call(
        kernel,
        out_shape=jax.ShapeDtypeStruct((B, H, W, Cp), jnp.float32),
        grid_spec=pltpu.PrefetchScalarGridSpec(
            num_scalar_prefetch=0,
            grid=(B,),
            in_specs=[
                pl.BlockSpec((1, H + 2, W + 2, Cp), lambda b: (b, 0, 0, 0)),
                pl.BlockSpec((1, H, W, Cp), lambda b: (b, 0, 0, 0)),
                pl.BlockSpec((9 * Cp, Cp), lambda b: (0, 0)),
                pl.BlockSpec((9 * Cp, Cp), lambda b: (0, 0)),
                pl.BlockSpec((1, Cp), lambda b: (0, 0)),
                pl.BlockSpec((1, Cp), lambda b: (0, 0)),
                pl.BlockSpec((1, Cp), lambda b: (0, 0)),
                pl.BlockSpec((1, Cp), lambda b: (0, 0)),
            ],
            out_specs=pl.BlockSpec((1, H, W, Cp), lambda b: (b, 0, 0, 0)),
            scratch_shapes=[pltpu.VMEM((H + 2, W + 2, Cp), jnp.float32)],
        ),
        compiler_params=pltpu.CompilerParams(
            dimension_semantics=("parallel",),
            vmem_limit_bytes=32 * 1024 * 1024),
    )(xpad, xres, w1_k, w2_k, s1, b1, s2, b2)

    # drop channel padding, NHWC -> NCHW to match the PyTorch module.
    return jnp.transpose(out_nhwc[..., :C], (0, 3, 1, 2))


def _reference_forward(x_nchw, w1, w2, bn1, bn2, eps=1e-5):
    """Pure-JAX reference mirroring the kernel's dtype policy
    (bf16 conv inputs, f32 accumulation, f32 epilogue, f32 identity)."""
    x = jnp.transpose(x_nchw, (0, 2, 3, 1)).astype(jnp.float32)
    w1h = jnp.transpose(w1, (2, 3, 1, 0)).astype(jnp.bfloat16)
    w2h = jnp.transpose(w2, (2, 3, 1, 0)).astype(jnp.bfloat16)
    dn = ("NHWC", "HWIO", "NHWC")

    def bn(y, p):
        scale = p["gamma"] / jnp.sqrt(p["var"] + eps)
        shift = p["beta"] - p["mean"] * scale
        return y * scale + shift

    out = lax.conv_general_dilated(x.astype(jnp.bfloat16), w1h, (1, 1), "SAME",
                                   dimension_numbers=dn,
                                   preferred_element_type=jnp.float32)
    out = jnp.maximum(bn(out, bn1), 0.0)
    out = lax.conv_general_dilated(out.astype(jnp.bfloat16), w2h, (1, 1), "SAME",
                                   dimension_numbers=dn,
                                   preferred_element_type=jnp.float32)
    out = bn(out, bn2)
    out = jnp.maximum(out + x, 0.0)
    return jnp.transpose(out, (0, 3, 1, 2))


if __name__ == "__main__":
    B, C, H, W = 2, 8, 16, 16   # inplanes == planes, stride=1, downsample=None
    key = jax.random.PRNGKey(0)
    kx, kw1, kw2, kg1, kb1, km1, kv1, kg2, kb2, km2, kv2 = \
        jax.random.split(key, 11)

    x = jax.random.normal(kx, (B, C, H, W), jnp.float32)
    w1 = jax.random.normal(kw1, (C, C, 3, 3), jnp.float32) * 0.1
    w2 = jax.random.normal(kw2, (C, C, 3, 3), jnp.float32) * 0.1
    bn1 = {
        "gamma": jax.random.normal(kg1, (C,), jnp.float32) * 0.1 + 1.0,
        "beta": jax.random.normal(kb1, (C,), jnp.float32) * 0.1,
        "mean": jax.random.normal(km1, (C,), jnp.float32) * 0.1,
        "var": jax.random.uniform(kv1, (C,), jnp.float32, 0.5, 1.5),
    }
    bn2 = {
        "gamma": jax.random.normal(kg2, (C,), jnp.float32) * 0.1 + 1.0,
        "beta": jax.random.normal(kb2, (C,), jnp.float32) * 0.1,
        "mean": jax.random.normal(km2, (C,), jnp.float32) * 0.1,
        "var": jax.random.uniform(kv2, (C,), jnp.float32, 0.5, 1.5),
    }

    out = basic_block_forward(x, w1, w2, bn1, bn2)
    out = jax.block_until_ready(out)

    ref = jax.block_until_ready(_reference_forward(x, w1, w2, bn1, bn2))
    np.testing.assert_allclose(np.asarray(out), np.asarray(ref),
                               rtol=2e-3, atol=2e-3)
    print("KERNEL_OK")
</pallas_src>

<mosaic_0001>
module attributes {stable_mosaic.version = 11 : i64} {
  func.func @_basic_block_kernel(%arg0: i32, %arg1: memref<1x18x18x128xbf16, #tpu.memory_space<vmem>>, %arg2: memref<1x16x16x128xf32, #tpu.memory_space<vmem>>, %arg3: memref<1152x128xbf16, #tpu.memory_space<vmem>>, %arg4: memref<1152x128xbf16, #tpu.memory_space<vmem>>, %arg5: memref<1x128xf32, #tpu.memory_space<vmem>>, %arg6: memref<1x128xf32, #tpu.memory_space<vmem>>, %arg7: memref<1x128xf32, #tpu.memory_space<vmem>>, %arg8: memref<1x128xf32, #tpu.memory_space<vmem>>, %arg9: memref<1x16x16x128xf32, #tpu.memory_space<vmem>>, %arg10: memref<18x18x128xf32, #tpu.memory_space<vmem>>) attributes {dimension_semantics = [#tpu.dimension_semantics<parallel>], iteration_bounds = array<i64: 2>, scalar_prefetch = 0 : i64, scratch_operands = 1 : i64, tpu.core_type = #tpu.core_type<tc>, window_params = [{transform_indices = @transform_0, window_bounds = array<i64: 1, 18, 18, 128>}, {transform_indices = @transform_1, window_bounds = array<i64: 1, 16, 16, 128>}, {pipeline_mode = #tpu.pipeline_mode<synchronous>, transform_indices = @transform_2, window_bounds = array<i64: 1152, 128>}, {pipeline_mode = #tpu.pipeline_mode<synchronous>, transform_indices = @transform_3, window_bounds = array<i64: 1152, 128>}, {pipeline_mode = #tpu.pipeline_mode<synchronous>, transform_indices = @transform_4, window_bounds = array<i64: 1, 128>}, {pipeline_mode = #tpu.pipeline_mode<synchronous>, transform_indices = @transform_5, window_bounds = array<i64: 1, 128>}, {pipeline_mode = #tpu.pipeline_mode<synchronous>, transform_indices = @transform_6, window_bounds = array<i64: 1, 128>}, {pipeline_mode = #tpu.pipeline_mode<synchronous>, transform_indices = @transform_7, window_bounds = array<i64: 1, 128>}, {transform_indices = @transform_8, window_bounds = array<i64: 1, 16, 16, 128>}]} {
    %c0 = arith.constant 0 : index
    %c0_0 = arith.constant 0 : index
    %c0_1 = arith.constant 0 : index
    %c0_2 = arith.constant 0 : index
    %0 = vector.load %arg1[%c0, %c0_0, %c0_1, %c0_2] : memref<1x18x18x128xbf16, #tpu.memory_space<vmem>>, vector<1x18x18x128xbf16>
    %1 = vector.shape_cast %0 : vector<1x18x18x128xbf16> to vector<18x18x128xbf16>
    %2 = vector.extract_strided_slice %1 {offsets = [0, 0, 0], sizes = [16, 16, 128], strides = [1, 1, 1]} : vector<18x18x128xbf16> to vector<16x16x128xbf16>
    %3 = vector.shape_cast %2 : vector<16x16x128xbf16> to vector<256x128xbf16>
    %4 = vector.extract_strided_slice %1 {offsets = [0, 1, 0], sizes = [16, 16, 128], strides = [1, 1, 1]} : vector<18x18x128xbf16> to vector<16x16x128xbf16>
    %5 = vector.shape_cast %4 : vector<16x16x128xbf16> to vector<256x128xbf16>
    %6 = vector.extract_strided_slice %1 {offsets = [0, 2, 0], sizes = [16, 16, 128], strides = [1, 1, 1]} : vector<18x18x128xbf16> to vector<16x16x128xbf16>
    %7 = vector.shape_cast %6 : vector<16x16x128xbf16> to vector<256x128xbf16>
    %8 = vector.extract_strided_slice %1 {offsets = [1, 0, 0], sizes = [16, 16, 128], strides = [1, 1, 1]} : vector<18x18x128xbf16> to vector<16x16x128xbf16>
    %9 = vector.shape_cast %8 : vector<16x16x128xbf16> to vector<256x128xbf16>
    %10 = vector.extract_strided_slice %1 {offsets = [1, 1, 0], sizes = [16, 16, 128], strides = [1, 1, 1]} : vector<18x18x128xbf16> to vector<16x16x128xbf16>
    %11 = vector.shape_cast %10 : vector<16x16x128xbf16> to vector<256x128xbf16>
    %12 = vector.extract_strided_slice %1 {offsets = [1, 2, 0], sizes = [16, 16, 128], strides = [1, 1, 1]} : vector<18x18x128xbf16> to vector<16x16x128xbf16>
    %13 = vector.shape_cast %12 : vector<16x16x128xbf16> to vector<256x128xbf16>
    %14 = vector.extract_strided_slice %1 {offsets = [2, 0, 0], sizes = [16, 16, 128], strides = [1, 1, 1]} : vector<18x18x128xbf16> to vector<16x16x128xbf16>
    %15 = vector.shape_cast %14 : vector<16x16x128xbf16> to vector<256x128xbf16>
    %16 = vector.extract_strided_slice %1 {offsets = [2, 1, 0], sizes = [16, 16, 128], strides = [1, 1, 1]} : vector<18x18x128xbf16> to vector<16x16x128xbf16>
    %17 = vector.shape_cast %16 : vector<16x16x128xbf16> to vector<256x128xbf16>
    %18 = vector.extract_strided_slice %1 {offsets = [2, 2, 0], sizes = [16, 16, 128], strides = [1, 1, 1]} : vector<18x18x128xbf16> to vector<16x16x128xbf16>
    %19 = vector.shape_cast %18 : vector<16x16x128xbf16> to vector<256x128xbf16>
    %20 = tpu.concatenate %3, %5, %7, %9, %11, %13, %15, %17, %19 in 1 : vector<256x128xbf16>, vector<256x128xbf16>, vector<256x128xbf16>, vector<256x128xbf16>, vector<256x128xbf16>, vector<256x128xbf16>, vector<256x128xbf16>, vector<256x128xbf16>, vector<256x128xbf16> -> vector<256x1152xbf16>
    %c0_3 = arith.constant 0 : index
    %c0_4 = arith.constant 0 : index
    %21 = vector.load %arg3[%c0_3, %c0_4] : memref<1152x128xbf16, #tpu.memory_space<vmem>>, vector<1152x128xbf16>
    %cst = arith.constant dense<0.000000e+00> : vector<256x128xf32>
    %22 = tpu.matmul %20, %21, %cst {dimension_numbers = #tpu.dot_dimension_numbers<[1], [0], [0], [1], [0, 0, 1, 1], [], []>} : vector<256x1152xbf16>, vector<1152x128xbf16>, vector<256x128xf32> -> vector<256x128xf32>
    %c0_5 = arith.constant 0 : index
    %c0_6 = arith.constant 0 : index
    %23 = vector.load %arg5[%c0_5, %c0_6] : memref<1x128xf32, #tpu.memory_space<vmem>>, vector<1x128xf32>
    %24 = vector.shape_cast %23 : vector<1x128xf32> to vector<128xf32>
    %25 = vector.shape_cast %24 : vector<128xf32> to vector<1x128xf32>
    %26 = vector.broadcast %25 : vector<1x128xf32> to vector<256x128xf32>
    %27 = arith.mulf %22, %26 : vector<256x128xf32>
    %c0_7 = arith.constant 0 : index
    %c0_8 = arith.constant 0 : index
    %28 = vector.load %arg6[%c0_7, %c0_8] : memref<1x128xf32, #tpu.memory_space<vmem>>, vector<1x128xf32>
    %29 = vector.shape_cast %28 : vector<1x128xf32> to vector<128xf32>
    %30 = vector.shape_cast %29 : vector<128xf32> to vector<1x128xf32>
    %31 = vector.broadcast %30 : vector<1x128xf32> to vector<256x128xf32>
    %32 = arith.addf %27, %31 : vector<256x128xf32>
    %cst_9 = arith.constant 0.000000e+00 : f32
    %33 = vector.broadcast %cst_9 : f32 to vector<256x128xf32>
    %34 = arith.maximumf %32, %33 : vector<256x128xf32>
    %cst_10 = arith.constant 0.000000e+00 : f32
    %35 = vector.broadcast %cst_10 : f32 to vector<1x18x128xf32>
    %cst_11 = arith.constant 0.000000e+00 : f32
    %36 = vector.broadcast %cst_11 : f32 to vector<16x1x128xf32>
    %c0_12 = arith.constant 0 : index
    %c0_13 = arith.constant 0 : index
    %c0_14 = arith.constant 0 : index
    %37 = vector.load %arg10[%c0_12, %c0_13, %c0_14] : memref<18x18x128xf32, #tpu.memory_space<vmem>>, vector<1x18x128xf32>
    tpu.vector_store %arg10[%c0_12, %c0_13, %c0_14], %35 {strides = array<i32>} : memref<18x18x128xf32, #tpu.memory_space<vmem>>, vector<1x18x128xf32>,
    %c17 = arith.constant 17 : index
    %c0_15 = arith.constant 0 : index
    %c0_16 = arith.constant 0 : index
    %38 = vector.load %arg10[%c17, %c0_15, %c0_16] : memref<18x18x128xf32, #tpu.memory_space<vmem>>, vector<1x18x128xf32>
    tpu.vector_store %arg10[%c17, %c0_15, %c0_16], %35 {strides = array<i32>} : memref<18x18x128xf32, #tpu.memory_space<vmem>>, vector<1x18x128xf32>,
    %c1 = arith.constant 1 : index
    %c0_17 = arith.constant 0 : index
    %c0_18 = arith.constant 0 : index
    %39 = vector.load %arg10[%c1, %c0_17, %c0_18] : memref<18x18x128xf32, #tpu.memory_space<vmem>>, vector<16x1x128xf32>
    tpu.vector_store %arg10[%c1, %c0_17, %c0_18], %36 {strides = array<i32>} : memref<18x18x128xf32, #tpu.memory_space<vmem>>, vector<16x1x128xf32>,
    %c1_19 = arith.constant 1 : index
    %c17_20 = arith.constant 17 : index
    %c0_21 = arith.constant 0 : index
    %40 = vector.load %arg10[%c1_19, %c17_20, %c0_21] : memref<18x18x128xf32, #tpu.memory_space<vmem>>, vector<16x1x128xf32>
    tpu.vector_store %arg10[%c1_19, %c17_20, %c0_21], %36 {strides = array<i32>} : memref<18x18x128xf32, #tpu.memory_space<vmem>>, vector<16x1x128xf32>,
    %41 = vector.shape_cast %34 : vector<256x128xf32> to vector<16x16x128xf32>
    %c1_22 = arith.constant 1 : index
    %c1_23 = arith.constant 1 : index
    %c0_24 = arith.constant 0 : index
    %42 = vector.load %arg10[%c1_22, %c1_23, %c0_24] : memref<18x18x128xf32, #tpu.memory_space<vmem>>, vector<16x16x128xf32>
    tpu.vector_store %arg10[%c1_22, %c1_23, %c0_24], %41 {strides = array<i32>} : memref<18x18x128xf32, #tpu.memory_space<vmem>>, vector<16x16x128xf32>,
    %c0_25 = arith.constant 0 : index
    %c0_26 = arith.constant 0 : index
    %c0_27 = arith.constant 0 : index
    %43 = vector.load %arg10[%c0_25, %c0_26, %c0_27] : memref<18x18x128xf32, #tpu.memory_space<vmem>>, vector<18x18x128xf32>
    %44 = vector.extract_strided_slice %43 {offsets = [0, 0, 0], sizes = [16, 16, 128], strides = [1, 1, 1]} : vector<18x18x128xf32> to vector<16x16x128xf32>
    %45 = arith.truncf %44 : vector<16x16x128xf32> to vector<16x16x128xbf16>
    %46 = vector.shape_cast %45 : vector<16x16x128xbf16> to vector<256x128xbf16>
    %47 = vector.extract_strided_slice %43 {offsets = [0, 1, 0], sizes = [16, 16, 128], strides = [1, 1, 1]} : vector<18x18x128xf32> to vector<16x16x128xf32>
    %48 = arith.truncf %47 : vector<16x16x128xf32> to vector<16x16x128xbf16>
    %49 = vector.shape_cast %48 : vector<16x16x128xbf16> to vector<256x128xbf16>
    %50 = vector.extract_strided_slice %43 {offsets = [0, 2, 0], sizes = [16, 16, 128], strides = [1, 1, 1]} : vector<18x18x128xf32> to vector<16x16x128xf32>
    %51 = arith.truncf %50 : vector<16x16x128xf32> to vector<16x16x128xbf16>
    %52 = vector.shape_cast %51 : vector<16x16x128xbf16> to vector<256x128xbf16>
    %53 = vector.extract_strided_slice %43 {offsets = [1, 0, 0], sizes = [16, 16, 128], strides = [1, 1, 1]} : vector<18x18x128xf32> to vector<16x16x128xf32>
    %54 = arith.truncf %53 : vector<16x16x128xf32> to vector<16x16x128xbf16>
    %55 = vector.shape_cast %54 : vector<16x16x128xbf16> to vector<256x128xbf16>
    %56 = vector.extract_strided_slice %43 {offsets = [1, 1, 0], sizes = [16, 16, 128], strides = [1, 1, 1]} : vector<18x18x128xf32> to vector<16x16x128xf32>
    %57 = arith.truncf %56 : vector<16x16x128xf32> to vector<16x16x128xbf16>
    %58 = vector.shape_cast %57 : vector<16x16x128xbf16> to vector<256x128xbf16>
    %59 = vector.extract_strided_slice %43 {offsets = [1, 2, 0], sizes = [16, 16, 128], strides = [1, 1, 1]} : vector<18x18x128xf32> to vector<16x16x128xf32>
    %60 = arith.truncf %59 : vector<16x16x128xf32> to vector<16x16x128xbf16>
    %61 = vector.shape_cast %60 : vector<16x16x128xbf16> to vector<256x128xbf16>
    %62 = vector.extract_strided_slice %43 {offsets = [2, 0, 0], sizes = [16, 16, 128], strides = [1, 1, 1]} : vector<18x18x128xf32> to vector<16x16x128xf32>
    %63 = arith.truncf %62 : vector<16x16x128xf32> to vector<16x16x128xbf16>
    %64 = vector.shape_cast %63 : vector<16x16x128xbf16> to vector<256x128xbf16>
    %65 = vector.extract_strided_slice %43 {offsets = [2, 1, 0], sizes = [16, 16, 128], strides = [1, 1, 1]} : vector<18x18x128xf32> to vector<16x16x128xf32>
    %66 = arith.truncf %65 : vector<16x16x128xf32> to vector<16x16x128xbf16>
    %67 = vector.shape_cast %66 : vector<16x16x128xbf16> to vector<256x128xbf16>
    %68 = vector.extract_strided_slice %43 {offsets = [2, 2, 0], sizes = [16, 16, 128], strides = [1, 1, 1]} : vector<18x18x128xf32> to vector<16x16x128xf32>
    %69 = arith.truncf %68 : vector<16x16x128xf32> to vector<16x16x128xbf16>
    %70 = vector.shape_cast %69 : vector<16x16x128xbf16> to vector<256x128xbf16>
    %71 = tpu.concatenate %46, %49, %52, %55, %58, %61, %64, %67, %70 in 1 : vector<256x128xbf16>, vector<256x128xbf16>, vector<256x128xbf16>, vector<256x128xbf16>, vector<256x128xbf16>, vector<256x128xbf16>, vector<256x128xbf16>, vector<256x128xbf16>, vector<256x128xbf16> -> vector<256x1152xbf16>
    %c0_28 = arith.constant 0 : index
    %c0_29 = arith.constant 0 : index
    %72 = vector.load %arg4[%c0_28, %c0_29] : memref<1152x128xbf16, #tpu.memory_space<vmem>>, vector<1152x128xbf16>
    %cst_30 = arith.constant dense<0.000000e+00> : vector<256x128xf32>
    %73 = tpu.matmul %71, %72, %cst_30 {dimension_numbers = #tpu.dot_dimension_numbers<[1], [0], [0], [1], [0, 0, 1, 1], [], []>} : vector<256x1152xbf16>, vector<1152x128xbf16>, vector<256x128xf32> -> vector<256x128xf32>
    %c0_31 = arith.constant 0 : index
    %c0_32 = arith.constant 0 : index
    %74 = vector.load %arg7[%c0_31, %c0_32] : memref<1x128xf32, #tpu.memory_space<vmem>>, vector<1x128xf32>
    %75 = vector.shape_cast %74 : vector<1x128xf32> to vector<128xf32>
    %76 = vector.shape_cast %75 : vector<128xf32> to vector<1x128xf32>
    %77 = vector.broadcast %76 : vector<1x128xf32> to vector<256x128xf32>
    %78 = arith.mulf %73, %77 : vector<256x128xf32>
    %c0_33 = arith.constant 0 : index
    %c0_34 = arith.constant 0 : index
    %79 = vector.load %arg8[%c0_33, %c0_34] : memref<1x128xf32, #tpu.memory_space<vmem>>, vector<1x128xf32>
    %80 = vector.shape_cast %79 : vector<1x128xf32> to vector<128xf32>
    %81 = vector.shape_cast %80 : vector<128xf32> to vector<1x128xf32>
    %82 = vector.broadcast %81 : vector<1x128xf32> to vector<256x128xf32>
    %83 = arith.addf %78, %82 : vector<256x128xf32>
    %c0_35 = arith.constant 0 : index
    %c0_36 = arith.constant 0 : index
    %c0_37 = arith.constant 0 : index
    %c0_38 = arith.constant 0 : index
    %84 = vector.load %arg2[%c0_35, %c0_36, %c0_37, %c0_38] : memref<1x16x16x128xf32, #tpu.memory_space<vmem>>, vector<1x16x16x128xf32>
    %85 = vector.shape_cast %84 : vector<1x16x16x128xf32> to vector<16x16x128xf32>
    %86 = vector.shape_cast %85 : vector<16x16x128xf32> to vector<256x128xf32>
    %87 = arith.addf %83, %86 : vector<256x128xf32>
    %cst_39 = arith.constant 0.000000e+00 : f32
    %88 = vector.broadcast %cst_39 : f32 to vector<256x128xf32>
    %89 = arith.maximumf %87, %88 : vector<256x128xf32>
    %90 = vector.shape_cast %89 : vector<256x128xf32> to vector<16x16x128xf32>
    %c0_40 = arith.constant 0 : index
    %c0_41 = arith.constant 0 : index
    %c0_42 = arith.constant 0 : index
    %c0_43 = arith.constant 0 : index
    %91 = vector.load %arg9[%c0_40, %c0_41, %c0_42, %c0_43] : memref<1x16x16x128xf32, #tpu.memory_space<vmem>>, vector<1x16x16x128xf32>
    %92 = vector.shape_cast %91 : vector<1x16x16x128xf32> to vector<16x16x128xf32>
    %93 = vector.shape_cast %90 : vector<16x16x128xf32> to vector<1x16x16x128xf32>
    tpu.vector_store %arg9[%c0_40, %c0_41, %c0_42, %c0_43], %93 {strides = array<i32>} : memref<1x16x16x128xf32, #tpu.memory_space<vmem>>, vector<1x16x16x128xf32>,
    return
  }
  func.func @transform_0(%arg0: i32) -> (i32, i32, i32, i32) {
    %c0_i32 = arith.constant 0 : i32
    %c0_i32_0 = arith.constant 0 : i32
    %c0_i32_1 = arith.constant 0 : i32
    %c0_i32_2 = arith.constant 0 : i32
    return %arg0, %c0_i32, %c0_i32_0, %c0_i32_1 : i32, i32, i32, i32
  }
  func.func @transform_1(%arg0: i32) -> (i32, i32, i32, i32) {
    %c0_i32 = arith.constant 0 : i32
    %c0_i32_0 = arith.constant 0 : i32
    %c0_i32_1 = arith.constant 0 : i32
    %c0_i32_2 = arith.constant 0 : i32
    return %arg0, %c0_i32, %c0_i32_0, %c0_i32_1 : i32, i32, i32, i32
  }
  func.func @transform_2(%arg0: i32) -> (i32, i32) {
    %c0_i32 = arith.constant 0 : i32
    %c0_i32_0 = arith.constant 0 : i32
    %c0_i32_1 = arith.constant 0 : i32
    return %c0_i32, %c0_i32_0 : i32, i32
  }
  func.func @transform_3(%arg0: i32) -> (i32, i32) {
    %c0_i32 = arith.constant 0 : i32
    %c0_i32_0 = arith.constant 0 : i32
    %c0_i32_1 = arith.constant 0 : i32
    return %c0_i32, %c0_i32_0 : i32, i32
  }
  func.func @transform_4(%arg0: i32) -> (i32, i32) {
    %c0_i32 = arith.constant 0 : i32
    %c0_i32_0 = arith.constant 0 : i32
    %c0_i32_1 = arith.constant 0 : i32
    return %c0_i32, %c0_i32_0 : i32, i32
  }
  func.func @transform_5(%arg0: i32) -> (i32, i32) {
    %c0_i32 = arith.constant 0 : i32
    %c0_i32_0 = arith.constant 0 : i32
    %c0_i32_1 = arith.constant 0 : i32
    return %c0_i32, %c0_i32_0 : i32, i32
  }
  func.func @transform_6(%arg0: i32) -> (i32, i32) {
    %c0_i32 = arith.constant 0 : i32
    %c0_i32_0 = arith.constant 0 : i32
    %c0_i32_1 = arith.constant 0 : i32
    return %c0_i32, %c0_i32_0 : i32, i32
  }
  func.func @transform_7(%arg0: i32) -> (i32, i32) {
    %c0_i32 = arith.constant 0 : i32
    %c0_i32_0 = arith.constant 0 : i32
    %c0_i32_1 = arith.constant 0 : i32
    return %c0_i32, %c0_i32_0 : i32, i32
  }
  func.func @transform_8(%arg0: i32) -> (i32, i32, i32, i32) {
    %c0_i32 = arith.constant 0 : i32
    %c0_i32_0 = arith.constant 0 : i32
    %c0_i32_1 = arith.constant 0 : i32
    %c0_i32_2 = arith.constant 0 : i32
    return %arg0, %c0_i32, %c0_i32_0, %c0_i32_1 : i32, i32, i32, i32
  }
}

</mosaic_0001>

<bundles_post_ra>
// kernel: tpu_custom_call.1
= control target key start
LH: loop header
LB: loop body
LE: loop exit
PB: predicated region body
PF: predicated region fallthrough
CT: control target
= control target key end

     0   :  { %13 = vsyncpa [#allocation4], 0  ;;  %s8779_s0 = inlined_call_operand.vmem [shape: bf16[2,18,18,128], index: 0, kind: input, shape index: {}]   ;;  %s8780_s1 = inlined_call_operand.hbm [shape: f32[2,16,16,128], index: 1, kind: input, shape index: {}]   ;;  %s8781_s2 = inlined_call_operand.vmem [shape: bf16[1152,128], index: 2, kind: input, shape index: {}]   ;;  %s8782_s3 = inlined_call_operand.hbm [shape: bf16[1152,128], index: 3, kind: input, shape index: {}]   ;;  %s8783_s4 = inlined_call_operand.vmem [shape: f32[1,128], index: 4, kind: input, shape index: {}]   ;;  %s8784_s5 = inlined_call_operand.vmem [shape: f32[1,128], index: 5, kind: input, shape index: {}]   ;;  %s8785_s6 = inlined_call_operand.vmem [shape: f32[1,128], index: 6, kind: input, shape index: {}]   ;;  %s8786_s7 = inlined_call_operand.vmem [shape: f32[1,128], index: 7, kind: input, shape index: {}]   ;;  %s8787_s8 = inlined_call_operand.hbm [shape: f32[2,16,16,128], index: 8, kind: output, shape index: {}]  }
   0x1   :  { %15 = vsyncpa [#allocation4 + $0x1], 0 }
   0x2   :  { %16 = vsyncpa [#allocation7], 0 }
   0x3   :  { %17 = vsyncpa [#allocation5], 0 }
   0x4   :  { %19 = vsyncpa [#allocation5 + $0x1], 0  ;;  %s6635_s27 = smov 0   ;;  %s6637_s28 = smov 0  }
   0x5   :  { %s6639_s29 = smov 0   ;;  %s6641_s30 = smov 0  }
   0x6 LB: > { %s6656_s9 = sadd.s32 4294967295, %s6576_s30   ;;  %s4941_s10 = sadd.s32 4294967294, %s6576_s30   ;;  %s6576_s30 = sphi %s6641_s30, %s8878_s30   ;;  %s6572_s29 = sphi %s6639_s29, %s8881_s29   ;;  %s6568_s28 = sphi %s6637_s28, %s8880_s28   ;;  %s6564_s27 = sphi %s6635_s27, %s8879_s27  }
   0x7   : > { %p71_p0 = scmp.ne.s32.totalorder %s6568_s28, %s6564_s27  ;;  %p8788_p1 = scmp.eq.s32.totalorder %s6656_s9, 0 }
   0x8   : > { %p227_p3 = scmp.eq.s32.totalorder %s4941_s10, 1  ;;  %p4942_p5 = scmp.ge.s32.totalorder %s6576_s30, 1 }
   0x9   : > { %p6665_p4 = por %p8788_p1, %p71_p0  ;;  %p234_p7 = scmp.lt.s32.totalorder %s6576_s30, 3 }
   0xa   : > { %p6670_p6 = por %p227_p3, %p71_p0  ;;  %s6578_s14 = smov [#allocation6]  }
   0xb   : > { %s8822_s11 = scalar_select %p6665_p4, 1, 0 }
   0xc   : > { %s8823_s12 = scalar_select %p6670_p6, 1, 0 }
   0xd   : > { %p6675_p8 = pnand %p4942_p5, %p234_p7  ;;  %s249_s15 = sshll.u32 %s6578_s14, 4  ;;  %s6679_s15 = int_to_ptr.vmem [resolvable:$true] %s249_s15 }
   0xe   : > { %s6691_s17 = sadd.s32 1, %s6576_s30   ;;  %s58_s18 = sadd.s32 1, %s6572_s29 }
   0xf   : > { %s8824_s13 = scalar_select %p6675_p8, 1, 0 }
  0x10   : > { %p6229_p9 = pneg %p6675_p8  ;;  %8826 = sst [smem:[#allocation12_spill]] %s6691_s17 }
  0x11   : > { %s55_s19 = ssub.s32 %s6576_s30, %s6691_s17  ;;  %s6448_s22 = scalar_lea.hbm %s8782_s3, 9216 }
  0x12   : > { %p6686_p11 = pnand %p6229_p9, %p8788_p1  ;;  %p6449_p12 = scmp.ne.s32.totalorder %s8782_s3, %s6448_s22 }
  0x13   : > { %p6455_p5 = scmp.lt.u32.totalorder %s6448_s22, %s8782_s3 }
  0x14   : > { %p6450_p13 = pneg %p6686_p11 }
  0x16   : > { %p6451_p0 = pnand %p6450_p13, %p6449_p12 }
  0x18   : > { %p6452_p3 = pneg %p6451_p0 }
  0x1a   : > { %p6457_p7 = pnand %p6455_p5, %p6452_p3 }
  0x1c   : > { %6460 = shalt.err (!%p6457_p7)
}
  0x1d   : > { %s6461_s10 = scalar_lea.vmem %s6679_s15, 9216  ;;  %p6469_p2 = scmp.lt.s32.totalorder %s6679_s15, %s6679_s15 }
  0x1e   : > { %p6462_p9 = scmp.ne.s32.totalorder %s6679_s15, %s6461_s10  ;;  %p6470_p6 = scmp.lt.s32.totalorder %s6461_s10, %s6461_s10 }
  0x20   : > { %p6464_p10 = pnand %p6462_p9, %p6450_p13  ;;  %p6471_p4 = por %p6470_p6, %p6469_p2 }
  0x22   : > { %p6465_p1 = pneg %p6464_p10 }
  0x24   : > { %p6472_p8 = pnand %p6471_p4, %p6465_p1 }
  0x26   : > { %6475 = shalt.err (!%p6472_p8)
}
  0x27   : > { %s6579_s14 = smov 64   ;;  %s6580_s20 = smov 4  }
  0x28   : > { %6232 = dma.hbm_to_vmem [thread:$0]  (!%p6686_p11), %s8782_s3, 9216, %s6679_s15, [#allocation7], %s6579_s14, %s6579_s14, %s6580_s20  }
  0x29   : > { %p56_p2 = scmp.eq.s32.totalorder %s55_s19, 0  ;;  %p65_p1 = scmp.ne.s32.totalorder %s6572_s29, %s6568_s28 }
  0x2a   : > { %p66_p4 = scmp.eq.s32.totalorder %s6576_s30, 0  ;;  %p6242_p6 = scmp.lt.s32.totalorder %s6576_s30, 2 }
  0x2b   : > { %s6722_s23 = scalar_select %p56_p2, %s6572_s29, %s58_s18  }
  0x2c   : > { %p67_p8 = por %p66_p4, %p65_p1  ;;  %p8827_p10 = scmp.eq.s32.totalorder %s6656_s9, 1 }
  0x2d   : > { %s283_s25 = sand.u32 1, %s6572_s29   ;;  %s5178_s26 = sshll.u32 %s6576_s30, 12 }
  0x2e   : > { %p6726_p12 = por %p8827_p10, %p65_p1  ;;  %s4945_s10 = sshll.u32 %s283_s25, 8 }
  0x2f   : > { %s6735_s21 = scalar_lea.hbm %s8780_s1, %s5178_s26  ;;  %s287_s15 = scalar_lea.vmem [#allocation3], %s4945_s10 }
  0x30   : > { %s294_s18 = sshll.u32 %s287_s15, 4  ;;  %p6737_p11 = pnand %p6242_p6, %p67_p8  ;;  %s6741_s18 = int_to_ptr.vmem [resolvable:$true] %s294_s18 }
  0x31   : > { %s6743_s14 = scalar_lea.sflag [#allocation4], %s283_s25  ;;  %s6476_s20 = scalar_lea.hbm %s6735_s21, 4096 }
  0x32   : > { %p6477_p13 = scmp.ne.s32.totalorder %s6735_s21, %s6476_s20  ;;  %p6478_p0 = pneg %p6737_p11 }
  0x33   : > { %s6481_s26 = scalar_lea.hbm %s8780_s1, 8192  ;;  %p6482_p7 = scmp.lt.u32.totalorder %s6735_s21, %s8780_s1 }
  0x34   : > { %p6479_p3 = pnand %p6478_p0, %p6477_p13  ;;  %p6483_p9 = scmp.lt.u32.totalorder %s6481_s26, %s6476_s20 }
  0x35   : > { %p6485_p1 = scmp.lt.u32.totalorder %s6476_s20, %s6735_s21 }
  0x36   : > { %p6480_p5 = pneg %p6479_p3  ;;  %p6484_p2 = por %p6483_p9, %p6482_p7 }
  0x38   : > { %p6486_p4 = por %p6485_p1, %p6484_p2 }
  0x3a   : > { %p6487_p6 = pnand %p6486_p4, %p6480_p5 }
  0x3c   : > { %6490 = shalt.err (!%p6487_p6)
}
  0x3d   : > { %s6491_s25 = scalar_lea.vmem %s6741_s18, 4096  ;;  %s6581_s15 = smov [#allocation3]  }
  0x3e   : > { %p6492_p8 = scmp.ne.s32.totalorder %s6741_s18, %s6491_s25  ;;  %s6496_s17 = sshll.u32 %s6581_s15, 4  ;;  %s6497_s17 = int_to_ptr.vmem [resolvable:$false] %s6496_s17 }
  0x3f   : > { %s6498_s22 = scalar_lea.vmem %s6497_s17, 8192  ;;  %p6499_p3 = scmp.lt.s32.totalorder %s6741_s18, %s6497_s17 }
  0x40   : > { %p6494_p10 = pnand %p6492_p8, %p6478_p0  ;;  %p6500_p7 = scmp.lt.s32.totalorder %s6498_s22, %s6491_s25 }
  0x42   : > { %p6495_p13 = pneg %p6494_p10  ;;  %p6501_p9 = por %p6500_p7, %p6499_p3 }
  0x44   : > { %p6502_p2 = pnand %p6501_p9, %p6495_p13 }
  0x46   : > { %6505 = shalt.err (!%p6502_p2)
}
  0x47   : > { %s6582_s20 = smov 128   ;;  %s6583_s26 = smov 8  }
  0x48   : > { %6236 = dma.hbm_to_vmem [thread:$0]  (!%p6737_p11), %s6735_s21, 4096, %s6741_s18, %s6743_s14, %s6582_s20, %s6582_s20, %s6583_s26  }
  0x49   : > { %p8830_p0 = scmp.ne.s32.totalorder %s8824_s13, 0 }
  0x4b   : > { %306 = sbr.rel (%p8830_p0) target bundleno = 1164 (0x48c), region = 52 }
  0x52   : > { %s6774_s10 = sand.u32 1, %s6568_s28   ;;  %p8831_p5 = scmp.ne.s32.totalorder %s8822_s11, 0 }
  0x53   : > { %s4949_s16 = sshll.u32 %s6774_s10, 8  ;;  %s309_s25 = scalar_lea.sflag [#allocation4], %s6774_s10 }
  0x54   : > { %s6780_s15 = scalar_lea.vmem [#allocation3], %s4949_s16 }
  0x55   : > { %6551 = dma.done.wait (%p8831_p5), %s309_s25, 4096  }
  0x56   : > { %6553 = vsyncadd (%p8831_p5), %s309_s25, 4294963200  ;;  %p8832_p11 = scmp.eq.s32.totalorder %s6656_s9, 0 }
  0x58   : > { %6555 = dma.done.wait (%p8832_p11), [#allocation7], 9216   ;;  %p8833_p1 = pmov %p8832_p11 }
  0x59   : > { %v6285_v0 = vld [vmem:[%s8781_s2 + $0x40] sm:$0xff]   ;;  %v6289_v4 = vld [vmem:[%s8781_s2 + $0x48] sm:$0xff]   ;;  %v6293_v8 = vld [vmem:[%s8781_s2 + $0x50] sm:$0xff]   ;;  %p354_p4 = scmp.lt.s32.totalorder %s6656_s9, 1  ;;  %vm414_vm0 = vsmask.f32 3328 }
  0x5a   : > { %6557 = vsyncadd (%p8833_p1), [#allocation7], 4294958080  ;;  %v6286_v1 = vld [vmem:[%s8781_s2 + $0xc0] sm:$0xff]   ;;  %5180 = vmatprep.subr.bf16.mxu0 %v6285_v0  ;;  %v6290_v5 = vld [vmem:[%s8781_s2 + $0xc8] sm:$0xff]   ;;  %vm415_vm1 = vsmask.f32 7440 }
  0x5b   : > { %v6287_v2 = vld [vmem:[%s8781_s2] sm:$0xff]   ;;  %5292 = vmatprep.subr.bf16.mxu1 %v6286_v1  ;;  %v6291_v6 = vld [vmem:[%s8781_s2 + $0x8] sm:$0xff]   ;;  %v6294_v9 = vld [vmem:[%s8781_s2 + $0xd0] sm:$0xff]   ;;  %s355_s13 = scalar_select %p354_p4, %s6656_s9, 1  ;;  %vm849_vm2 = vcmask 1042432   ;;  %vm850_vm3 = vcmask 1046532  }
  0x5c   : > { %v6288_v3 = vld [vmem:[%s8781_s2 + $0x80] sm:$0xff]   ;;  %5181 = vmatpush3.bf16.msra.mxu0 %v6287_v2  ;;  %v6292_v7 = vld [vmem:[%s8781_s2 + $0x88] sm:$0xff]   ;;  %v6295_v10 = vld [vmem:[%s8781_s2 + $0x10] sm:$0xff]   ;;  %vm2897_vm6 = vsmask.f32 7424  ;;  %vm3138_vm7 = vcmask 1046528  }
  0x5d   : > { %5293 = vmatpush3.bf16.msra.mxu1 %v6288_v3  ;;  %5182 = vmatprep.subr.bf16.mxu0 %v6289_v4  ;;  %v6296_v11 = vld [vmem:[%s8781_s2 + $0x90] sm:$0xff]   ;;  %v6297_v12 = vld [vmem:[%s8781_s2 + $0x58] sm:$0xff]   ;;  %v6301_v16 = vld [vmem:[%s8781_s2 + $0x60] sm:$0xff]   ;;  %s6220_s26 = smul.u32 216, %s355_s13  ;;  %s8584_s18 = scalar_lea.vmem [#allocation8], %s4949_s16 }
  0x5e   : > { %5294 = vmatprep.subr.bf16.mxu1 %v6290_v5  ;;  %v6298_v13 = vld [vmem:[%s8781_s2 + $0xd8] sm:$0xff]   ;;  %v6302_v17 = vld [vmem:[%s8781_s2 + $0xe0] sm:$0xff]   ;;  %v6305_v20 = vld [vmem:[%s8781_s2 + $0x68] sm:$0xff]   ;;  %s5179_s16 = sshll.u32 %s6656_s9, 12  ;;  %s4846_s19 = sshll.u32 %s8584_s18, 4  ;;  %s8732_s19 = int_to_ptr.vmem [resolvable:$true] %s4846_s19 }
  0x5f   : > { %v6299_v14 = vld [vmem:[%s8781_s2 + $0x18] sm:$0xff]   ;;  %v6303_v18 = vld [vmem:[%s8781_s2 + $0x20] sm:$0xff]   ;;  %v6306_v21 = vld [vmem:[%s8781_s2 + $0xe8] sm:$0xff]   ;;  %s6885_s25 = scalar_lea.vmem %s8779_s0, %s6220_s26  ;;  %s8730_s26 = scalar_lea.hbm %s8787_s8, %s5179_s16 }
  0x60   : > { %5183 = vmatpush3.bf16.msra.mxu0 %v6291_v6  ;;  %v6300_v15 = vld [vmem:[%s8781_s2 + $0x98] sm:$0xff]   ;;  %v6304_v19 = vld [vmem:[%s8781_s2 + $0xa0] sm:$0xff]   ;;  %v6307_v22 = vld [vmem:[%s8781_s2 + $0x28] sm:$0xff]   ;;  %s4833_s9 = scalar_lea.sflag [#allocation5], %s6774_s10  ;;  %s6587_s17 = smov [#allocation8]  }
  0x61   : > { %5295 = vmatpush3.bf16.msra.mxu1 %v6292_v7  ;;  %5184 = vmatprep.subr.bf16.mxu0 %v6293_v8  ;;  %v6308_v23 = vld [vmem:[%s8781_s2 + $0xa8] sm:$0xff]   ;;  %v6309_v24 = vld [vmem:[%s8781_s2 + $0x70] sm:$0xff]   ;;  %v6313_v28 = vld [vmem:[%s8781_s2 + $0x78] sm:$0xff]   ;;  %s6510_s11 = sshll.u32 %s6587_s17, 4  ;;  %s6511_s11 = int_to_ptr.vmem [resolvable:$false] %s6510_s11 }
  0x62   : > { %5296 = vmatprep.subr.bf16.mxu1 %v6294_v9  ;;  %v6310_v25 = vld [vmem:[%s8781_s2 + $0xf0] sm:$0xff]   ;;  %v6314_v29 = vld [vmem:[%s8781_s2 + $0xf8] sm:$0xff]   ;;  %v6894_v32 = vld [vmem:[%s6885_s25] sm:$0xf]  ;;  %s6512_s13 = scalar_lea.vmem %s6511_s11, 8192  ;;  %p6513_p13 = scmp.lt.s32.totalorder %s8732_s19, %s6511_s11 }
  0x63   : > { %v6311_v26 = vld [vmem:[%s8781_s2 + $0x30] sm:$0xff]   ;;  %v6315_v30 = vld [vmem:[%s8781_s2 + $0x38] sm:$0xff]   ;;  %v6897_v33 = vld [vmem:[%s6885_s25 + $0x4] sm:$0xf]  ;;  %v418_v35 = vshrl.u32 %v6894_v32, 16  ;;  %v421_v36 = vshll.u32 %v6894_v32, 16 }
  0x64   : > { %5185 = vmatpush3.bf16.msra.mxu0 %v6295_v10  ;;  %v6312_v27 = vld [vmem:[%s8781_s2 + $0xb0] sm:$0xff]   ;;  %v6316_v31 = vld [vmem:[%s8781_s2 + $0xb8] sm:$0xff]   ;;  %v362_v34 = vld [vmem:[%s6885_s25 + $0x8] sm:$0x1]  ;;  %v427_v37 = vshll.u32 %v6897_v33, 16  ;;  %v431_v38 = vshrl.u32 %v6897_v33, 16  ;;  %v4971_v60 = vcombine.low %v6894_v32, %v6897_v33 }
  0x65   : > { %5297 = vmatpush3.bf16.msra.mxu1 %v6296_v11  ;;  %5186 = vmatprep.subr.bf16.mxu0 %v6297_v12  ;;  %v6905_v39 = vld [vmem:[%s6885_s25 + $0xc] sm:$0xf]  ;;  %v437_v40 = vshll.u32 %v362_v34, 16  ;;  %v857_v41 = vrot.slane %v362_v34, 5  ;;  %v6908_v42 = vld [vmem:[%s6885_s25 + $0x10] sm:$0xf]  ;;  %vm6915_vm4 = vmor %vm849_vm2, %vm850_vm3 }
  0x66   : > { %5298 = vmatprep.subr.bf16.mxu1 %v6298_v13  ;;  %v442_v43 = vshrl.u32 %v6905_v39, 16  ;;  %v445_v44 = vshll.u32 %v6905_v39, 16  ;;  %v420_v45 = vrot.slane %v418_v35, 4  ;;  %v423_v46 = vrot.slane %v421_v36, 5  ;;  %v6319_v58 = vld [vmem:[%s8781_s2 + $0x140] sm:$0xff]   ;;  %vm6929_vm5 = vmor %vm414_vm0, %vm415_vm1  ;;  %v6385_v53 = vld [vmem:[#allocation6 + $0x68] sm:$0xff]  }
  0x67   : > { %v429_v47 = vrot.slane %v427_v37, 5  ;;  %v433_v48 = vrot.slane %v431_v38, 4  ;;  %v439_v49 = vrot.slane %v437_v40, 5  ;;  %v451_v52 = vshll.u32 %v6908_v42, 16  ;;  %v365_v63 = vld [vmem:[%s6885_s25 + $0x14] sm:$0x1] }
  0x68   : > { %5187 = vmatpush3.bf16.msra.mxu0 %v6299_v14  ;;  %v444_v50 = vrot.slane %v442_v43, 4  ;;  %v447_v51 = vrot.slane %v445_v44, 5  ;;  %v424_v54 = vor.u32 %v423_v46, %v420_v45  ;;  %v455_v56 = vshrl.u32 %v6908_v42, 16  ;;  %v6940_v5 = vld [vmem:[%s6885_s25 + $0x18] sm:$0xf]  ;;  %v6324_v40 = vld [vmem:[%s8781_s2 + $0x108] sm:$0xff]  }
  0x69   : > { %5299 = vmatpush3.bf16.msra.mxu1 %v6300_v15  ;;  %5188 = vmatprep.subr.bf16.mxu0 %v6301_v16  ;;  %v434_v55 = vor.u32 %v433_v48, %v429_v47  ;;  %v6922_v57 = vcombine.low %v6905_v39, %v6908_v42  ;;  %v4953_v61 = vrot.slane %v6894_v32, 9  ;;  %v854_v62 = vrot.slane %v6897_v33, 5  ;;  %v6945_v10 = vld [vmem:[%s6885_s25 + $0x1c] sm:$0xf]  ;;  %v6327_v45 = vld [vmem:[%s8781_s2 + $0x150] sm:$0xff]  }
  0x6a   : > { %5300 = vmatprep.subr.bf16.mxu1 %v6302_v17  ;;  %v448_v0 = vor.u32 %v447_v51, %v444_v50  ;;  %v425_v1 = vrot.slane %v424_v54, 4  ;;  %v457_v3 = vrot.slane %v455_v56, 4  ;;  %v453_v4 = vrot.slane %v451_v52, 5  ;;  %v6320_v17 = vld [vmem:[%s8781_s2 + $0x100] sm:$0xff]   ;;  %v7005_v50 = vld [vmem:[%s6885_s25 + $0x2c] sm:$0x1] }
  0x6b   : > { %v435_v2 = vrot.slane %v434_v55, 4  ;;  %2017 = vmatprep.mubr.bf16.mxu1 %v6922_v57  ;;  %v855_v6 = vsel %vm6915_vm4, %v4953_v61, %v854_v62  ;;  %v856_v7 = vrot.slane %v854_v62, 4  ;;  %v461_v9 = vshll.u32 %v365_v63, 16  ;;  %v6328_v51 = vld [vmem:[%s8781_s2 + $0x110] sm:$0xff]  }
  0x6c   : > { %5189 = vmatpush3.bf16.msra.mxu0 %v6303_v18  ;;  %v449_v8 = vrot.slane %v448_v0, 4  ;;  %v430_v11 = vsel %vm6929_vm5, %v425_v1, %v429_v47  ;;  %v458_v13 = vor.u32 %v457_v3, %v453_v4  ;;  %v466_v14 = vshrl.u32 %v6940_v5, 16  ;;  %v7019_v0 = vld [vmem:[%s6885_s25 + $0x34] sm:$0xf] }
  0x6d   : > { %5301 = vmatpush3.bf16.msra.mxu1 %v6304_v19  ;;  %5190 = vmatprep.subr.bf16.mxu0 %v6305_v20  ;;  %v440_v12 = vsel %vm6929_vm5, %v435_v2, %v439_v49  ;;  %v858_v16 = vsel %vm6915_vm4, %v856_v7, %v857_v41  ;;  %v463_v19 = vrot.slane %v461_v9, 5  ;;  %v6960_v20 = vld [vmem:[%s6885_s25 + $0x20] sm:$0x1]  ;;  %v475_v35 = vshll.u32 %v6945_v10, 16 }
  0x6e   : > { %5302 = vmatprep.subr.bf16.mxu1 %v6306_v21  ;;  %v4987_v15 = vcombine.low %v430_v11, %v440_v12  ;;  %v454_v18 = vsel %vm6929_vm5, %v449_v8, %v453_v4  ;;  %v6963_v21 = vld [vmem:[%s6885_s25 + $0x24] sm:$0xf]  ;;  %v468_v33 = vrot.slane %v466_v14, 4  ;;  %v485_v43 = vshll.u32 %v6960_v20, 16 }
  0x6f   : > { %v490_v44 = vshrl.u32 %v6963_v21, 16  ;;  %v493_v47 = vshll.u32 %v6963_v21, 16  ;;  %v868_v61 = vrot.slane %v6945_v10, 5  ;;  %v871_v62 = vrot.slane %v6960_v20, 5 }
  0x70   : > { %5191 = vmatpush3.bf16.msra.mxu0 %v6307_v22  ;;  %v5003_v22 = vcombine.low %v855_v6, %v858_v16  ;;  %1856 = vmatprep.mubr.bf16.mxu0 %v4987_v15  ;;  %v487_v56 = vrot.slane %v485_v43, 5  ;;  %v509_v9 = vshll.u32 %v7005_v50, 16 }
  0x71   : > { %5303 = vmatpush3.bf16.msra.mxu1 %v6308_v23  ;;  %5192 = vmatprep.subr.bf16.mxu0 %v6309_v24  ;;  %v459_v23 = vrot.slane %v458_v13, 4  ;;  %v469_v24 = vshll.u32 %v6940_v5, 16  ;;  %v495_v3 = vrot.slane %v493_v47, 5  ;;  %v870_v7 = vrot.slane %v868_v61, 4 }
  0x72   : > { %5304 = vmatprep.subr.bf16.mxu1 %v6310_v25  ;;  %v479_v25 = vshrl.u32 %v6945_v10, 16  ;;  %v511_v16 = vrot.slane %v509_v9, 5  ;;  %v7116_v9 = vld [vmem:[%s6885_s25 + $0x4c] sm:$0xf] }
  0x73   : > { %v464_v32 = vsel %vm6929_vm5, %v459_v23, %v463_v19  ;;  %v471_v34 = vrot.slane %v469_v24, 5  ;;  %v872_v15 = vsel %vm6915_vm4, %v870_v7, %v871_v62  ;;  %v527_v23 = vshrl.u32 %v7019_v0, 16  ;;  %v7051_v24 = vld [vmem:[%s6885_s25 + $0x38] sm:$0x1] }
  0x74   : > { %5193 = vmatpush3.bf16.msra.mxu0 %v6311_v26  ;;  %v6968_v26 = vld [vmem:[%s6885_s25 + $0x28] sm:$0xf]  ;;  %v6982_v36 = vcombine.low %v454_v18, %v464_v32  ;;  %v6335_v18 = vld [vmem:[%s8781_s2 + $0x160] sm:$0xff]   ;;  %v533_v43 = vshll.u32 %v7051_v24, 16 }
  0x75   : > { %5305 = vmatpush3.bf16.msra.mxu1 %v6312_v27  ;;  %5194 = vmatprep.subr.bf16.mxu0 %v6313_v28  ;;  %v6323_v27 = vld [vmem:[%s8781_s2 + $0x148] sm:$0xff]   ;;  %v6975_v28 = vcombine.low %v6940_v5, %v6945_v10  ;;  %v472_v41 = vor.u32 %v471_v34, %v468_v33  ;;  %v503_v48 = vshrl.u32 %v6968_v26, 16  ;;  %v7002_v49 = vcombine.low %v6963_v21, %v6968_v26  ;;  %v7065_v32 = vld [vmem:[%s6885_s25 + $0x40] sm:$0xf] }
  0x76   : > { %5306 = vmatprep.subr.bf16.mxu1 %v6314_v29  ;;  %v4954_v29 = vrot.slane %v6905_v39, 9  ;;  %v481_v39 = vrot.slane %v479_v25, 4  ;;  %v499_v4 = vshll.u32 %v6968_v26, 16  ;;  %v7054_v25 = vld [vmem:[%s6885_s25 + $0x3c] sm:$0xf] }
  0x77   : > { %v473_v54 = vrot.slane %v472_v41, 4  ;;  %v505_v8 = vrot.slane %v503_v48, 4  ;;  %v529_v41 = vrot.slane %v527_v23, 4 }
  0x78   : > { %5195 = vmatpush3.bf16.msra.mxu0 %v6315_v30  ;;  %v861_v30 = vrot.slane %v6908_v42, 5  ;;  %v477_v42 = vrot.slane %v475_v35, 5  ;;  %v501_v12 = vrot.slane %v499_v4, 5  ;;  %v6343_v4 = vld [vmem:[%s8781_s2 + $0x170] sm:$0xff]  }
  0x79   : > { %5307 = vmatpush3.bf16.msra.mxu1 %v6316_v31  ;;  %5404 = vmatprep.subr.bf16.mxu0 %v6319_v58  ;;  %v864_v31 = vrot.slane %v365_v63, 5  ;;  %v7013_v58 = vld [vmem:[%s6885_s25 + $0x30] sm:$0xf]  ;;  %v492_v63 = vrot.slane %v490_v44, 4  ;;  %v538_v44 = vshrl.u32 %v7054_v25, 16 }
  0x7a   : > { %v862_v37 = vsel %vm6915_vm4, %v4954_v29, %v861_v30  ;;  %v863_v38 = vrot.slane %v861_v30, 4  ;;  %v482_v55 = vor.u32 %v481_v39, %v477_v42  ;;  %v478_v1 = vsel %vm6929_vm5, %v473_v54, %v477_v42 }
  0x7b   : > { %1857 = vmatmul.mubr.bf16.vlgmr.msra.gmra.mrb[0].mxu0 %v4971_v60  ;;  %v4955_v60 = vrot.slane %v6940_v5, 9  ;;  %v6331_v5 = vld [vmem:[%s8781_s2 + $0x158] sm:$0xff]   ;;  %v496_v11 = vor.u32 %v495_v3, %v492_v63  ;;  %v514_v13 = vshrl.u32 %v7013_v58, 16  ;;  %v4956_v29 = vrot.slane %v6963_v21, 9  ;;  %v6345_v21 = vld [vmem:[%s8781_s2 + $0x1c0] sm:$0xff]  }
  0x7c   : > { %2018 = vmatmul.mubr.bf16.vlgmr.msra.gmra.mrb[0].mxu1 %v5003_v22  ;;  %5405 = vmatpush3.bf16.msra.mxu0 %v6320_v17  ;;  %v865_v46 = vsel %vm6915_vm4, %v863_v38, %v864_v31  ;;  %v483_v2 = vrot.slane %v482_v55, 4  ;;  %v6332_v17 = vld [vmem:[%s8781_s2 + $0x118] sm:$0xff]   ;;  %v506_v22 = vor.u32 %v505_v8, %v501_v12  ;;  %v875_v30 = vrot.slane %v6968_v26, 5  ;;  %v7107_v3 = vld [vmem:[%s6885_s25 + $0x48] sm:$0xf] }
  0x7d   : > { %2025 = vmatprep.mubr.bf16.mxu1 %v6975_v28  ;;  %5406 = vmatprep.subr.bf16.mxu0 %v6323_v27  ;;  %v7010_v52 = vcombine.low %v862_v37, %v865_v46  ;;  %v869_v6 = vsel %vm6915_vm4, %v4955_v60, %v868_v61  ;;  %v497_v20 = vrot.slane %v496_v11, 4  ;;  %v7059_v27 = vcombine.low %v7013_v58, %v7019_v0  ;;  %v6340_v60 = vld [vmem:[%s8781_s2 + $0x128] sm:$0xff]   ;;  %v6346_v61 = vld [vmem:[%s8781_s2 + $0x180] sm:$0xff]  }
  0x7e   : > { %1864 = vmatprep.mubr.bf16.mxu0 %v6982_v36  ;;  %v488_v10 = vsel %vm6929_vm5, %v483_v2, %v487_v56  ;;  %v7047_v19 = vcombine.low %v869_v6, %v872_v15  ;;  %v878_v31 = vrot.slane %v7005_v50, 5  ;;  %v507_v34 = vrot.slane %v506_v22, 4  ;;  %5516 = vmatprep.subr.bf16.mxu1 %v6345_v21  ;;  %v7094_v56 = vld [vmem:[%s6885_s25 + $0x44] sm:$0x1] }
  0x7f   : > { %v7035_v14 = vcombine.low %v478_v1, %v488_v10  ;;  %v502_v33 = vsel %vm6929_vm5, %v497_v20, %v501_v12  ;;  %v516_v35 = vrot.slane %v514_v13, 4  ;;  %v876_v38 = vsel %vm6915_vm4, %v4956_v29, %v875_v30  ;;  %5517 = vmatpush3.bf16.msra.mxu1 %v6346_v61  ;;  %v6349_v13 = vld [vmem:[%s8781_s2 + $0x188] sm:$0xff]  }
  0x80   : > { %5407 = vmatpush3.bf16.msra.mxu0 %v6324_v40  ;;  %v877_v39 = vrot.slane %v875_v30, 4  ;;  %v523_v40 = vshll.u32 %v7019_v0, 16  ;;  %v512_v26 = vsel %vm6929_vm5, %v507_v34, %v511_v16  ;;  %v541_v50 = vshll.u32 %v7054_v25, 16 }
  0x81   : > { %5408 = vmatprep.subr.bf16.mxu0 %v6327_v45  ;;  %v6336_v45 = vld [vmem:[%s8781_s2 + $0x120] sm:$0xff]   ;;  %v7082_v46 = vcombine.low %v502_v33, %v512_v26  ;;  %v551_v55 = vshrl.u32 %v7065_v32, 16  ;;  %v535_v63 = vrot.slane %v533_v43, 5  ;;  %v4957_v1 = vrot.slane %v7013_v58, 9  ;;  %v7159_v26 = vld [vmem:[%s6885_s25 + $0x58] sm:$0xf] }
  0x82   : > { %v879_v47 = vsel %vm6915_vm4, %v877_v39, %v878_v31  ;;  %v525_v48 = vrot.slane %v523_v40, 5  ;;  %v882_v2 = vrot.slane %v7019_v0, 5  ;;  %v885_v6 = vrot.slane %v7051_v24, 5  ;;  %v6344_v31 = vld [vmem:[%s8781_s2 + $0x130] sm:$0xff]  }
  0x83   : > { %1865 = vmatmul.mubr.bf16.gmra.mrb[4].mxu0 %v6922_v57  ;;  %v517_v57 = vshll.u32 %v7013_v58, 16  ;;  %v540_v7 = vrot.slane %v538_v44, 4  ;;  %v543_v8 = vrot.slane %v541_v50, 5  ;;  %v6347_v58 = vld [vmem:[%s8781_s2 + $0x1c8] sm:$0xff]   ;;  %v547_v12 = vshll.u32 %v7065_v32, 16 }
  0x84   : > { %2026 = vmatmul.mubr.bf16.gmra.mrb[4].mxu1 %v7010_v52  ;;  %5409 = vmatpush3.bf16.msra.mxu0 %v6328_v51  ;;  %v6339_v51 = vld [vmem:[%s8781_s2 + $0x168] sm:$0xff]   ;;  %v530_v62 = vor.u32 %v529_v41, %v525_v48  ;;  %v884_v11 = vrot.slane %v882_v2, 4  ;;  %v553_v16 = vrot.slane %v551_v55, 4  ;;  %v7136_v22 = vcombine.low %v7054_v25, %v7065_v32 }
  0x85   : > { %2033 = vmatprep.mubr.bf16.mxu1 %v7002_v49  ;;  %5410 = vmatprep.subr.bf16.mxu0 %v6331_v5  ;;  %v519_v37 = vrot.slane %v517_v57, 5  ;;  %v7112_v5 = vcombine.low %v876_v38, %v879_v47  ;;  %v544_v15 = vor.u32 %v543_v8, %v540_v7  ;;  %v557_v57 = vshll.u32 %v7094_v56, 16  ;;  %v7149_v38 = vld [vmem:[%s6885_s25 + $0x54] sm:$0xf] }
  0x86   : > { %1872 = vmatprep.mubr.bf16.mxu0 %v7035_v14  ;;  %v531_v10 = vrot.slane %v530_v62, 4  ;;  %5518 = vmatprep.subr.bf16.mxu1 %v6347_v58  ;;  %v549_v23 = vrot.slane %v547_v12, 5  ;;  %v565_v24 = vshll.u32 %v7107_v3, 16  ;;  %v883_v39 = vsel %vm6915_vm4, %v4957_v1, %v882_v2 }
  0x87   : > { %v520_v42 = vor.u32 %v519_v37, %v516_v35  ;;  %v545_v30 = vrot.slane %v544_v15, 4  ;;  %5519 = vmatpush3.bf16.msra.mxu1 %v6349_v13  ;;  %v559_v34 = vrot.slane %v557_v57, 5  ;;  %v575_v35 = vshrl.u32 %v7116_v9, 16  ;;  %v7146_v37 = vld [vmem:[%s6885_s25 + $0x50] sm:$0x1] }
  0x88   : > { %5411 = vmatpush3.bf16.msra.mxu0 %v6332_v17  ;;  %v562_v17 = vshrl.u32 %v7107_v3, 16  ;;  %v536_v20 = vsel %vm6929_vm5, %v531_v10, %v535_v63  ;;  %v554_v33 = vor.u32 %v553_v16, %v549_v23  ;;  %v886_v40 = vsel %vm6915_vm4, %v884_v11, %v885_v6  ;;  %v6354_v10 = vld [vmem:[%s8781_s2 + $0x198] sm:$0xff]   ;;  %v7198_v13 = vld [vmem:[%s6885_s25 + $0x64] sm:$0xf] }
  0x89   : > { %5412 = vmatprep.subr.bf16.mxu0 %v6335_v18  ;;  %v521_v54 = vrot.slane %v520_v42, 4  ;;  %v6350_v18 = vld [vmem:[%s8781_s2 + $0x1d0] sm:$0xff]   ;;  %v889_v41 = vrot.slane %v7065_v32, 5  ;;  %v567_v44 = vrot.slane %v565_v24, 5  ;;  %v577_v47 = vrot.slane %v575_v35, 4  ;;  %v6356_v24 = vld [vmem:[%s8781_s2 + $0x138] sm:$0xff]  }
  0x8a   : > { %5520 = vmatprep.subr.bf16.mxu1 %v6350_v18  ;;  %v564_v21 = vrot.slane %v562_v17, 4  ;;  %v6351_v42 = vld [vmem:[%s8781_s2 + $0x190] sm:$0xff]   ;;  %v555_v43 = vrot.slane %v554_v33, 4  ;;  %v550_v32 = vsel %vm6929_vm5, %v545_v30, %v549_v23  ;;  %v586_v50 = vshrl.u32 %v7149_v38, 16 }
  0x8b   : > { %1873 = vmatmul.mubr.bf16.gmra.mrb[8].mxu0 %v6975_v28  ;;  %v526_v0 = vsel %vm6929_vm5, %v521_v54, %v525_v48  ;;  %v581_v48 = vshll.u32 %v7146_v37, 16  ;;  %5521 = vmatpush3.bf16.msra.mxu1 %v6351_v42  ;;  %v589_v61 = vshll.u32 %v7149_v38, 16  ;;  %v7177_v62 = vcombine.low %v883_v39, %v886_v40 }
  0x8c   : > { %2034 = vmatmul.mubr.bf16.gmra.mrb[8].mxu1 %v7047_v19  ;;  %1880 = vmatprep.mubr.bf16.mxu0 %v7082_v46  ;;  %v7139_v29 = vcombine.low %v526_v0, %v536_v20  ;;  %v560_v54 = vsel %vm6929_vm5, %v555_v43, %v559_v34  ;;  %v568_v55 = vor.u32 %v567_v44, %v564_v21  ;;  %v4958_v1 = vrot.slane %v7054_v25, 9  ;;  %v7192_v0 = vld [vmem:[%s6885_s25 + $0x60] sm:$0xf] }
  0x8d   : > { %2041 = vmatprep.mubr.bf16.mxu1 %v7059_v27  ;;  %5413 = vmatpush3.bf16.msra.mxu0 %v6336_v45  ;;  %v571_v45 = vshll.u32 %v7116_v9, 16  ;;  %v7181_v63 = vcombine.low %v7107_v3, %v7116_v9  ;;  %v599_v2 = vshrl.u32 %v7159_v26, 16  ;;  %v7188_v6 = vcombine.low %v550_v32, %v560_v54 }
  0x8e   : > { %5414 = vmatprep.subr.bf16.mxu0 %v6339_v51  ;;  %v6352_v51 = vld [vmem:[%s8781_s2 + $0x1d8] sm:$0xff]   ;;  %v891_v7 = vrot.slane %v889_v41, 4  ;;  %v892_v8 = vrot.slane %v7094_v56, 5  ;;  %v569_v11 = vrot.slane %v568_v55, 4  ;;  %v583_v12 = vrot.slane %v581_v48, 5 }
  0x8f   : > { %8838 = vst [vmem:[#allocation13_spill] sm:$0xff] %v7181_v63  ;;  %5522 = vmatprep.subr.bf16.mxu1 %v6352_v51  ;;  %v588_v25 = vrot.slane %v586_v50, 4  ;;  %v896_v16 = vrot.slane %v7116_v9, 5  ;;  %v591_v57 = vrot.slane %v589_v61, 5  ;;  %v595_v17 = vshll.u32 %v7159_v26, 16  ;;  %v6355_v56 = vld [vmem:[%s8781_s2 + $0x178] sm:$0xff]  }
  0x90   : > { %5523 = vmatpush3.bf16.msra.mxu1 %v6354_v10  ;;  %v890_v18 = vsel %vm6915_vm4, %v4958_v1, %v889_v41  ;;  %v4959_v20 = vrot.slane %v7107_v3, 9  ;;  %v601_v23 = vrot.slane %v599_v2, 4  ;;  %v893_v30 = vsel %vm6915_vm4, %v891_v7, %v892_v8  ;;  %v7226_v41 = vld [vmem:[%s6885_s25 + $0x6c] sm:$0xf]  ;;  %v7236_v48 = vld [vmem:[%s6885_s25 + $0x68] sm:$0x1] }
  0x91   : > { %5415 = vmatpush3.bf16.msra.mxu0 %v6340_v60  ;;  %v573_v60 = vrot.slane %v571_v45, 5  ;;  %v597_v33 = vrot.slane %v595_v17, 5  ;;  %v610_v34 = vshrl.u32 %v7192_v0, 16  ;;  %v899_v39 = vrot.slane %v7146_v37, 5  ;;  %v7239_v37 = vld [vmem:[%s6885_s25 + $0x70] sm:$0xf] }
  0x92   : > { %5416 = vmatprep.subr.bf16.mxu0 %v6343_v4  ;;  %v7186_v4 = vld [vmem:[%s6885_s25 + $0x5c] sm:$0x1]  ;;  %v613_v40 = vshll.u32 %v7192_v0, 16  ;;  %v898_v21 = vrot.slane %v896_v16, 4  ;;  %v623_v43 = vshrl.u32 %v7198_v13, 16  ;;  %v7229_v44 = vcombine.low %v890_v18, %v893_v30  ;;  %v6357_v50 = vld [vmem:[%s8781_s2 + $0x1e0] sm:$0xff]  }
  0x93   : > { %1881 = vmatmul.mubr.bf16.gmra.mrb[12].mxu0 %v7002_v49  ;;  %v578_v58 = vor.u32 %v577_v47, %v573_v60  ;;  %v605_v9 = vshll.u32 %v7186_v4, 16  ;;  %v574_v3 = vsel %vm6929_vm5, %v569_v11, %v573_v60  ;;  %v602_v42 = vor.u32 %v601_v23, %v597_v33  ;;  %v6358_v61 = vld [vmem:[%s8781_s2 + $0x1a0] sm:$0xff]   ;;  %5524 = vmatprep.subr.bf16.mxu1 %v6357_v50  ;;  %v6359_v7 = vld [vmem:[%s8781_s2 + $0x1e8] sm:$0xff]   ;;  %v7279_v23 = vld [vmem:[%s6885_s25 + $0x78] sm:$0xf] }
  0x94   : > { %2042 = vmatmul.mubr.bf16.gmra.mrb[12].mxu1 %v7112_v5  ;;  %1888 = vmatprep.mubr.bf16.mxu0 %v7139_v29  ;;  %8839 = vst [vmem:[#allocation14_spill] sm:$0xff] %v7229_v44  ;;  %v7233_v45 = vcombine.low %v7149_v38, %v7159_v26  ;;  %v612_v55 = vrot.slane %v610_v34, 4  ;;  %v615_v60 = vrot.slane %v613_v40, 5  ;;  %v619_v1 = vshll.u32 %v7198_v13, 16  ;;  %v6362_v34 = vld [vmem:[%s8781_s2 + $0x1f0] sm:$0xff]  }
  0x95   : > { %2049 = vmatprep.mubr.bf16.mxu1 %v7136_v22  ;;  %5417 = vmatpush3.bf16.msra.mxu0 %v6344_v31  ;;  %v579_v15 = vrot.slane %v578_v58, 4  ;;  %v592_v31 = vor.u32 %v591_v57, %v588_v25  ;;  %v607_v32 = vrot.slane %v605_v9, 5  ;;  %v603_v54 = vrot.slane %v602_v42, 4  ;;  %v7296_v40 = vld [vmem:[%s6885_s25 + $0x74] sm:$0x1] }
  0x96   : > { %5418 = vmatprep.subr.bf16.mxu0 %v6355_v56  ;;  %8840 = vst [vmem:[#allocation15_spill] sm:$0xff] %v7233_v45  ;;  %v625_v2 = vrot.slane %v623_v43, 4  ;;  %v897_v8 = vsel %vm6915_vm4, %v4959_v20, %v896_v16  ;;  %v900_v58 = vsel %vm6915_vm4, %v898_v21, %v899_v39  ;;  %v634_v10 = vshrl.u32 %v7226_v41, 16  ;;  %5525 = vmatpush3.bf16.msra.mxu1 %v6358_v61 }
  0x97   : > { %v584_v35 = vsel %vm6929_vm5, %v579_v15, %v583_v12  ;;  %v593_v47 = vrot.slane %v592_v31, 4  ;;  %v903_v12 = vrot.slane %v7159_v26, 5  ;;  %v7263_v25 = vrot.slane %v619_v1, 5  ;;  %v6361_v26 = vld [vmem:[%s8781_s2 + $0x1a8] sm:$0xff]   ;;  %5526 = vmatprep.subr.bf16.mxu1 %v6359_v7 }
  0x98   : > { %v7244_v51 = vcombine.low %v574_v3, %v584_v35  ;;  %v637_v15 = vshll.u32 %v7226_v41, 16  ;;  %v608_v16 = vsel %vm6929_vm5, %v603_v54, %v607_v32  ;;  %v616_v57 = vor.u32 %v615_v60, %v612_v55 }
  0x99   : > { %5419 = vmatpush3.bf16.msra.mxu0 %v6356_v24  ;;  %v598_v11 = vsel %vm6929_vm5, %v593_v47, %v597_v33  ;;  %v629_v17 = vshll.u32 %v7236_v48, 16  ;;  %v647_v56 = vshrl.u32 %v7239_v37, 16  ;;  %v7275_v18 = vcombine.low %v897_v8, %v900_v58  ;;  %v7287_v33 = vld [vmem:[%s6885_s25 + $0x7c] sm:$0xf] }
  0x9a   : > { %8841 = vst [vmem:[#allocation16_spill] sm:$0xff] %v7244_v51  ;;  %v626_v20 = vor.u32 %v625_v2, %v7263_v25  ;;  %v7283_v9 = vcombine.low %v7192_v0, %v7198_v13  ;;  %v4960_v24 = vrot.slane %v7149_v38, 9  ;;  %v636_v30 = vrot.slane %v634_v10, 4  ;;  %5527 = vmatpush3.bf16.msra.mxu1 %v6361_v26  ;;  %v6363_v38 = vld [vmem:[%s8781_s2 + $0x1b0] sm:$0xff]  }
  0x9b   : > { %1889 = vmatmul.mubr.bf16.gmra.mrb[16].mxu0 %v7059_v27  ;;  %8842 = vst [vmem:[#allocation17_spill] sm:$0xff] %v7275_v18  ;;  %v639_v31 = vrot.slane %v637_v15, 5  ;;  %v7292_v3 = vcombine.low %v598_v11, %v608_v16  ;;  %v905_v35 = vrot.slane %v903_v12, 4  ;;  %v906_v39 = vrot.slane %v7186_v4, 5  ;;  %5528 = vmatprep.subr.bf16.mxu1 %v6362_v34  ;;  %v6364_v4 = vld [vmem:[%s8781_s2 + $0x1f8] sm:$0xff]  }
  0x9c   : > { %2050 = vmatmul.mubr.bf16.gmra.mrb[16].mxu1 %v7177_v62  ;;  %1896 = vmatprep.mubr.bf16.mxu0 %v7188_v6  ;;  %8843 = vst [vmem:[#allocation18_spill] sm:$0xff] %v7283_v9  ;;  %v643_v21 = vshll.u32 %v7239_v37, 16  ;;  %v617_v42 = vrot.slane %v616_v57, 4  ;;  %v627_v43 = vrot.slane %v626_v20, 4  ;;  %v631_v47 = vrot.slane %v629_v17, 5  ;;  %v7341_v20 = vld [vmem:[%s8781_s2 + $0x200] sm:$0xff]  }
  0x9d   : > { %2057 = vmatprep.mubr.bf16.mxu1 %v7181_v63  ;;  %8844 = vst [vmem:[#allocation19_spill] sm:$0xff] %v7292_v3  ;;  %v649_v32 = vrot.slane %v647_v56, 4  ;;  %v658_v54 = vshrl.u32 %v7279_v23, 16  ;;  %v661_v55 = vshll.u32 %v7279_v23, 16  ;;  %v910_v60 = vrot.slane %v7198_v13, 5  ;;  %6124 = vmatprep.subr.bf16.mxu0 %v7341_v20 }
  0x9e   : > { %v7302_v50 = vrot.slane %v643_v21, 5  ;;  %v640_v61 = vor.u32 %v639_v31, %v636_v30  ;;  %5529 = vmatpush3.bf16.msra.mxu1 %v6363_v38  ;;  %v904_v1 = vsel %vm6915_vm4, %v4960_v24, %v903_v12  ;;  %v907_v2 = vsel %vm6915_vm4, %v905_v35, %v906_v39  ;;  %v7327_v11 = vld [vmem:[%s6885_s25 + $0x80] sm:$0x1]  ;;  %v6365_v12 = vld [vmem:[%s8781_s2 + $0x1b8] sm:$0xff]   ;;  %v7335_v17 = vld [vmem:[%s6885_s25 + $0x84] sm:$0xf] }
  0x9f   : > { %v671_v7 = vshrl.u32 %v7287_v33, 16  ;;  %v622_v13 = vsel %vm6929_vm5, %v617_v42, %v7263_v25  ;;  %v632_v8 = vsel %vm6929_vm5, %v627_v43, %v631_v47  ;;  %v4961_v58 = vrot.slane %v7192_v0, 9  ;;  %5530 = vmatprep.subr.bf16.mxu1 %v6364_v4  ;;  %v7348_v34 = vld [vmem:[%s6885_s25 + $0x88] sm:$0xf] }
  0xa0   : > { %v653_v10 = vshll.u32 %v7296_v40, 16  ;;  %v650_v15 = vor.u32 %v649_v32, %v7302_v50  ;;  %v660_v16 = vrot.slane %v658_v54, 4  ;;  %v663_v57 = vrot.slane %v661_v55, 5 }
  0xa1   : > { %v667_v25 = vshll.u32 %v7287_v33, 16  ;;  %v912_v56 = vrot.slane %v910_v60, 4  ;;  %v913_v0 = vrot.slane %v7236_v48, 5  ;;  %v641_v26 = vrot.slane %v640_v61, 4 }
  0xa2   : > { %5531 = vmatpush3.bf16.msra.mxu1 %v6365_v12  ;;  %v7343_v24 = vcombine.low %v904_v1, %v907_v2  ;;  %v673_v31 = vrot.slane %v671_v7, 4  ;;  %v7350_v35 = vcombine.low %v622_v13, %v632_v8  ;;  %v7354_v39 = vcombine.low %v7226_v41, %v7239_v37  ;;  %v7381_v7 = vld [vmem:[%s6885_s25 + $0x94] sm:$0xf] }
  0xa3   : > { %1897 = vmatmul.mubr.bf16.gmra.mrb[20].mxu0 %v7136_v22  ;;  %v7345_v30 = vrot.slane %v667_v25, 5  ;;  %v655_v48 = vrot.slane %v653_v10, 5  ;;  %v917_v21 = vrot.slane %v7239_v37, 5  ;;  %v651_v38 = vrot.slane %v650_v15, 4 }
  0xa4   : > { %2058 = vmatmul.mubr.bf16.gmra.mrb[20].mxu1 %v7229_v44  ;;  %1904 = vmatprep.mubr.bf16.mxu0 %v7244_v51  ;;  %8845 = vst [vmem:[#allocation20_spill] sm:$0xff] %v7343_v24  ;;  %8846 = vst [vmem:[#allocation21_spill] sm:$0xff] %v7350_v35  ;;  %v664_v42 = vor.u32 %v663_v57, %v660_v16  ;;  %v677_v43 = vshll.u32 %v7327_v11, 16  ;;  %v911_v47 = vsel %vm6915_vm4, %v4961_v58, %v910_v60 }
  0xa5   : > { %2065 = vmatprep.mubr.bf16.mxu1 %v7233_v45  ;;  %8847 = vst [vmem:[#allocation22_spill] sm:$0xff] %v7354_v39  ;;  %v682_v32 = vshrl.u32 %v7335_v17, 16  ;;  %v914_v37 = vsel %vm6915_vm4, %v912_v56, %v913_v0  ;;  %v4962_v54 = vrot.slane %v7226_v41, 9  ;;  %v674_v55 = vor.u32 %v673_v31, %v7345_v30  ;;  %v7378_v41 = vld [vmem:[%s6885_s25 + $0x90] sm:$0xf] }
  0xa6   : > { %v685_v4 = vshll.u32 %v7335_v17, 16  ;;  %v646_v60 = vsel %vm6929_vm5, %v641_v26, %v7302_v50  ;;  %v920_v61 = vrot.slane %v7296_v40, 5  ;;  %v695_v1 = vshrl.u32 %v7348_v34, 16  ;;  %v7387_v50 = vld [vmem:[%s6885_s25 + $0x8c] sm:$0x1] }
  0xa7   : > { %v691_v2 = vshll.u32 %v7348_v34, 16  ;;  %v656_v13 = vsel %vm6929_vm5, %v651_v38, %v655_v48  ;;  %v919_v8 = vrot.slane %v917_v21, 4  ;;  %v665_v58 = vrot.slane %v664_v42, 4  ;;  %v7402_v48 = vld [vmem:[%s6885_s25 + $0x9c] sm:$0xf] }
  0xa8   : > { %v679_v10 = vrot.slane %v677_v43, 5  ;;  %v924_v12 = vrot.slane %v7287_v33, 5  ;;  %v684_v40 = vrot.slane %v682_v32, 4  ;;  %v7389_v15 = vcombine.low %v911_v47, %v914_v37 }
  0xa9   : > { %v7393_v16 = vcombine.low %v7279_v23, %v7287_v33  ;;  %v675_v57 = vrot.slane %v674_v55, 4  ;;  %v687_v25 = vrot.slane %v685_v4, 5  ;;  %v7395_v56 = vcombine.low %v646_v60, %v656_v13 }
  0xaa   : > { %8848 = vst [vmem:[#allocation23_spill] sm:$0xff] %v7389_v15  ;;  %v918_v0 = vsel %vm6915_vm4, %v4962_v54, %v917_v21  ;;  %v7399_v26 = vrot.slane %v691_v2, 5  ;;  %v697_v31 = vrot.slane %v695_v1, 4  ;;  %v921_v38 = vsel %vm6915_vm4, %v919_v8, %v920_v61  ;;  %v7421_v61 = vld [vmem:[%s6885_s25 + $0xa0] sm:$0xf] }
  0xab   : > { %1905 = vmatmul.mubr.bf16.gmra.mrb[24].mxu0 %v7181_v63  ;;  %8849 = vst [vmem:[#allocation24_spill] sm:$0xff] %v7393_v16  ;;  %8850 = vst [vmem:[#allocation25_spill] sm:$0xff] %v7395_v56  ;;  %v706_v42 = vshrl.u32 %v7378_v41, 16  ;;  %v709_v33 = vshll.u32 %v7378_v41, 16  ;;  %v719_v43 = vshrl.u32 %v7381_v7, 16  ;;  %v670_v47 = vsel %vm6929_vm5, %v665_v58, %v7345_v30 }
  0xac   : > { %2066 = vmatmul.mubr.bf16.gmra.mrb[24].mxu1 %v7275_v18  ;;  %1912 = vmatprep.mubr.bf16.mxu0 %v7292_v3  ;;  %v4963_v21 = vrot.slane %v7279_v23, 9  ;;  %v927_v32 = vrot.slane %v7327_v11, 5  ;;  %v715_v37 = vshll.u32 %v7381_v7, 16  ;;  %v680_v54 = vsel %vm6929_vm5, %v675_v57, %v679_v10  ;;  %v7434_v2 = vld [vmem:[%s6885_s25 + $0x98] sm:$0x1] }
  0xad   : > { %2073 = vmatprep.mubr.bf16.mxu1 %v7283_v9  ;;  %v926_v55 = vrot.slane %v924_v12, 4  ;;  %v688_v4 = vor.u32 %v687_v25, %v684_v40  ;;  %v701_v60 = vshll.u32 %v7387_v50, 16  ;;  %v7425_v23 = vcombine.low %v918_v0, %v921_v38  ;;  %v7532_v3 = vld [vmem:[%s6885_s25 + $0xc0] sm:$0xf] }
  0xae   : > { %v7429_v11 = vcombine.low %v7335_v17, %v7348_v34  ;;  %v698_v30 = vor.u32 %v697_v31, %v7399_v26  ;;  %v931_v1 = vrot.slane %v7348_v34, 5  ;;  %v708_v13 = vrot.slane %v706_v42, 4  ;;  %v7445_v31 = vld [vmem:[%s6885_s25 + $0xa8] sm:$0xf] }
  0xaf   : > { %8851 = vst [vmem:[#allocation26_spill] sm:$0xff] %v7425_v23  ;;  %v711_v8 = vrot.slane %v709_v33, 5  ;;  %v721_v58 = vrot.slane %v719_v43, 4  ;;  %v730_v10 = vshrl.u32 %v7402_v48, 16  ;;  %v7437_v40 = vcombine.low %v670_v47, %v680_v54 }
  0xb0   : > { %v925_v57 = vsel %vm6915_vm4, %v4963_v21, %v924_v12  ;;  %v7441_v25 = vrot.slane %v715_v37, 5  ;;  %v733_v0 = vshll.u32 %v7402_v48, 16  ;;  %v928_v34 = vsel %vm6915_vm4, %v926_v55, %v927_v32  ;;  %v7454_v37 = vld [vmem:[%s6885_s25 + $0xac] sm:$0xf] }
  0xb1   : > { %8852 = vst [vmem:[#allocation27_spill] sm:$0xff] %v7437_v40  ;;  %v689_v38 = vrot.slane %v688_v4, 4  ;;  %v703_v42 = vrot.slane %v701_v60, 5  ;;  %v4964_v33 = vrot.slane %v7335_v17, 9  ;;  %v699_v43 = vrot.slane %v698_v30, 4 }
  0xb2   : > { %v934_v47 = vrot.slane %v7387_v50, 5  ;;  %v743_v12 = vshrl.u32 %v7421_v61, 16  ;;  %v739_v21 = vshll.u32 %v7421_v61, 16  ;;  %v933_v54 = vrot.slane %v931_v1, 4  ;;  %v7460_v4 = vld [vmem:[%s6885_s25 + $0xa4] sm:$0x1] }
  0xb3   : > { %1913 = vmatmul.mubr.bf16.gmra.mrb[28].mxu0 %v7233_v45  ;;  %v722_v55 = vor.u32 %v721_v58, %v7441_v25  ;;  %v732_v17 = vrot.slane %v730_v10, 4  ;;  %v735_v60 = vrot.slane %v733_v0, 5  ;;  %v7463_v30 = vld [vmem:[%s6885_s25 + $0xb4] sm:$0xf]  ;;  %v7467_v50 = vcombine.low %v925_v57, %v928_v34  ;;  %v7488_v45 = vld [vmem:[%s6885_s25 + $0xb0] sm:$0x1] }
  0xb4   : > { %2074 = vmatmul.mubr.bf16.gmra.mrb[28].mxu1 %v7343_v24  ;;  %1920 = vmatprep.mubr.bf16.mxu0 %v7350_v35  ;;  %v757_v58 = vshll.u32 %v7445_v31, 16  ;;  %v694_v10 = vsel %vm6929_vm5, %v689_v38, %v7399_v26  ;;  %v704_v57 = vsel %vm6929_vm5, %v699_v43, %v703_v42  ;;  %v7482_v0 = vrot.slane %v739_v21, 5  ;;  %v7499_v35 = vld [vmem:[%s6885_s25 + $0xb8] sm:$0xf] }
  0xb5   : > { %2081 = vmatprep.mubr.bf16.mxu1 %v7354_v39  ;;  %8853 = vst [vmem:[#allocation28_spill] sm:$0xff] %v7467_v50  ;;  %v745_v34 = vrot.slane %v743_v12, 4  ;;  %v736_v24 = vor.u32 %v735_v60, %v732_v17  ;;  %v763_v26 = vshll.u32 %v7454_v37, 16  ;;  %v749_v38 = vshll.u32 %v7460_v4, 16 }
  0xb6   : > { %v759_v43 = vrot.slane %v757_v58, 5  ;;  %v7493_v12 = vcombine.low %v694_v10, %v704_v57  ;;  %v781_v17 = vshll.u32 %v7463_v30, 16  ;;  %v932_v60 = vsel %vm6915_vm4, %v4964_v33, %v931_v1 }
  0xb7   : > { %v7506_v58 = vrot.slane %v763_v26, 5  ;;  %v751_v1 = vrot.slane %v749_v38, 5  ;;  %v791_v26 = vshrl.u32 %v7499_v35, 16  ;;  %v952_v38 = vrot.slane %v7454_v37, 5 }
  0xb8   : > { %8854 = vst [vmem:[#allocation29_spill] sm:$0xff] %v7493_v12  ;;  %v955_v18 = vrot.slane %v7488_v45, 5 }
  0xb9   : > { %v954_v51 = vrot.slane %v952_v38, 4 }
  0xbb   : > { %1921 = vmatmul.mubr.bf16.gmra.mrb[32].mxu0 %v7283_v9  ;;  %v767_v9 = vshrl.u32 %v7454_v37, 16 }
  0xbc   : > { %2082 = vmatmul.mubr.bf16.gmra.mrb[32].mxu1 %v7389_v15  ;;  %1928 = vmatprep.mubr.bf16.mxu0 %v7395_v56  ;;  %v712_v56 = vor.u32 %v711_v8, %v708_v13  ;;  %v725_v15 = vshll.u32 %v7434_v2, 16  ;;  %v7471_v13 = vcombine.low %v7378_v41, %v7381_v7  ;;  %v754_v8 = vshrl.u32 %v7445_v31, 16 }
  0xbd   : > { %2089 = vmatprep.mubr.bf16.mxu1 %v7393_v16  ;;  %v769_v10 = vrot.slane %v767_v9, 4 }
  0xbe   : > { %v713_v32 = vrot.slane %v712_v56, 4  ;;  %v756_v42 = vrot.slane %v754_v8, 4  ;;  %v778_v56 = vshrl.u32 %v7463_v30, 16  ;;  %v935_v8 = vsel %vm6915_vm4, %v933_v54, %v934_v47  ;;  %v7518_v54 = vld [vmem:[%s6885_s25 + $0xbc] sm:$0x1] }
  0xbf   : > { %v773_v47 = vshll.u32 %v7488_v45, 16  ;;  %v8856_v45 = vrot.slane %v7381_v7, 5 }
  0xc0   : > { %v718_v57 = vsel %vm6929_vm5, %v713_v32, %v7441_v25  ;;  %v760_v33 = vor.u32 %v759_v43, %v756_v42  ;;  %v780_v9 = vrot.slane %v778_v56, 4  ;;  %v783_v25 = vrot.slane %v781_v17, 5 }
  0xc1   : > { %v770_v32 = vor.u32 %v769_v10, %v7506_v58  ;;  %v787_v42 = vshll.u32 %v7499_v35, 16  ;;  %v797_v56 = vshll.u32 %v7518_v54, 16  ;;  %v7538_v17 = vcombine.low %v7402_v48, %v7421_v61 }
  0xc2   : > { %v4967_v10 = vrot.slane %v7445_v31, 9 }
  0xc3   : > { %1929 = vmatmul.mubr.bf16.gmra.mrb[36].mxu0 %v7354_v39  ;;  %v945_v39 = vrot.slane %v7421_v61, 5  ;;  %v771_v63 = vrot.slane %v770_v32, 4  ;;  %v789_v44 = vrot.slane %v787_v42, 5  ;;  %v8857_v61 = vrot.slane %v7378_v41, 9 }
  0xc4   : > { %2090 = vmatmul.mubr.bf16.gmra.mrb[36].mxu1 %v7425_v23  ;;  %1936 = vmatprep.mubr.bf16.mxu0 %v7437_v40  ;;  %v727_v23 = vrot.slane %v725_v15, 5  ;;  %v723_v40 = vrot.slane %v722_v55, 4  ;;  %v8855_v15 = vrot.slane %v7381_v7, 5  ;;  %v746_v55 = vor.u32 %v745_v34, %v7482_v0 }
  0xc5   : > { %2097 = vmatprep.mubr.bf16.mxu1 %v7429_v11  ;;  %v947_v43 = vrot.slane %v945_v39, 4  ;;  %v7569_v41 = vcombine.low %v7445_v31, %v7454_v37 }
  0xc6   : > { %v940_v21 = vrot.slane %v8855_v15, 4  ;;  %v728_v34 = vsel %vm6929_vm5, %v723_v40, %v727_v23  ;;  %v737_v15 = vrot.slane %v736_v24, 4  ;;  %v747_v23 = vrot.slane %v746_v55, 4 }
  0xc7   : > { %v4966_v24 = vrot.slane %v7402_v48, 9  ;;  %v948_v40 = vrot.slane %v7460_v4, 5  ;;  %v775_v55 = vrot.slane %v773_v47, 5  ;;  %v7534_v4 = vcombine.low %v718_v57, %v728_v34 }
  0xc8   : > { %v968_v48 = vshll.u32 %v7532_v3, 16  ;;  %v939_v34 = vsel %vm6915_vm4, %v8857_v61, %v8856_v45  ;;  %v8858_v47 = vrot.slane %v7434_v2, 5 }
  0xc9   : > { %v776_v37 = vsel %vm6929_vm5, %v771_v63, %v775_v55 }
  0xcb   : > { %1937 = vmatmul.mubr.bf16.gmra.mrb[40].mxu0 %v7393_v16  ;;  %v784_v16 = vor.u32 %v783_v25, %v780_v9  ;;  %v942_v9 = vsel %vm6915_vm4, %v940_v21, %v8858_v47  ;;  %v752_v25 = vsel %vm6929_vm5, %v747_v23, %v751_v1  ;;  %v959_v21 = vrot.slane %v7499_v35, 5 }
  0xcc   : > { %2098 = vmatmul.mubr.bf16.gmra.mrb[40].mxu1 %v7467_v50  ;;  %1944 = vmatprep.mubr.bf16.mxu0 %v7493_v12  ;;  %v7529_v12 = vcombine.low %v932_v60, %v935_v8  ;;  %v761_v50 = vrot.slane %v760_v33, 4  ;;  %v793_v60 = vrot.slane %v791_v26, 4  ;;  %v799_v8 = vrot.slane %v797_v56, 5  ;;  %v409_v26 = vld [vmem:[%s6885_s25 + $0xc4] sm:$0xf] }
  0xcd   : > { %2105 = vmatprep.mubr.bf16.mxu1 %v7471_v13  ;;  %v965_v33 = vshrl.u32 %v7532_v3, 16  ;;  %v785_v57 = vrot.slane %v784_v16, 4  ;;  %v742_v16 = vsel %vm6929_vm5, %v737_v15, %v7482_v0  ;;  %v7563_v32 = vcombine.low %v939_v34, %v942_v9 }
  0xce   : > { %v7565_v7 = vcombine.low %v742_v16, %v752_v25  ;;  %v978_v2 = vshrl.u32 %v409_v26, 16  ;;  %v946_v0 = vsel %vm6915_vm4, %v4966_v24, %v945_v39  ;;  %v949_v15 = vsel %vm6915_vm4, %v947_v43, %v948_v40 }
  0xcf   : > { %v766_v31 = vsel %vm6929_vm5, %v761_v50, %v7506_v58  ;;  %v794_v1 = vor.u32 %v793_v60, %v789_v44  ;;  %v7586_v23 = vcombine.low %v946_v0, %v949_v15  ;;  %v7592_v56 = vcombine.low %v7463_v30, %v7499_v35  ;;  %v410_v60 = vld [vmem:[%s6885_s25 + $0xc8] sm:$0x1] }
  0xd0   : > { %v7588_v42 = vcombine.low %v766_v31, %v776_v37  ;;  %v974_v24 = vshll.u32 %v409_v26, 16  ;;  %v953_v40 = vsel %vm6915_vm4, %v4967_v10, %v952_v38  ;;  %v956_v50 = vsel %vm6915_vm4, %v954_v51, %v955_v18 }
  0xd1   : > { %v795_v39 = vrot.slane %v794_v1, 4  ;;  %v967_v63 = vrot.slane %v965_v33, 4  ;;  %v970_v58 = vrot.slane %v968_v48, 5  ;;  %v980_v55 = vrot.slane %v978_v2, 4 }
  0xd2   : > { %v976_v43 = vrot.slane %v974_v24, 5  ;;  %v790_v35 = vsel %vm6929_vm5, %v785_v57, %v789_v44  ;;  %v984_v10 = vshll.u32 %v410_v60, 16  ;;  %v7607_v45 = vcombine.low %v953_v40, %v956_v50  ;;  %v8862_v24 = vld [vmem:[#allocation17_spill] sm:$0xff]  ;;  %v8863_v40 = vld [vmem:[#allocation19_spill] sm:$0xff] }
  0xd3   : > { %1945 = vmatmul.mubr.bf16.gmra.mrb[44].mxu0 %v7429_v11  ;;  %v800_v38 = vsel %vm6929_vm5, %v795_v39, %v799_v8  ;;  %v971_v51 = vor.u32 %v970_v58, %v967_v63  ;;  %v7610_v33 = vcombine.low %v7532_v3, %v409_v26  ;;  %v4968_v9 = vrot.slane %v7463_v30, 9  ;;  %v8866_v50 = vld [vmem:[#allocation21_spill] sm:$0xff]  ;;  %v8867_v63 = vld [vmem:[#allocation18_spill] sm:$0xff]  ;;  %v8868_v58 = vld [vmem:[#allocation23_spill] sm:$0xff] }
  0xd4   : > { %2106 = vmatmul.mubr.bf16.gmra.mrb[44].mxu1 %v7529_v12  ;;  %1952 = vmatprep.mubr.bf16.mxu0 %v7534_v4  ;;  %v981_v18 = vor.u32 %v980_v55, %v976_v43  ;;  %v986_v34 = vrot.slane %v984_v10, 5  ;;  %v7612_v47 = vcombine.low %v790_v35, %v800_v38  ;;  %v961_v44 = vrot.slane %v959_v21, 4  ;;  %v8871_v55 = vld [vmem:[#allocation26_spill] sm:$0xff]  ;;  %v8872_v35 = vld [vmem:[#allocation27_spill] sm:$0xff]  ;;  %v8874_v38 = vld [vmem:[#allocation28_spill] sm:$0xff] }
  0xd5   : > { %2113 = vmatprep.mubr.bf16.mxu1 %v7538_v17  ;;  %v972_v48 = vrot.slane %v971_v51, 4  ;;  %v962_v57 = vrot.slane %v7518_v54, 5  ;;  %v993_v2 = vrot.slane %v409_v26, 5  ;;  %v960_v30 = vsel %vm6915_vm4, %v4968_v9, %v959_v21  ;;  %v6368_v21 = vld [vmem:[%s8781_s2 + $0x210] sm:$0xff]  }
  0xd6   : > { %v982_v61 = vrot.slane %v981_v18, 4  ;;  %v4969_v0 = vrot.slane %v7532_v3, 9  ;;  %v996_v31 = vrot.slane %v410_v60, 5  ;;  %v6367_v3 = vld [vmem:[%s8781_s2 + $0x208] sm:$0xff]   ;;  %v8875_v51 = vld [vmem:[#allocation29_spill] sm:$0xff] }
  0xd7   : > { %v977_v8 = vsel %vm6929_vm5, %v972_v48, %v976_v43  ;;  %v963_v54 = vsel %vm6915_vm4, %v961_v44, %v962_v57  ;;  %v995_v15 = vrot.slane %v993_v2, 4  ;;  %v8870_v43 = vld [vmem:[#allocation22_spill] sm:$0xff]  ;;  %v8873_v60 = vld [vmem:[#allocation24_spill] sm:$0xff] }
  0xd8   : > { %v987_v16 = vsel %vm6929_vm5, %v982_v61, %v986_v34  ;;  %v7631_v37 = vcombine.low %v960_v30, %v963_v54  ;;  %v994_v1 = vsel %vm6915_vm4, %v4969_v0, %v993_v2  ;;  %v7710_v30 = vld [vmem:[%s6885_s25 + $0xcc] sm:$0xf] }
  0xd9   : > { %v7620_v25 = vcombine.low %v977_v8, %v987_v16  ;;  %v997_v26 = vsel %vm6915_vm4, %v995_v15, %v996_v31  ;;  %v999_v15 = vshrl.u32 %v7710_v30, 16  ;;  %v1002_v31 = vshll.u32 %v7710_v30, 16 }
  0xda   : > { %v7637_v39 = vcombine.low %v994_v1, %v997_v26 }
  0xdb   : > { %1953 = vmatmul.mubr.bf16.gmra.mrb[48].mxu0 %v7471_v13 }
  0xdc   : > { %2114 = vmatmul.mubr.bf16.gmra.mrb[48].mxu1 %v7563_v32  ;;  %1960 = vmatprep.mubr.bf16.mxu0 %v7565_v7 }
  0xdd   : > { %2121 = vmatprep.mubr.bf16.mxu1 %v7569_v41 }
  0xe3   : > { %1961 = vmatmul.mubr.bf16.gmra.mrb[52].mxu0 %v7538_v17 }
  0xe4   : > { %2122 = vmatmul.mubr.bf16.gmra.mrb[52].mxu1 %v7586_v23  ;;  %1968 = vmatprep.mubr.bf16.mxu0 %v7588_v42 }
  0xe5   : > { %2129 = vmatprep.mubr.bf16.mxu1 %v7592_v56 }
  0xeb   : > { %1969 = vmatmul.mubr.bf16.gmra.mrb[56].mxu0 %v7569_v41 }
  0xec   : > { %2130 = vmatmul.mubr.bf16.gmra.mrb[56].mxu1 %v7607_v45  ;;  %1976 = vmatprep.mubr.bf16.mxu0 %v7612_v47 }
  0xed   : > { %2137 = vmatprep.mubr.bf16.mxu1 %v7610_v33 }
  0xf3   : > { %1977 = vmatmul.mubr.bf16.gmra.mrb[60].mxu0 %v7592_v56 }
  0xf4   : > { %2138 = vmatmul.mubr.bf16.gmra.mrb[60].mxu1 %v7631_v37  ;;  %2178 = vmatprep.mubr.bf16.mxu0 %v7010_v52  ;;  %v6369_v52 = vld [vmem:[%s8781_s2 + $0x218] sm:$0xff]  }
  0xf5   : > { %2339 = vmatprep.mubr.bf16.mxu1 %v7035_v14 }
  0xfb   : > { %2179 = vmatmul.mubr.bf16.vlgmr.msra.gmra.mrb[64].mxu0 %v6982_v36  ;;  %v6371_v36 = vld [vmem:[%s8781_s2 + $0x228] sm:$0xff]  }
  0xfc   : > { %2340 = vmatmul.mubr.bf16.vlgmr.msra.gmra.mrb[64].mxu1 %v6975_v28  ;;  %6125 = vmatpush3.bf16.msra.mxu0 %v7341_v20  ;;  %v6370_v28 = vld [vmem:[%s8781_s2 + $0x220] sm:$0xff]   ;;  %v8861_v20 = vld [vmem:[#allocation13_spill] sm:$0xff] }
  0xfd   : > { %2186 = vmatprep.mubr.bf16.mxu0 %v7047_v19  ;;  %2347 = vmatprep.mubr.bf16.mxu1 %v7082_v46 }
  0xfe   : > { %6126 = vmatprep.subr.bf16.mxu0 %v6367_v3 }
 0x100   : > { %6127 = vmatpush3.bf16.msra.mxu0 %v6367_v3 }
 0x101   : > { %6128 = vmatprep.subr.bf16.mxu0 %v6368_v21 }
 0x103   : > { %2187 = vmatmul.mubr.bf16.gmra.mrb[68].mxu0 %v7035_v14  ;;  %v6373_v14 = vld [vmem:[%s8781_s2 + $0x238] sm:$0xff]  }
 0x104   : > { %2348 = vmatmul.mubr.bf16.gmra.mrb[68].mxu1 %v7002_v49  ;;  %2194 = vmatprep.mubr.bf16.mxu0 %v7112_v5  ;;  %v6372_v49 = vld [vmem:[%s8781_s2 + $0x230] sm:$0xff]  }
 0x105   : > { %2355 = vmatprep.mubr.bf16.mxu1 %v7139_v29  ;;  %6129 = vmatpush3.bf16.msra.mxu0 %v6368_v21 }
 0x106   : > { %6130 = vmatprep.subr.bf16.mxu0 %v6369_v52 }
 0x109   : > { %6131 = vmatpush3.bf16.msra.mxu0 %v6369_v52 }
 0x10a   : > { %6132 = vmatprep.subr.bf16.mxu0 %v6370_v28 }
 0x10b   : > { %2195 = vmatmul.mubr.bf16.gmra.mrb[72].mxu0 %v7082_v46  ;;  %v8860_v46 = vld [vmem:[#allocation16_spill] sm:$0xff] }
 0x10c   : > { %2356 = vmatmul.mubr.bf16.gmra.mrb[72].mxu1 %v7059_v27  ;;  %2202 = vmatprep.mubr.bf16.mxu0 %v7177_v62  ;;  %v8859_v27 = vld [vmem:[#allocation14_spill] sm:$0xff] }
 0x10d   : > { %2363 = vmatprep.mubr.bf16.mxu1 %v7188_v6  ;;  %6133 = vmatpush3.bf16.msra.mxu0 %v6370_v28 }
 0x10e   : > { %6134 = vmatprep.subr.bf16.mxu0 %v6371_v36 }
 0x111   : > { %6135 = vmatpush3.bf16.msra.mxu0 %v6371_v36 }
 0x112   : > { %6136 = vmatprep.subr.bf16.mxu0 %v6372_v49 }
 0x113   : > { %2203 = vmatmul.mubr.bf16.gmra.mrb[76].mxu0 %v7139_v29  ;;  %v8864_v29 = vld [vmem:[#allocation15_spill] sm:$0xff] }
 0x114   : > { %2364 = vmatmul.mubr.bf16.gmra.mrb[76].mxu1 %v7136_v22  ;;  %2210 = vmatprep.mubr.bf16.mxu0 %v8859_v27  ;;  %v8865_v22 = vld [vmem:[#allocation20_spill] sm:$0xff] }
 0x115   : > { %2371 = vmatprep.mubr.bf16.mxu1 %v8860_v46  ;;  %6137 = vmatpush3.bf16.msra.mxu0 %v6372_v49 }
 0x116   : > { %6138 = vmatprep.subr.bf16.mxu0 %v6373_v14 }
 0x119   : > { %6139 = vmatpush3.bf16.msra.mxu0 %v6373_v14 }
 0x11b   : > { %2211 = vmatmul.mubr.bf16.gmra.mrb[80].mxu0 %v7188_v6  ;;  %v8869_v6 = vld [vmem:[#allocation25_spill] sm:$0xff] }
 0x11c   : > { %2372 = vmatmul.mubr.bf16.gmra.mrb[80].mxu1 %v8861_v20  ;;  %2218 = vmatprep.mubr.bf16.mxu0 %v8862_v24  ;;  %v1001_v20 = vrot.slane %v999_v15, 4 }
 0x11d   : > { %2379 = vmatprep.mubr.bf16.mxu1 %v8863_v40 }
 0x123   : > { %2219 = vmatmul.mubr.bf16.gmra.mrb[84].mxu0 %v8860_v46 }
 0x124   : > { %2380 = vmatmul.mubr.bf16.gmra.mrb[84].mxu1 %v8864_v29  ;;  %2226 = vmatprep.mubr.bf16.mxu0 %v8865_v22 }
 0x125   : > { %2387 = vmatprep.mubr.bf16.mxu1 %v8866_v50 }
 0x12b   : > { %2227 = vmatmul.mubr.bf16.gmra.mrb[88].mxu0 %v8863_v40  ;;  %v1004_v40 = vrot.slane %v1002_v31, 5 }
 0x12c   : > { %2388 = vmatmul.mubr.bf16.gmra.mrb[88].mxu1 %v8867_v63  ;;  %2234 = vmatprep.mubr.bf16.mxu0 %v8868_v58 }
 0x12d   : > { %2395 = vmatprep.mubr.bf16.mxu1 %v8869_v6 }
 0x133   : > { %2235 = vmatmul.mubr.bf16.gmra.mrb[92].mxu0 %v8866_v50 }
 0x134   : > { %2396 = vmatmul.mubr.bf16.gmra.mrb[92].mxu1 %v8870_v43  ;;  %2242 = vmatprep.mubr.bf16.mxu0 %v8871_v55  ;;  %v7728_v43 = vld [vmem:[%s6885_s25 + $0xd4] sm:$0x1] }
 0x135   : > { %2403 = vmatprep.mubr.bf16.mxu1 %v8872_v35 }
 0x13b   : > { %2243 = vmatmul.mubr.bf16.gmra.mrb[96].mxu0 %v8869_v6 }
 0x13c   : > { %2404 = vmatmul.mubr.bf16.gmra.mrb[96].mxu1 %v8873_v60  ;;  %2250 = vmatprep.mubr.bf16.mxu0 %v8874_v38 }
 0x13d   : > { %2411 = vmatprep.mubr.bf16.mxu1 %v8875_v51 }
 0x143   : > { %2251 = vmatmul.mubr.bf16.gmra.mrb[100].mxu0 %v8872_v35 }
 0x144   : > { %2412 = vmatmul.mubr.bf16.gmra.mrb[100].mxu1 %v7429_v11  ;;  %2258 = vmatprep.mubr.bf16.mxu0 %v7529_v12 }
 0x145   : > { %2419 = vmatprep.mubr.bf16.mxu1 %v7534_v4 }
 0x14b   : > { %2259 = vmatmul.mubr.bf16.gmra.mrb[104].mxu0 %v8875_v51  ;;  %v1005_v51 = vor.u32 %v1004_v40, %v1001_v20 }
 0x14c   : > { %2420 = vmatmul.mubr.bf16.gmra.mrb[104].mxu1 %v7471_v13  ;;  %2266 = vmatprep.mubr.bf16.mxu0 %v7563_v32  ;;  %v7713_v13 = vld [vmem:[%s6885_s25 + $0xd0] sm:$0xf] }
 0x14d   : > { %2427 = vmatprep.mubr.bf16.mxu1 %v7565_v7  ;;  %v1008_v1 = vshll.u32 %v7713_v13, 16  ;;  %v1012_v26 = vshrl.u32 %v7713_v13, 16 }
 0x14e   : > { %v5196_v18 = vpop.f32.mrb[0].mxu0 }
 0x14f   : > { %v5308_v10 = vpop.f32.mrb[0].mxu1  ;;  %v5197_v48 = vpop.f32.mrb[1].mxu0  ;;  %v1010_v29 = vrot.slane %v1008_v1, 5  ;;  %v1014_v50 = vrot.slane %v1012_v26, 4 }
 0x150   : > { %v5309_v61 = vpop.f32.mrb[1].mxu1  ;;  %v5198_v34 = vadd.f32 %v5197_v48, %v5196_v18  ;;  %v5199_v9 = vpop.f32.mrb[2].mxu0 }
 0x151   : > { %v5310_v11 = vadd.f32 %v5309_v61, %v5308_v10  ;;  %v5311_v44 = vpop.f32.mrb[2].mxu1  ;;  %v5200_v57 = vpop.f32.mrb[3].mxu0  ;;  %v1015_v18 = vor.u32 %v1014_v50, %v1010_v29  ;;  %v1018_v10 = vshll.u32 %v7728_v43, 16 }
 0x152   : > { %v5312_v8 = vpop.f32.mrb[3].mxu1  ;;  %v5201_v16 = vadd.f32 %v5200_v57, %v5199_v9 }
 0x153   : > { %v5313_v2 = vadd.f32 %v5312_v8, %v5311_v44  ;;  %v7715_v54 = vadd.f32 %v5310_v11, %v5198_v34  ;;  %2267 = vmatmul.mubr.bf16.gmra.mrb[108].mxu0 %v7534_v4  ;;  %v1020_v15 = vrot.slane %v1018_v10, 5 }
 0x154   : > { %2428 = vmatmul.mubr.bf16.gmra.mrb[108].mxu1 %v7538_v17  ;;  %2274 = vmatprep.mubr.bf16.mxu0 %v7586_v23 }
 0x155   : > { %2435 = vmatprep.mubr.bf16.mxu1 %v7588_v42  ;;  %v7721_v0 = vadd.f32 %v5313_v2, %v5201_v16  ;;  %v1006_v16 = vrot.slane %v1005_v51, 4  ;;  %v1016_v2 = vrot.slane %v1015_v18, 4 }
 0x156   : > { %v5202_v3 = vpop.f32.mrb[4].mxu0 }
 0x157   : > { %v5314_v21 = vpop.f32.mrb[4].mxu1  ;;  %v5203_v4 = vpop.f32.mrb[5].mxu0 }
 0x158   : > { %v5315_v52 = vpop.f32.mrb[5].mxu1  ;;  %v5204_v17 = vadd.f32 %v5203_v4, %v5202_v3  ;;  %v5205_v36 = vpop.f32.mrb[6].mxu0  ;;  %v6376_v4 = vld [vmem:[#allocation6] sm:$0xff]  }
 0x159   : > { %v5316_v28 = vadd.f32 %v5315_v52, %v5314_v21  ;;  %v5317_v49 = vpop.f32.mrb[6].mxu1  ;;  %v5206_v14 = vpop.f32.mrb[7].mxu0  ;;  %v6375_v21 = vld [vmem:[#allocation6 + $0x40] sm:$0xff]   ;;  %v1011_v52 = vsel %vm6929_vm5, %v1006_v16, %v1010_v29 }
 0x15a   : > { %v5318_v46 = vpop.f32.mrb[7].mxu1  ;;  %v5207_v63 = vadd.f32 %v5206_v14, %v5205_v36  ;;  %5652 = vmatprep.subr.bf16.mxu1 %v6375_v21 }
 0x15b   : > { %v5319_v6 = vadd.f32 %v5318_v46, %v5317_v49  ;;  %v7730_v35 = vadd.f32 %v5316_v28, %v5204_v17  ;;  %2275 = vmatmul.mubr.bf16.gmra.mrb[112].mxu0 %v7565_v7  ;;  %v1021_v17 = vsel %vm6929_vm5, %v1016_v2, %v1020_v15  ;;  %5653 = vmatpush3.bf16.msra.mxu1 %v6376_v4  ;;  %v6377_v2 = vld [vmem:[#allocation6 + $0x48] sm:$0xff]  }
 0x15c   : > { %2436 = vmatmul.mubr.bf16.gmra.mrb[112].mxu1 %v7569_v41  ;;  %2282 = vmatprep.mubr.bf16.mxu0 %v7607_v45  ;;  %v5023_v40 = vcombine.low %v1011_v52, %v1021_v17  ;;  %v6378_v15 = vld [vmem:[#allocation6 + $0x8] sm:$0xff]  }
 0x15d   : > { %2443 = vmatprep.mubr.bf16.mxu1 %v7612_v47  ;;  %v7736_v60 = vadd.f32 %v5319_v6, %v5207_v63  ;;  %5654 = vmatprep.subr.bf16.mxu1 %v6377_v2 }
 0x15e   : > { %v5208_v48 = vpop.f32.mrb[8].mxu0 }
 0x15f   : > { %v5320_v61 = vpop.f32.mrb[8].mxu1  ;;  %v5209_v34 = vpop.f32.mrb[9].mxu0  ;;  %5655 = vmatpush3.bf16.msra.mxu1 %v6378_v15 }
 0x160   : > { %v5321_v11 = vpop.f32.mrb[9].mxu1  ;;  %v5210_v9 = vadd.f32 %v5209_v34, %v5208_v48  ;;  %v5211_v57 = vpop.f32.mrb[10].mxu0  ;;  %v5022_v34 = vcombine.low %v7710_v30, %v7713_v13 }
 0x161   : > { %v5322_v44 = vadd.f32 %v5321_v11, %v5320_v61  ;;  %v5323_v7 = vpop.f32.mrb[10].mxu1  ;;  %v5212_v8 = vpop.f32.mrb[11].mxu0 }
 0x162   : > { %v5324_v41 = vpop.f32.mrb[11].mxu1  ;;  %v5213_v31 = vadd.f32 %v5212_v8, %v5211_v57 }
 0x163   : > { %v5325_v1 = vadd.f32 %v5324_v41, %v5323_v7  ;;  %v7739_v26 = vadd.f32 %v5322_v44, %v5210_v9  ;;  %2283 = vmatmul.mubr.bf16.gmra.mrb[116].mxu0 %v7588_v42 }
 0x164   : > { %2444 = vmatmul.mubr.bf16.gmra.mrb[116].mxu1 %v7592_v56  ;;  %2290 = vmatprep.mubr.bf16.mxu0 %v7631_v37 }
 0x165   : > { %2451 = vmatprep.mubr.bf16.mxu1 %v7620_v25  ;;  %v7745_v3 = vadd.f32 %v5325_v1, %v5213_v31 }
 0x166   : > { %v5214_v28 = vpop.f32.mrb[12].mxu0 }
 0x167   : > { %v5326_v36 = vpop.f32.mrb[12].mxu1  ;;  %v5215_v42 = vpop.f32.mrb[13].mxu0 }
 0x168   : > { %v5327_v49 = vpop.f32.mrb[13].mxu1  ;;  %v5216_v56 = vadd.f32 %v5215_v42, %v5214_v28  ;;  %v5217_v46 = vpop.f32.mrb[14].mxu0 }
 0x169   : > { %v5328_v14 = vadd.f32 %v5327_v49, %v5326_v36  ;;  %v5329_v20 = vpop.f32.mrb[14].mxu1  ;;  %v5218_v50 = vpop.f32.mrb[15].mxu0 }
 0x16a   : > { %v5330_v63 = vpop.f32.mrb[15].mxu1  ;;  %v5219_v6 = vadd.f32 %v5218_v50, %v5217_v46 }
 0x16b   : > { %v5331_v51 = vadd.f32 %v5330_v63, %v5329_v20  ;;  %v7751_v18 = vadd.f32 %v5328_v14, %v5216_v56  ;;  %2291 = vmatmul.mubr.bf16.gmra.mrb[120].mxu0 %v7612_v47 }
 0x16c   : > { %2452 = vmatmul.mubr.bf16.gmra.mrb[120].mxu1 %v7610_v33  ;;  %2298 = vmatprep.mubr.bf16.mxu0 %v7637_v39 }
 0x16d   : > { %2459 = vmatprep.mubr.bf16.mxu1 %v5023_v40  ;;  %v7756_v59 = vadd.f32 %v5331_v51, %v5219_v6 }
 0x16e   : > { %v5220_v29 = vpop.f32.mrb[16].mxu0 }
 0x16f   : > { %v5332_v10 = vpop.f32.mrb[16].mxu1  ;;  %v5221_v48 = vpop.f32.mrb[17].mxu0 }
 0x170   : > { %v5333_v61 = vpop.f32.mrb[17].mxu1  ;;  %v5222_v11 = vadd.f32 %v5221_v48, %v5220_v29  ;;  %v5223_v44 = vpop.f32.mrb[18].mxu0 }
 0x171   : > { %v5334_v9 = vadd.f32 %v5333_v61, %v5332_v10  ;;  %v5335_v57 = vpop.f32.mrb[18].mxu1  ;;  %v5224_v7 = vpop.f32.mrb[19].mxu0 }
 0x172   : > { %v5336_v47 = vpop.f32.mrb[19].mxu1  ;;  %v5225_v8 = vadd.f32 %v5224_v7, %v5223_v44 }
 0x173   : > { %v5337_v33 = vadd.f32 %v5336_v47, %v5335_v57  ;;  %v7760_v41 = vadd.f32 %v5334_v9, %v5222_v11  ;;  %2299 = vmatmul.mubr.bf16.gmra.mrb[124].mxu0 %v7620_v25  ;;  %v6380_v9 = vld [vmem:[#allocation6 + $0x10] sm:$0xff]  }
 0x174   : > { %2460 = vmatmul.mubr.bf16.gmra.mrb[124].mxu1 %v5022_v34  ;;  %6140 = vmatprep.mubr.bf16.mxu0 %v7047_v19 }
 0x175   : > { %v7764_v16 = vadd.f32 %v5337_v33, %v5225_v8 }
 0x176   : > { %v5226_v31 = vpop.f32.mrb[20].mxu0 }
 0x177   : > { %v5338_v1 = vpop.f32.mrb[20].mxu1  ;;  %v5227_v21 = vpop.f32.mrb[21].mxu0 }
 0x178   : > { %v5339_v4 = vpop.f32.mrb[21].mxu1  ;;  %v5228_v52 = vadd.f32 %v5227_v21, %v5226_v31  ;;  %v5229_v28 = vpop.f32.mrb[22].mxu0 }
 0x179   : > { %v5340_v17 = vadd.f32 %v5339_v4, %v5338_v1  ;;  %v5341_v36 = vpop.f32.mrb[22].mxu1  ;;  %v5230_v42 = vpop.f32.mrb[23].mxu0 }
 0x17a   : > { %v5342_v49 = vpop.f32.mrb[23].mxu1  ;;  %v5231_v25 = vadd.f32 %v5230_v42, %v5229_v28 }
 0x17b   : > { %v5343_v56 = vadd.f32 %v5342_v49, %v5341_v36  ;;  %v7766_v14 = vadd.f32 %v5340_v17, %v5228_v52  ;;  %6141 = vmatmul.mubr.bf16.vlgmr.msra.gmra.mrb[128].mxu0 %v7112_v5 }
 0x17c   : > { %6144 = vmatprep.mubr.bf16.mxu0 %v7177_v62  ;;  %v6379_v62 = vld [vmem:[#allocation6 + $0x50] sm:$0xff]  }
 0x17d   : > { %v7770_v19 = vadd.f32 %v5343_v56, %v5231_v25  ;;  %5656 = vmatprep.subr.bf16.mxu1 %v6379_v62 }
 0x17e   : > { %v5232_v46 = vpop.f32.mrb[24].mxu0  ;;  %5657 = vmatpush3.bf16.msra.mxu1 %v6380_v9 }
 0x17f   : > { %v5344_v20 = vpop.f32.mrb[24].mxu1  ;;  %v5233_v40 = vpop.f32.mrb[25].mxu0 }
 0x180   : > { %v5345_v50 = vpop.f32.mrb[25].mxu1  ;;  %v5234_v63 = vadd.f32 %v5233_v40, %v5232_v46  ;;  %v5235_v51 = vpop.f32.mrb[26].mxu0 }
 0x181   : > { %v5346_v6 = vadd.f32 %v5345_v50, %v5344_v20  ;;  %v5347_v29 = vpop.f32.mrb[26].mxu1  ;;  %v5236_v10 = vpop.f32.mrb[27].mxu0 }
 0x182   : > { %v5348_v48 = vpop.f32.mrb[27].mxu1  ;;  %v5237_v61 = vadd.f32 %v5236_v10, %v5235_v51 }
 0x183   : > { %v5349_v34 = vadd.f32 %v5348_v48, %v5347_v29  ;;  %v7772_v11 = vadd.f32 %v5346_v6, %v5234_v63  ;;  %6145 = vmatmul.mubr.bf16.gmra.mrb[132].mxu0 %v8859_v27  ;;  %v6382_v6 = vld [vmem:[#allocation6 + $0x18] sm:$0xff]  }
 0x184   : > { %6148 = vmatprep.mubr.bf16.mxu0 %v8862_v24 }
 0x185   : > { %v7776_v5 = vadd.f32 %v5349_v34, %v5237_v61 }
 0x186   : > { %v5238_v44 = vpop.f32.mrb[28].mxu0 }
 0x187   : > { %v5350_v57 = vpop.f32.mrb[28].mxu1  ;;  %v5239_v7 = vpop.f32.mrb[29].mxu0 }
 0x188   : > { %v5351_v47 = vpop.f32.mrb[29].mxu1  ;;  %v5240_v8 = vadd.f32 %v5239_v7, %v5238_v44  ;;  %v5241_v2 = vpop.f32.mrb[30].mxu0 }
 0x189   : > { %v5352_v33 = vadd.f32 %v5351_v47, %v5350_v57  ;;  %v5353_v15 = vpop.f32.mrb[30].mxu1  ;;  %v5242_v31 = vpop.f32.mrb[31].mxu0 }
 0x18a   : > { %v5354_v1 = vpop.f32.mrb[31].mxu1  ;;  %v5243_v21 = vadd.f32 %v5242_v31, %v5241_v2 }
 0x18b   : > { %v5355_v27 = vadd.f32 %v5354_v1, %v5353_v15  ;;  %v7778_v4 = vadd.f32 %v5352_v33, %v5240_v8  ;;  %6149 = vmatmul.mubr.bf16.gmra.mrb[136].mxu0 %v8865_v22 }
 0x18c   : > { %6152 = vmatprep.mubr.bf16.mxu0 %v8868_v58  ;;  %v6381_v58 = vld [vmem:[#allocation6 + $0x58] sm:$0xff]  }
 0x18d   : > { %v7782_v24 = vadd.f32 %v5355_v27, %v5243_v21  ;;  %5658 = vmatprep.subr.bf16.mxu1 %v6381_v58 }
 0x18e   : > { %v5244_v52 = vpop.f32.mrb[32].mxu0  ;;  %5659 = vmatpush3.bf16.msra.mxu1 %v6382_v6 }
 0x18f   : > { %v5356_v17 = vpop.f32.mrb[32].mxu1  ;;  %v5245_v28 = vpop.f32.mrb[33].mxu0 }
 0x190   : > { %v5357_v36 = vpop.f32.mrb[33].mxu1  ;;  %v5246_v42 = vadd.f32 %v5245_v28, %v5244_v52  ;;  %v5247_v25 = vpop.f32.mrb[34].mxu0 }
 0x191   : > { %v5358_v49 = vadd.f32 %v5357_v36, %v5356_v17  ;;  %v5359_v56 = vpop.f32.mrb[34].mxu1  ;;  %v5248_v46 = vpop.f32.mrb[35].mxu0 }
 0x192   : > { %v5360_v20 = vpop.f32.mrb[35].mxu1  ;;  %v5249_v50 = vadd.f32 %v5248_v46, %v5247_v25  ;;  %v6384_v25 = vld [vmem:[#allocation6 + $0x20] sm:$0xff]  }
 0x193   : > { %v7784_v40 = vadd.f32 %v5358_v49, %v5246_v42  ;;  %v5361_v63 = vadd.f32 %v5360_v20, %v5359_v56  ;;  %6153 = vmatmul.mubr.bf16.gmra.mrb[140].mxu0 %v8871_v55  ;;  %v6383_v49 = vld [vmem:[#allocation6 + $0x60] sm:$0xff]  }
 0x194   : > { %6156 = vmatprep.mubr.bf16.mxu0 %v8874_v38  ;;  %5660 = vmatprep.subr.bf16.mxu1 %v6383_v49 }
 0x195   : > { %v7787_v22 = vadd.f32 %v5361_v63, %v5249_v50  ;;  %v4970_v63 = vrot.slane %v7710_v30, 9  ;;  %5661 = vmatpush3.bf16.msra.mxu1 %v6384_v25 }
 0x196   : > { %v5250_v51 = vpop.f32.mrb[36].mxu0  ;;  %5662 = vmatprep.subr.bf16.mxu1 %v6385_v53  ;;  %v6391_v53 = vld [vmem:[#allocation6 + $0xc8] sm:$0xff]  }
 0x197   : > { %v5362_v29 = vpop.f32.mrb[36].mxu1  ;;  %v5251_v10 = vpop.f32.mrb[37].mxu0 }
 0x198   : > { %v5363_v48 = vpop.f32.mrb[37].mxu1  ;;  %v5252_v61 = vadd.f32 %v5251_v10, %v5250_v51  ;;  %v5253_v62 = vpop.f32.mrb[38].mxu0  ;;  %v1030_v10 = vrot.slane %v7728_v43, 5 }
 0x199   : > { %v5364_v34 = vadd.f32 %v5363_v48, %v5362_v29  ;;  %v5365_v9 = vpop.f32.mrb[38].mxu1  ;;  %v5254_v44 = vpop.f32.mrb[39].mxu0 }
 0x19a   : > { %v5366_v57 = vpop.f32.mrb[39].mxu1  ;;  %v5255_v55 = vadd.f32 %v5254_v44, %v5253_v62 }
 0x19b   : > { %v7790_v7 = vadd.f32 %v5364_v34, %v5252_v61  ;;  %v5367_v47 = vadd.f32 %v5366_v57, %v5365_v9  ;;  %6157 = vmatmul.mubr.bf16.gmra.mrb[144].mxu0 %v7529_v12 }
 0x19c   : > { %6160 = vmatprep.mubr.bf16.mxu0 %v7563_v32  ;;  %v1027_v32 = vrot.slane %v7713_v13, 5 }
 0x19d   : > { %v7793_v38 = vadd.f32 %v5367_v47, %v5255_v55 }
 0x19e   : > { %v5256_v8 = vpop.f32.mrb[40].mxu0  ;;  %v1029_v29 = vrot.slane %v1027_v32, 4  ;;  %v1028_v30 = vsel %vm6915_vm4, %v4970_v63, %v1027_v32 }
 0x19f   : > { %v5368_v33 = vpop.f32.mrb[40].mxu1  ;;  %v5257_v2 = vpop.f32.mrb[41].mxu0 }
 0x1a0   : > { %v5369_v15 = vpop.f32.mrb[41].mxu1  ;;  %v5258_v31 = vadd.f32 %v5257_v2, %v5256_v8  ;;  %v5259_v21 = vpop.f32.mrb[42].mxu0  ;;  %v1031_v9 = vsel %vm6915_vm4, %v1029_v29, %v1030_v10 }
 0x1a1   : > { %v5370_v1 = vadd.f32 %v5369_v15, %v5368_v33  ;;  %v5371_v27 = vpop.f32.mrb[42].mxu1  ;;  %v5260_v52 = vpop.f32.mrb[43].mxu0  ;;  %v5024_v47 = vcombine.low %v1028_v30, %v1031_v9 }
 0x1a2   : > { %v5372_v17 = vpop.f32.mrb[43].mxu1  ;;  %v5261_v36 = vadd.f32 %v5260_v52, %v5259_v21  ;;  %v6386_v52 = vld [vmem:[#allocation6 + $0x28] sm:$0xff]  }
 0x1a3   : > { %v7796_v28 = vadd.f32 %v5370_v1, %v5258_v31  ;;  %v5373_v42 = vadd.f32 %v5372_v17, %v5371_v27  ;;  %6161 = vmatmul.mubr.bf16.gmra.mrb[148].mxu0 %v7586_v23  ;;  %5663 = vmatpush3.bf16.msra.mxu1 %v6386_v52 }
 0x1a4   : > { %6164 = vmatprep.mubr.bf16.mxu0 %v7607_v45 }
 0x1a5   : > { %v7799_v12 = vadd.f32 %v5373_v42, %v5261_v36 }
 0x1a6   : > { %v5262_v56 = vpop.f32.mrb[44].mxu0 }
 0x1a7   : > { %v5374_v46 = vpop.f32.mrb[44].mxu1  ;;  %v5263_v20 = vpop.f32.mrb[45].mxu0 }
 0x1a8   : > { %v5375_v50 = vpop.f32.mrb[45].mxu1  ;;  %v5264_v58 = vadd.f32 %v5263_v20, %v5262_v56  ;;  %v5265_v51 = vpop.f32.mrb[46].mxu0 }
 0x1a9   : > { %v5376_v6 = vadd.f32 %v5375_v50, %v5374_v46  ;;  %v5377_v23 = vpop.f32.mrb[46].mxu1  ;;  %v5266_v45 = vpop.f32.mrb[47].mxu0 }
 0x1aa   : > { %v5378_v48 = vpop.f32.mrb[47].mxu1  ;;  %v5267_v61 = vadd.f32 %v5266_v45, %v5265_v51 }
 0x1ab   : > { %v7805_v13 = vadd.f32 %v5376_v6, %v5264_v58  ;;  %v5379_v34 = vadd.f32 %v5378_v48, %v5377_v23  ;;  %6165 = vmatmul.mubr.bf16.gmra.mrb[152].mxu0 %v7631_v37 }
 0x1ac   : > { %6168 = vmatprep.mubr.bf16.mxu0 %v7637_v39 }
 0x1ad   : > { %v7808_v62 = vadd.f32 %v5379_v34, %v5267_v61 }
 0x1ae   : > { %v5268_v44 = vpop.f32.mrb[48].mxu0 }
 0x1af   : > { %v5380_v43 = vpop.f32.mrb[48].mxu1  ;;  %v5269_v57 = vpop.f32.mrb[49].mxu0 }
 0x1b0   : > { %v5381_v55 = vpop.f32.mrb[49].mxu1  ;;  %v5270_v8 = vadd.f32 %v5269_v57, %v5268_v44  ;;  %v5271_v2 = vpop.f32.mrb[50].mxu0 }
 0x1b1   : > { %v5382_v33 = vadd.f32 %v5381_v55, %v5380_v43  ;;  %v5383_v15 = vpop.f32.mrb[50].mxu1  ;;  %v5272_v37 = vpop.f32.mrb[51].mxu0 }
 0x1b2   : > { %v5384_v31 = vpop.f32.mrb[51].mxu1  ;;  %v5273_v39 = vadd.f32 %v5272_v37, %v5271_v2  ;;  %v6388_v2 = vld [vmem:[#allocation6 + $0x30] sm:$0xff]  }
 0x1b3   : > { %v7815_v1 = vadd.f32 %v5382_v33, %v5270_v8  ;;  %v5385_v21 = vadd.f32 %v5384_v31, %v5383_v15  ;;  %6169 = vmatmul.mubr.bf16.gmra.mrb[156].mxu0 %v5024_v47  ;;  %v6389_v47 = vld [vmem:[#allocation6 + $0xc0] sm:$0xff]   ;;  %v6387_v33 = vld [vmem:[#allocation6 + $0x70] sm:$0xff]  }
 0x1b4   : > { %v6390_v15 = vld [vmem:[#allocation6 + $0x80] sm:$0xff]   ;;  %5764 = vmatprep.subr.bf16.mxu0 %v6389_v47  ;;  %5664 = vmatprep.subr.bf16.mxu1 %v6387_v33  ;;  %v6584_v47 = vmov 0.0  }
 0x1b5   : > { %v7817_v27 = vadd.f32 %v5385_v21, %v5273_v39  ;;  %5765 = vmatpush3.bf16.msra.mxu0 %v6390_v15  ;;  %5665 = vmatpush3.bf16.msra.mxu1 %v6388_v2  ;;  %2739 = vst [vmem:[#allocation2] sm:$0xff] %v6584_v47  ;;  %2741 = vst [vmem:[#allocation2 + $0x10] sm:$0x3] %v6584_v47 }
 0x1b6   : > { %v5274_v17 = vpop.f32.mrb[52].mxu0  ;;  %5766 = vmatprep.subr.bf16.mxu0 %v6391_v53  ;;  %2745 = vst [vmem:[#allocation2 + $0x1a8] sm:$0x3] %v6584_v47  ;;  %2747 = vst [vmem:[#allocation2 + $0x18] sm:$0x1] %v6584_v47 }
 0x1b7   : > { %v5386_v36 = vpop.f32.mrb[52].mxu1  ;;  %v5275_v42 = vpop.f32.mrb[53].mxu0  ;;  %2748 = vst [vmem:[#allocation2 + $0x30] sm:$0x1] %v6584_v47  ;;  %2749 = vst [vmem:[#allocation2 + $0x48] sm:$0x1] %v6584_v47 }
 0x1b8   : > { %v5387_v32 = vpop.f32.mrb[53].mxu1  ;;  %v5276_v49 = vadd.f32 %v5275_v42, %v5274_v17  ;;  %v5277_v56 = vpop.f32.mrb[54].mxu0  ;;  %2750 = vst [vmem:[#allocation2 + $0x60] sm:$0x1] %v6584_v47  ;;  %2751 = vst [vmem:[#allocation2 + $0x78] sm:$0x1] %v6584_v47 }
 0x1b9   : > { %v5388_v25 = vadd.f32 %v5387_v32, %v5386_v36  ;;  %v5389_v46 = vpop.f32.mrb[54].mxu1  ;;  %v5278_v20 = vpop.f32.mrb[55].mxu0  ;;  %v6392_v32 = vld [vmem:[#allocation6 + $0x88] sm:$0xff]   ;;  %2752 = vst [vmem:[#allocation2 + $0x90] sm:$0x1] %v6584_v47 }
 0x1ba   : > { %v5390_v50 = vpop.f32.mrb[55].mxu1  ;;  %v5279_v58 = vadd.f32 %v5278_v20, %v5277_v56  ;;  %5767 = vmatpush3.bf16.msra.mxu0 %v6392_v32  ;;  %2753 = vst [vmem:[#allocation2 + $0xa8] sm:$0x1] %v6584_v47  ;;  %2754 = vst [vmem:[#allocation2 + $0xc0] sm:$0x1] %v6584_v47  ;;  %v6401_v32 = vld [vmem:[#allocation6 + $0xe8] sm:$0xff]  }
 0x1bb   : > { %v7819_v63 = vadd.f32 %v5388_v25, %v5276_v49  ;;  %v5391_v6 = vadd.f32 %v5390_v50, %v5389_v46  ;;  %v6393_v50 = vld [vmem:[#allocation6 + $0xd0] sm:$0xff]   ;;  %2755 = vst [vmem:[#allocation2 + $0xd8] sm:$0x1] %v6584_v47  ;;  %2756 = vst [vmem:[#allocation2 + $0xf0] sm:$0x1] %v6584_v47 }
 0x1bc   : > { %5768 = vmatprep.subr.bf16.mxu0 %v6393_v50  ;;  %2757 = vst [vmem:[#allocation2 + $0x108] sm:$0x1] %v6584_v47  ;;  %2758 = vst [vmem:[#allocation2 + $0x120] sm:$0x1] %v6584_v47  ;;  %v2813_v50 = vld [vmem:[#allocation2 + $0x10] sm:$0x3] }
 0x1bd   : > { %v7821_v51 = vadd.f32 %v5391_v6, %v5279_v58  ;;  %v6394_v6 = vld [vmem:[#allocation6 + $0x90] sm:$0xff]   ;;  %2759 = vst [vmem:[#allocation2 + $0x138] sm:$0x1] %v6584_v47  ;;  %2760 = vst [vmem:[#allocation2 + $0x150] sm:$0x1] %v6584_v47 }
 0x1be   : > { %v5280_v23 = vpop.f32.mrb[56].mxu0  ;;  %5769 = vmatpush3.bf16.msra.mxu0 %v6394_v6  ;;  %2761 = vst [vmem:[#allocation2 + $0x168] sm:$0x1] %v6584_v47  ;;  %2762 = vst [vmem:[#allocation2 + $0x180] sm:$0x1] %v6584_v47 }
 0x1bf   : > { %v5392_v29 = vpop.f32.mrb[56].mxu1  ;;  %v5281_v10 = vpop.f32.mrb[57].mxu0  ;;  %2763 = vst [vmem:[#allocation2 + $0x29] sm:$0x1] %v6584_v47  ;;  %2764 = vst [vmem:[#allocation2 + $0x41] sm:$0x1] %v6584_v47 }
 0x1c0   : > { %v5393_v45 = vpop.f32.mrb[57].mxu1  ;;  %v5282_v48 = vadd.f32 %v5281_v10, %v5280_v23  ;;  %v5283_v34 = vpop.f32.mrb[58].mxu0  ;;  %2765 = vst [vmem:[#allocation2 + $0x59] sm:$0x1] %v6584_v47  ;;  %2766 = vst [vmem:[#allocation2 + $0x71] sm:$0x1] %v6584_v47 }
 0x1c1   : > { %v5394_v61 = vadd.f32 %v5393_v45, %v5392_v29  ;;  %v5395_v30 = vpop.f32.mrb[58].mxu1  ;;  %v5284_v9 = vpop.f32.mrb[59].mxu0  ;;  %2767 = vst [vmem:[#allocation2 + $0x89] sm:$0x1] %v6584_v47  ;;  %2768 = vst [vmem:[#allocation2 + $0xa1] sm:$0x1] %v6584_v47 }
 0x1c2   : > { %v5396_v44 = vpop.f32.mrb[59].mxu1  ;;  %v5285_v57 = vadd.f32 %v5284_v9, %v5283_v34  ;;  %2769 = vst [vmem:[#allocation2 + $0xb9] sm:$0x1] %v6584_v47  ;;  %2770 = vst [vmem:[#allocation2 + $0xd1] sm:$0x1] %v6584_v47 }
 0x1c3   : > { %v7823_v43 = vadd.f32 %v5394_v61, %v5282_v48  ;;  %v5397_v55 = vadd.f32 %v5396_v44, %v5395_v30  ;;  %v6395_v48 = vld [vmem:[#allocation6 + $0xd8] sm:$0xff]   ;;  %2771 = vst [vmem:[#allocation2 + $0xe9] sm:$0x1] %v6584_v47  ;;  %2772 = vst [vmem:[#allocation2 + $0x101] sm:$0x1] %v6584_v47 }
 0x1c4   : > { %v6396_v44 = vld [vmem:[#allocation6 + $0x98] sm:$0xff]   ;;  %5770 = vmatprep.subr.bf16.mxu0 %v6395_v48  ;;  %2773 = vst [vmem:[#allocation2 + $0x119] sm:$0x1] %v6584_v47  ;;  %2774 = vst [vmem:[#allocation2 + $0x131] sm:$0x1] %v6584_v47 }
 0x1c5   : > { %v7825_v8 = vadd.f32 %v5397_v55, %v5285_v57  ;;  %2775 = vst [vmem:[#allocation2 + $0x149] sm:$0x1] %v6584_v47  ;;  %2776 = vst [vmem:[#allocation2 + $0x161] sm:$0x1] %v6584_v47  ;;  %5771 = vmatpush3.bf16.msra.mxu0 %v6396_v44  ;;  %v6397_v48 = vld [vmem:[#allocation6 + $0x78] sm:$0xff]  }
 0x1c6   : > { %v5286_v37 = vpop.f32.mrb[60].mxu0  ;;  %2777 = vst [vmem:[#allocation2 + $0x179] sm:$0x1] %v6584_v47  ;;  %2778 = vst [vmem:[#allocation2 + $0x191] sm:$0x1] %v6584_v47  ;;  %5666 = vmatprep.subr.bf16.mxu1 %v6397_v48  ;;  %v6404_v47 = vld [vmem:[#allocation6 + $0xb0] sm:$0xff]  }
 0x1c7   : > { %v5398_v31 = vpop.f32.mrb[60].mxu1  ;;  %v5287_v39 = vpop.f32.mrb[61].mxu0 }
 0x1c8   : > { %v5399_v21 = vpop.f32.mrb[61].mxu1  ;;  %v5288_v52 = vadd.f32 %v5287_v39, %v5286_v37  ;;  %v5289_v36 = vpop.f32.mrb[62].mxu0  ;;  %v6399_v37 = vld [vmem:[#allocation6 + $0xe0] sm:$0xff]  }
 0x1c9   : > { %v5400_v17 = vadd.f32 %v5399_v21, %v5398_v31  ;;  %v5401_v42 = vpop.f32.mrb[62].mxu1  ;;  %v5290_v49 = vpop.f32.mrb[63].mxu0  ;;  %v6400_v21 = vld [vmem:[#allocation6 + $0xa0] sm:$0xff]   ;;  %5772 = vmatprep.subr.bf16.mxu0 %v6399_v37 }
 0x1ca   : > { %v5402_v25 = vpop.f32.mrb[63].mxu1  ;;  %v5291_v46 = vadd.f32 %v5290_v49, %v5289_v36  ;;  %5773 = vmatpush3.bf16.msra.mxu0 %v6400_v21 }
 0x1cb   : > { %v7827_v56 = vadd.f32 %v5400_v17, %v5288_v52  ;;  %v5403_v20 = vadd.f32 %v5402_v25, %v5401_v42  ;;  %5774 = vmatprep.subr.bf16.mxu0 %v6401_v32  ;;  %v6406_v32 = vld [vmem:[#allocation6 + $0xb8] sm:$0xff]  }
 0x1cd   : > { %v7829_v58 = vadd.f32 %v5403_v20, %v5291_v46  ;;  %v6402_v20 = vld [vmem:[#allocation6 + $0xa8] sm:$0xff]  }
 0x1ce   : > { %v5420_v23 = vpop.f32.mrb[64].mxu0  ;;  %5775 = vmatpush3.bf16.msra.mxu0 %v6402_v20 }
 0x1cf   : > { %v5532_v29 = vpop.f32.mrb[64].mxu1  ;;  %v5421_v10 = vpop.f32.mrb[65].mxu0 }
 0x1d0   : > { %v5533_v45 = vpop.f32.mrb[65].mxu1  ;;  %v5422_v61 = vadd.f32 %v5421_v10, %v5420_v23  ;;  %v5423_v34 = vpop.f32.mrb[66].mxu0  ;;  %v2881_v23 = vpack.c.bf16 %v2813_v50, %v2813_v50 }
 0x1d1   : > { %v5534_v30 = vadd.f32 %v5533_v45, %v5532_v29  ;;  %v5535_v9 = vpop.f32.mrb[66].mxu1  ;;  %v5424_v57 = vpop.f32.mrb[67].mxu0 }
 0x1d2   : > { %v5536_v55 = vpop.f32.mrb[67].mxu1  ;;  %v2181_v33 = vadd.f32 %v5422_v61, %v7715_v54  ;;  %v5425_v2 = vadd.f32 %v5424_v57, %v5423_v34  ;;  %v6398_v61 = vld [vmem:[#allocation6 + $0x38] sm:$0xff]   ;;  %v6403_v34 = vld [vmem:[#allocation6 + $0xf0] sm:$0xff]   ;;  %v2906_v44 = vshll.u32 %v2881_v23, 16 }
 0x1d3   : > { %v5537_v15 = vadd.f32 %v5536_v55, %v5535_v9  ;;  %5667 = vmatpush3.bf16.msra.mxu1 %v6398_v61  ;;  %5776 = vmatprep.subr.bf16.mxu0 %v6403_v34 }
 0x1d4   : > { %v2184_v31 = vadd.f32 %v5425_v2, %v7721_v0  ;;  %v7833_v39 = vadd.f32 %v5534_v30, %v2181_v33  ;;  %v6585_v30 = vmov 0   ;;  %v2908_v33 = vrot.slane %v2906_v44, 1  ;;  %5777 = vmatpush3.bf16.msra.mxu0 %v6404_v47 }
 0x1d5   : > { %v2903_v9 = vrot.slane %v6585_v30, 1 }
 0x1d6   : > { %v5426_v53 = vpop.f32.mrb[68].mxu0  ;;  %v7835_v17 = vadd.f32 %v5537_v15, %v2184_v31 }
 0x1d7   : > { %v5538_v52 = vpop.f32.mrb[68].mxu1  ;;  %v5427_v36 = vpop.f32.mrb[69].mxu0  ;;  %v2909_v21 = vsel %vm2897_vm6, %v2903_v9, %v2908_v33 }
 0x1d8   : > { %v5539_v42 = vpop.f32.mrb[69].mxu1  ;;  %v5428_v49 = vadd.f32 %v5427_v36, %v5426_v53  ;;  %v5429_v54 = vpop.f32.mrb[70].mxu0  ;;  %v6405_v53 = vld [vmem:[#allocation6 + $0xf8] sm:$0xff]   ;;  %3853 = vmatprep.mubr.bf16.mxu1 %v2909_v21 }
 0x1d9   : > { %v5540_v25 = vadd.f32 %v5539_v42, %v5538_v52  ;;  %v5541_v46 = vpop.f32.mrb[70].mxu1  ;;  %v5430_v6 = vpop.f32.mrb[71].mxu0  ;;  %5778 = vmatprep.subr.bf16.mxu0 %v6405_v53 }
 0x1da   : > { %v5542_v0 = vpop.f32.mrb[71].mxu1  ;;  %v2189_v29 = vadd.f32 %v5428_v49, %v7730_v35  ;;  %v5431_v10 = vadd.f32 %v5430_v6, %v5429_v54  ;;  %5779 = vmatpush3.bf16.msra.mxu0 %v6406_v32 }
 0x1db   : > { %v5543_v45 = vadd.f32 %v5542_v0, %v5541_v46  ;;  %v3140_v0 = vrot.slane %v2881_v23, 1 }
 0x1dc   : > { %v2192_v57 = vadd.f32 %v5431_v10, %v7736_v60  ;;  %v7839_v55 = vadd.f32 %v5540_v25, %v2189_v29  ;;  %v6586_v25 = vmov 0.0|0.0  }
 0x1dd   : > { %3854 = vmatmul.mubr.bf16.vlgmr.msra.gmra.mrb[128].mxu1 %v6586_v25  ;;  %v3139_v6 = vrot.slane %v6586_v25, 1 }
 0x1de   : > { %v5432_v2 = vpop.f32.mrb[72].mxu0  ;;  %v7841_v15 = vadd.f32 %v5543_v45, %v2192_v57 }
 0x1df   : > { %v5544_v35 = vpop.f32.mrb[72].mxu1  ;;  %v5433_v37 = vpop.f32.mrb[73].mxu0  ;;  %v7849_v45 = vsel %vm3138_vm7, %v3139_v6, %v3140_v0 }
 0x1e0   : > { %v5545_v31 = vpop.f32.mrb[73].mxu1  ;;  %v5434_v52 = vadd.f32 %v5433_v37, %v5432_v2  ;;  %v5435_v60 = vpop.f32.mrb[74].mxu0  ;;  %v6407_v37 = vld [vmem:[#allocation6 + $0x140] sm:$0xff]  }
 0x1e1   : > { %v5546_v36 = vadd.f32 %v5545_v31, %v5544_v35  ;;  %v5547_v42 = vpop.f32.mrb[74].mxu1  ;;  %v5436_v49 = vpop.f32.mrb[75].mxu0  ;;  %v6408_v31 = vld [vmem:[#allocation6 + $0x100] sm:$0xff]   ;;  %5876 = vmatprep.subr.bf16.mxu1 %v6407_v37  ;;  %v6409_v37 = vld [vmem:[#allocation6 + $0x148] sm:$0xff]  }
 0x1e2   : > { %v5548_v54 = vpop.f32.mrb[75].mxu1  ;;  %v2197_v46 = vadd.f32 %v5434_v52, %v7739_v26  ;;  %v5437_v20 = vadd.f32 %v5436_v49, %v5435_v60  ;;  %5877 = vmatpush3.bf16.msra.mxu1 %v6408_v31 }
 0x1e3   : > { %v5549_v50 = vadd.f32 %v5548_v54, %v5547_v42  ;;  %5878 = vmatprep.subr.bf16.mxu1 %v6409_v37  ;;  %v6411_v37 = vld [vmem:[#allocation6 + $0x150] sm:$0xff]  }
 0x1e4   : > { %v2200_v29 = vadd.f32 %v5437_v20, %v7745_v3  ;;  %v7846_v10 = vadd.f32 %v5546_v36, %v2197_v46 }
 0x1e6   : > { %v5438_v48 = vpop.f32.mrb[76].mxu0  ;;  %v7851_v34 = vadd.f32 %v5549_v50, %v2200_v29 }
 0x1e7   : > { %v5550_v61 = vpop.f32.mrb[76].mxu1  ;;  %v5439_v30 = vpop.f32.mrb[77].mxu0 }
 0x1e8   : > { %v5551_v9 = vpop.f32.mrb[77].mxu1  ;;  %v5440_v26 = vadd.f32 %v5439_v30, %v5438_v48  ;;  %v5441_v44 = vpop.f32.mrb[78].mxu0 }
 0x1e9   : > { %v5552_v57 = vadd.f32 %v5551_v9, %v5550_v61  ;;  %v5553_v47 = vpop.f32.mrb[78].mxu1  ;;  %v5442_v33 = vpop.f32.mrb[79].mxu0 }
 0x1ea   : > { %v5554_v2 = vpop.f32.mrb[79].mxu1  ;;  %v2205_v23 = vadd.f32 %v5440_v26, %v7751_v18  ;;  %v5443_v3 = vadd.f32 %v5442_v33, %v5441_v44 }
 0x1eb   : > { %v5555_v35 = vadd.f32 %v5554_v2, %v5553_v47 }
 0x1ec   : > { %v2208_v21 = vadd.f32 %v5443_v3, %v7756_v59  ;;  %v7855_v53 = vadd.f32 %v5552_v57, %v2205_v23 }
 0x1ee   : > { %v5444_v52 = vpop.f32.mrb[80].mxu0  ;;  %v7857_v36 = vadd.f32 %v5555_v35, %v2208_v21 }
 0x1ef   : > { %v5556_v60 = vpop.f32.mrb[80].mxu1  ;;  %v5445_v42 = vpop.f32.mrb[81].mxu0 }
 0x1f0   : > { %v5557_v32 = vpop.f32.mrb[81].mxu1  ;;  %v5446_v49 = vadd.f32 %v5445_v42, %v5444_v52  ;;  %v5447_v54 = vpop.f32.mrb[82].mxu0 }
 0x1f1   : > { %v5558_v25 = vadd.f32 %v5557_v32, %v5556_v60  ;;  %v5559_v18 = vpop.f32.mrb[82].mxu1  ;;  %v5448_v46 = vpop.f32.mrb[83].mxu0 }
 0x1f2   : > { %v5560_v20 = vpop.f32.mrb[83].mxu1  ;;  %v2213_v50 = vadd.f32 %v5446_v49, %v7760_v41  ;;  %v5449_v6 = vadd.f32 %v5448_v46, %v5447_v54 }
 0x1f3   : > { %v5561_v59 = vadd.f32 %v5560_v20, %v5559_v18 }
 0x1f4   : > { %v2216_v0 = vadd.f32 %v5449_v6, %v7764_v16  ;;  %v7861_v29 = vadd.f32 %v5558_v25, %v2213_v50  ;;  %v6410_v16 = vld [vmem:[#allocation6 + $0x108] sm:$0xff]  }
 0x1f5   : > { %5879 = vmatpush3.bf16.msra.mxu1 %v6410_v16 }
 0x1f6   : > { %v5450_v48 = vpop.f32.mrb[84].mxu0  ;;  %v7863_v30 = vadd.f32 %v5561_v59, %v2216_v0  ;;  %5880 = vmatprep.subr.bf16.mxu1 %v6411_v37 }
 0x1f7   : > { %v5562_v61 = vpop.f32.mrb[84].mxu1  ;;  %v5451_v9 = vpop.f32.mrb[85].mxu0 }
 0x1f8   : > { %v5563_v26 = vpop.f32.mrb[85].mxu1  ;;  %v5452_v44 = vadd.f32 %v5451_v9, %v5450_v48  ;;  %v5453_v57 = vpop.f32.mrb[86].mxu0 }
 0x1f9   : > { %v5564_v47 = vadd.f32 %v5563_v26, %v5562_v61  ;;  %v5565_v33 = vpop.f32.mrb[86].mxu1  ;;  %v5454_v2 = vpop.f32.mrb[87].mxu0 }
 0x1fa   : > { %v5566_v23 = vpop.f32.mrb[87].mxu1  ;;  %v2221_v41 = vadd.f32 %v5452_v44, %v7766_v14  ;;  %v5455_v3 = vadd.f32 %v5454_v2, %v5453_v57 }
 0x1fb   : > { %v5567_v35 = vadd.f32 %v5566_v23, %v5565_v33 }
 0x1fc   : > { %v2224_v31 = vadd.f32 %v5455_v3, %v7770_v19  ;;  %v7867_v21 = vadd.f32 %v5564_v47, %v2221_v41 }
 0x1fe   : > { %v5456_v52 = vpop.f32.mrb[88].mxu0  ;;  %v7869_v42 = vadd.f32 %v5567_v35, %v2224_v31 }
 0x1ff   : > { %v5568_v60 = vpop.f32.mrb[88].mxu1  ;;  %v5457_v32 = vpop.f32.mrb[89].mxu0 }
 0x200   : > { %v5569_v49 = vpop.f32.mrb[89].mxu1  ;;  %v5458_v54 = vadd.f32 %v5457_v32, %v5456_v52  ;;  %v5459_v25 = vpop.f32.mrb[90].mxu0 }
 0x201   : > { %v5570_v18 = vadd.f32 %v5569_v49, %v5568_v60  ;;  %v5571_v14 = vpop.f32.mrb[90].mxu1  ;;  %v5460_v46 = vpop.f32.mrb[91].mxu0 }
 0x202   : > { %v5572_v20 = vpop.f32.mrb[91].mxu1  ;;  %v2229_v50 = vadd.f32 %v5458_v54, %v7772_v11  ;;  %v5461_v6 = vadd.f32 %v5460_v46, %v5459_v25 }
 0x203   : > { %v5573_v19 = vadd.f32 %v5572_v20, %v5571_v14 }
 0x204   : > { %v2232_v59 = vadd.f32 %v5461_v6, %v7776_v5  ;;  %v7873_v0 = vadd.f32 %v5570_v18, %v2229_v50  ;;  %v6412_v5 = vld [vmem:[#allocation6 + $0x110] sm:$0xff]  }
 0x205   : > { %5881 = vmatpush3.bf16.msra.mxu1 %v6412_v5 }
 0x206   : > { %v5462_v48 = vpop.f32.mrb[92].mxu0  ;;  %v7875_v9 = vadd.f32 %v5573_v19, %v2232_v59 }
 0x207   : > { %v5574_v61 = vpop.f32.mrb[92].mxu1  ;;  %v5463_v26 = vpop.f32.mrb[93].mxu0 }
 0x208   : > { %v5575_v44 = vpop.f32.mrb[93].mxu1  ;;  %v5464_v57 = vadd.f32 %v5463_v26, %v5462_v48  ;;  %v5465_v47 = vpop.f32.mrb[94].mxu0  ;;  %v6413_v48 = vld [vmem:[#allocation6 + $0x158] sm:$0xff]  }
 0x209   : > { %v5576_v33 = vadd.f32 %v5575_v44, %v5574_v61  ;;  %v5577_v2 = vpop.f32.mrb[94].mxu1  ;;  %v5466_v23 = vpop.f32.mrb[95].mxu0  ;;  %v6414_v61 = vld [vmem:[#allocation6 + $0x118] sm:$0xff]   ;;  %5882 = vmatprep.subr.bf16.mxu1 %v6413_v48 }
 0x20a   : > { %v5578_v41 = vpop.f32.mrb[95].mxu1  ;;  %v2237_v11 = vadd.f32 %v5464_v57, %v7778_v4  ;;  %v5467_v3 = vadd.f32 %v5466_v23, %v5465_v47  ;;  %5883 = vmatpush3.bf16.msra.mxu1 %v6414_v61  ;;  %v6417_v61 = vld [vmem:[#allocation6 + $0x160] sm:$0xff]  }
 0x20b   : > { %v5579_v35 = vadd.f32 %v5578_v41, %v5577_v2  ;;  %5884 = vmatprep.subr.bf16.mxu1 %v6417_v61  ;;  %v6421_v61 = vld [vmem:[#allocation6 + $0x168] sm:$0xff]  }
 0x20c   : > { %v2240_v16 = vadd.f32 %v5467_v3, %v7782_v24  ;;  %v7879_v31 = vadd.f32 %v5576_v33, %v2237_v11 }
 0x20e   : > { %v5468_v52 = vpop.f32.mrb[96].mxu0  ;;  %v7881_v32 = vadd.f32 %v5579_v35, %v2240_v16 }
 0x20f   : > { %v5580_v60 = vpop.f32.mrb[96].mxu1  ;;  %v5469_v49 = vpop.f32.mrb[97].mxu0 }
 0x210   : > { %v5581_v54 = vpop.f32.mrb[97].mxu1  ;;  %v5470_v25 = vadd.f32 %v5469_v49, %v5468_v52  ;;  %v5471_v18 = vpop.f32.mrb[98].mxu0 }
 0x211   : > { %v5582_v14 = vadd.f32 %v5581_v54, %v5580_v60  ;;  %v5583_v4 = vpop.f32.mrb[98].mxu1  ;;  %v5472_v46 = vpop.f32.mrb[99].mxu0  ;;  %v6415_v54 = vld [vmem:[#allocation6 + $0x1c0] sm:$0xff]  }
 0x212   : > { %v5584_v20 = vpop.f32.mrb[99].mxu1  ;;  %v2245_v50 = vadd.f32 %v5470_v25, %v7784_v40  ;;  %v5473_v6 = vadd.f32 %v5472_v46, %v5471_v18  ;;  %5988 = vmatprep.subr.bf16.mxu0 %v6415_v54 }
 0x213   : > { %v5585_v24 = vadd.f32 %v5584_v20, %v5583_v4 }
 0x214   : > { %v2248_v19 = vadd.f32 %v5473_v6, %v7787_v22  ;;  %v7885_v59 = vadd.f32 %v5582_v14, %v2245_v50 }
 0x216   : > { %v5474_v26 = vpop.f32.mrb[100].mxu0  ;;  %v7887_v57 = vadd.f32 %v5585_v24, %v2248_v19 }
 0x217   : > { %v5586_v44 = vpop.f32.mrb[100].mxu1  ;;  %v5475_v47 = vpop.f32.mrb[101].mxu0 }
 0x218   : > { %v5587_v33 = vpop.f32.mrb[101].mxu1  ;;  %v5476_v2 = vadd.f32 %v5475_v47, %v5474_v26  ;;  %v5477_v23 = vpop.f32.mrb[102].mxu0  ;;  %v6418_v26 = vld [vmem:[#allocation6 + $0x120] sm:$0xff]  }
 0x219   : > { %v5588_v41 = vadd.f32 %v5587_v33, %v5586_v44  ;;  %v5589_v40 = vpop.f32.mrb[102].mxu1  ;;  %v5478_v11 = vpop.f32.mrb[103].mxu0  ;;  %5885 = vmatpush3.bf16.msra.mxu1 %v6418_v26  ;;  %v6422_v26 = vld [vmem:[#allocation6 + $0x128] sm:$0xff]  }
 0x21a   : > { %v5590_v3 = vpop.f32.mrb[103].mxu1  ;;  %v2253_v22 = vadd.f32 %v5476_v2, %v7790_v7  ;;  %v5479_v35 = vadd.f32 %v5478_v11, %v5477_v23  ;;  %5886 = vmatprep.subr.bf16.mxu1 %v6421_v61  ;;  %v6425_v61 = vld [vmem:[#allocation6 + $0x170] sm:$0xff]  }
 0x21b   : > { %v5591_v37 = vadd.f32 %v5590_v3, %v5589_v40 }
 0x21c   : > { %v2256_v5 = vadd.f32 %v5479_v35, %v7793_v38  ;;  %v7891_v16 = vadd.f32 %v5588_v41, %v2253_v22 }
 0x21d   : > { %5887 = vmatpush3.bf16.msra.mxu1 %v6422_v26  ;;  %v6426_v26 = vld [vmem:[#allocation6 + $0x130] sm:$0xff]  }
 0x21e   : > { %v5480_v52 = vpop.f32.mrb[104].mxu0  ;;  %v7893_v49 = vadd.f32 %v5591_v37, %v2256_v5  ;;  %5888 = vmatprep.subr.bf16.mxu1 %v6425_v61  ;;  %v6429_v61 = vld [vmem:[#allocation6 + $0x178] sm:$0xff]  }
 0x21f   : > { %v5592_v60 = vpop.f32.mrb[104].mxu1  ;;  %v5481_v25 = vpop.f32.mrb[105].mxu0 }
 0x220   : > { %v5593_v18 = vpop.f32.mrb[105].mxu1  ;;  %v5482_v14 = vadd.f32 %v5481_v25, %v5480_v52  ;;  %v5483_v4 = vpop.f32.mrb[106].mxu0 }
 0x221   : > { %v5594_v46 = vadd.f32 %v5593_v18, %v5592_v60  ;;  %v5595_v20 = vpop.f32.mrb[106].mxu1  ;;  %v5484_v50 = vpop.f32.mrb[107].mxu0  ;;  %5889 = vmatpush3.bf16.msra.mxu1 %v6426_v26 }
 0x222   : > { %v5596_v7 = vpop.f32.mrb[107].mxu1  ;;  %v2261_v6 = vadd.f32 %v5482_v14, %v7796_v28  ;;  %v5485_v24 = vadd.f32 %v5484_v50, %v5483_v4  ;;  %5890 = vmatprep.subr.bf16.mxu1 %v6429_v61 }
 0x223   : > { %v5597_v38 = vadd.f32 %v5596_v7, %v5595_v20 }
 0x224   : > { %v2264_v19 = vadd.f32 %v5485_v24, %v7799_v12  ;;  %v7897_v48 = vadd.f32 %v5594_v46, %v2261_v6 }
 0x226   : > { %v5486_v44 = vpop.f32.mrb[108].mxu0  ;;  %v7899_v33 = vadd.f32 %v5597_v38, %v2264_v19 }
 0x227   : > { %v5598_v47 = vpop.f32.mrb[108].mxu1  ;;  %v5487_v2 = vpop.f32.mrb[109].mxu0 }
 0x228   : > { %v5599_v23 = vpop.f32.mrb[109].mxu1  ;;  %v5488_v41 = vadd.f32 %v5487_v2, %v5486_v44  ;;  %v5489_v40 = vpop.f32.mrb[110].mxu0 }
 0x229   : > { %v5600_v11 = vadd.f32 %v5599_v23, %v5598_v47  ;;  %v5601_v28 = vpop.f32.mrb[110].mxu1  ;;  %v5490_v3 = vpop.f32.mrb[111].mxu0 }
 0x22a   : > { %v5602_v22 = vpop.f32.mrb[111].mxu1  ;;  %v2269_v12 = vadd.f32 %v5488_v41, %v7805_v13  ;;  %v5491_v35 = vadd.f32 %v5490_v3, %v5489_v40 }
 0x22b   : > { %v5603_v37 = vadd.f32 %v5602_v22, %v5601_v28 }
 0x22c   : > { %v2272_v5 = vadd.f32 %v5491_v35, %v7808_v62  ;;  %v7903_v52 = vadd.f32 %v5600_v11, %v2269_v12 }
 0x22e   : > { %v5492_v60 = vpop.f32.mrb[112].mxu0  ;;  %v7905_v25 = vadd.f32 %v5603_v37, %v2272_v5 }
 0x22f   : > { %v5604_v54 = vpop.f32.mrb[112].mxu1  ;;  %v5493_v18 = vpop.f32.mrb[113].mxu0 }
 0x230   : > { %v5605_v14 = vpop.f32.mrb[113].mxu1  ;;  %v5494_v4 = vadd.f32 %v5493_v18, %v5492_v60  ;;  %v5495_v46 = vpop.f32.mrb[114].mxu0 }
 0x231   : > { %v5606_v20 = vadd.f32 %v5605_v14, %v5604_v54  ;;  %v5607_v50 = vpop.f32.mrb[114].mxu1  ;;  %v5496_v7 = vpop.f32.mrb[115].mxu0 }
 0x232   : > { %v5608_v6 = vpop.f32.mrb[115].mxu1  ;;  %v2277_v13 = vadd.f32 %v5494_v4, %v7815_v1  ;;  %v5497_v24 = vadd.f32 %v5496_v7, %v5495_v46 }
 0x233   : > { %v5609_v38 = vadd.f32 %v5608_v6, %v5607_v50 }
 0x234   : > { %v2280_v62 = vadd.f32 %v5497_v24, %v7817_v27  ;;  %v7909_v19 = vadd.f32 %v5606_v20, %v2277_v13 }
 0x236   : > { %v5498_v44 = vpop.f32.mrb[116].mxu0  ;;  %v7911_v2 = vadd.f32 %v5609_v38, %v2280_v62 }
 0x237   : > { %v5610_v47 = vpop.f32.mrb[116].mxu1  ;;  %v5499_v23 = vpop.f32.mrb[117].mxu0 }
 0x238   : > { %v5611_v41 = vpop.f32.mrb[117].mxu1  ;;  %v5500_v40 = vadd.f32 %v5499_v23, %v5498_v44  ;;  %v5501_v11 = vpop.f32.mrb[118].mxu0 }
 0x239   : > { %v5612_v28 = vadd.f32 %v5611_v41, %v5610_v47  ;;  %v5613_v1 = vpop.f32.mrb[118].mxu1  ;;  %v5502_v3 = vpop.f32.mrb[119].mxu0 }
 0x23a   : > { %v5614_v22 = vpop.f32.mrb[119].mxu1  ;;  %v2285_v27 = vadd.f32 %v5500_v40, %v7819_v63  ;;  %v5503_v12 = vadd.f32 %v5502_v3, %v5501_v11 }
 0x23b   : > { %v5615_v35 = vadd.f32 %v5614_v22, %v5613_v1 }
 0x23c   : > { %v2288_v37 = vadd.f32 %v5503_v12, %v7821_v51  ;;  %v7915_v5 = vadd.f32 %v5612_v28, %v2285_v27 }
 0x23e   : > { %v5504_v60 = vpop.f32.mrb[120].mxu0  ;;  %v7917_v18 = vadd.f32 %v5615_v35, %v2288_v37 }
 0x23f   : > { %v5616_v54 = vpop.f32.mrb[120].mxu1  ;;  %v5505_v14 = vpop.f32.mrb[121].mxu0 }
 0x240   : > { %v5617_v4 = vpop.f32.mrb[121].mxu1  ;;  %v5506_v46 = vadd.f32 %v5505_v14, %v5504_v60  ;;  %v5507_v20 = vpop.f32.mrb[122].mxu0 }
 0x241   : > { %v5618_v50 = vadd.f32 %v5617_v4, %v5616_v54  ;;  %v5619_v7 = vpop.f32.mrb[122].mxu1  ;;  %v5508_v6 = vpop.f32.mrb[123].mxu0  ;;  %v7932_v54 = vld [vmem:[%s8783_s4] ss:$0 sm:$0xff] }
 0x242   : > { %v5620_v13 = vpop.f32.mrb[123].mxu1  ;;  %v2293_v63 = vadd.f32 %v5506_v46, %v7823_v43  ;;  %v5509_v24 = vadd.f32 %v5508_v6, %v5507_v20 }
 0x243   : > { %v5621_v38 = vadd.f32 %v5620_v13, %v5619_v7 }
 0x244   : > { %v2296_v51 = vadd.f32 %v5509_v24, %v7825_v8  ;;  %v7921_v62 = vadd.f32 %v5618_v50, %v2293_v63 }
 0x246   : > { %v5510_v44 = vpop.f32.mrb[124].mxu0  ;;  %v7923_v23 = vadd.f32 %v5621_v38, %v2296_v51 }
 0x247   : > { %v5622_v47 = vpop.f32.mrb[124].mxu1  ;;  %v5511_v41 = vpop.f32.mrb[125].mxu0 }
 0x248   : > { %v5623_v40 = vpop.f32.mrb[125].mxu1  ;;  %v5512_v11 = vadd.f32 %v5511_v41, %v5510_v44  ;;  %v5513_v28 = vpop.f32.mrb[126].mxu0  ;;  %v6430_v44 = vld [vmem:[#allocation6 + $0x138] sm:$0xff]  }
 0x249   : > { %v5624_v1 = vadd.f32 %v5623_v40, %v5622_v47  ;;  %v5625_v43 = vpop.f32.mrb[126].mxu1  ;;  %v5514_v3 = vpop.f32.mrb[127].mxu0  ;;  %5891 = vmatpush3.bf16.msra.mxu1 %v6430_v44 }
 0x24a   : > { %v5626_v22 = vpop.f32.mrb[127].mxu1  ;;  %v2301_v8 = vadd.f32 %v5512_v11, %v7827_v56  ;;  %v5515_v27 = vadd.f32 %v5514_v3, %v5513_v28  ;;  %v7940_v56 = vld [vmem:[%s8784_s5] ss:$0 sm:$0xff] }
 0x24b   : > { %v5627_v12 = vadd.f32 %v5626_v22, %v5625_v43 }
 0x24c   : > { %v2304_v35 = vadd.f32 %v5515_v27, %v7829_v58  ;;  %v7927_v37 = vadd.f32 %v5624_v1, %v2301_v8 }
 0x24e   : > { %v6142_v60 = vpop.f32.mrb[128].mxu0  ;;  %v7934_v14 = vadd.f32 %v5627_v12, %v2304_v35 }
 0x24f   : > { %v2511_v4 = vadd.f32 %v6142_v60, %v7839_v55  ;;  %v2502_v46 = vpop.f32.mrb[129].mxu0 }
 0x250   : > { %v2503_v58 = vadd.f32 %v2502_v46, %v7833_v39  ;;  %v6143_v20 = vpop.f32.mrb[130].mxu0 }
 0x251   : > { %v2638_v50 = vmul.f32 %v7932_v54, %v2511_v4  ;;  %v2514_v7 = vadd.f32 %v6143_v20, %v7841_v15  ;;  %v2505_v6 = vpop.f32.mrb[131].mxu0 }
 0x252   : > { %v2636_v13 = vmul.f32 %v7932_v54, %v2503_v58  ;;  %v2506_v63 = vadd.f32 %v2505_v6, %v7835_v17 }
 0x253   : > { %v2677_v55 = vadd.f32 %v7940_v56, %v2638_v50  ;;  %v2639_v24 = vmul.f32 %v7932_v54, %v2514_v7 }
 0x254   : > { %v2675_v38 = vadd.f32 %v7940_v56, %v2636_v13  ;;  %v2637_v51 = vmul.f32 %v7932_v54, %v2506_v63 }
 0x255   : > { %v2709_v39 = vmax.f32 %v2677_v55, 0.0  ;;  %v2678_v26 = vadd.f32 %v7940_v56, %v2639_v24 }
 0x256   : > { %v2707_v47 = vmax.f32 %v2675_v38, 0.0  ;;  %v2676_v15 = vadd.f32 %v7940_v56, %v2637_v51  ;;  %v6146_v41 = vpop.f32.mrb[132].mxu0 }
 0x257   : > { %2781 = vst [vmem:[#allocation2 + $0x31] sm:$0xff] %v2709_v39  ;;  %v2710_v17 = vmax.f32 %v2678_v26, 0.0  ;;  %v2527_v40 = vadd.f32 %v6146_v41, %v7855_v53  ;;  %v2518_v11 = vpop.f32.mrb[133].mxu0 }
 0x258   : > { %2779 = vst [vmem:[#allocation2 + $0x19] sm:$0xff] %v2707_v47  ;;  %v2708_v28 = vmax.f32 %v2676_v15, 0.0  ;;  %v2519_v1 = vadd.f32 %v2518_v11, %v7846_v10  ;;  %v6147_v43 = vpop.f32.mrb[134].mxu0  ;;  %v6416_v11 = vld [vmem:[#allocation6 + $0x180] sm:$0xff]  }
 0x259   : > { %2782 = vst [vmem:[#allocation2 + $0x39] sm:$0xff] %v2710_v17  ;;  %v2642_v3 = vmul.f32 %v7932_v54, %v2527_v40  ;;  %v2530_v22 = vadd.f32 %v6147_v43, %v7857_v36  ;;  %v2521_v8 = vpop.f32.mrb[135].mxu0 }
 0x25a   : > { %2780 = vst [vmem:[#allocation2 + $0x21] sm:$0xff] %v2708_v28  ;;  %v2640_v27 = vmul.f32 %v7932_v54, %v2519_v1  ;;  %v2522_v12 = vadd.f32 %v2521_v8, %v7851_v34 }
 0x25b   : > { %v2681_v53 = vadd.f32 %v7940_v56, %v2642_v3  ;;  %v2643_v35 = vmul.f32 %v7932_v54, %v2530_v22  ;;  %v6419_v3 = vld [vmem:[#allocation6 + $0x1c8] sm:$0xff]  }
 0x25c   : > { %v2679_v60 = vadd.f32 %v7940_v56, %v2640_v27  ;;  %v2641_v10 = vmul.f32 %v7932_v54, %v2522_v12  ;;  %v7986_v12 = vld [vmem:[#allocation6 + $0x200] sm:$0xff]  }
 0x25d   : > { %v2713_v4 = vmax.f32 %v2681_v53, 0.0  ;;  %v2682_v46 = vadd.f32 %v7940_v56, %v2643_v35  ;;  %6172 = vmatprep.subr.bf16.mxu1 %v7986_v12 }
 0x25e   : > { %v2711_v58 = vmax.f32 %v2679_v60, 0.0  ;;  %v2680_v36 = vadd.f32 %v7940_v56, %v2641_v10  ;;  %v6150_v20 = vpop.f32.mrb[136].mxu0  ;;  %v2817_v55 = vld [vmem:[#allocation2 + $0x30] sm:$0xff] }
 0x25f   : > { %2785 = vst [vmem:[#allocation2 + $0x61] sm:$0xff] %v2713_v4  ;;  %v2714_v50 = vmax.f32 %v2682_v46, 0.0  ;;  %v2543_v7 = vadd.f32 %v6150_v20, %v7867_v21  ;;  %v2534_v34 = vpop.f32.mrb[137].mxu0  ;;  %v2814_v26 = vld [vmem:[#allocation2 + $0x18] sm:$0xff] }
 0x260   : > { %2783 = vst [vmem:[#allocation2 + $0x49] sm:$0xff] %v2711_v58  ;;  %v2712_v6 = vmax.f32 %v2680_v36, 0.0  ;;  %v2535_v13 = vadd.f32 %v2534_v34, %v7861_v29  ;;  %v6151_v63 = vpop.f32.mrb[138].mxu0  ;;  %v2818_v24 = vld [vmem:[#allocation2 + $0x38] sm:$0xff]  ;;  %v2819_v38 = vld [vmem:[#allocation2 + $0x40] sm:$0x3] }
 0x261   : > { %2786 = vst [vmem:[#allocation2 + $0x69] sm:$0xff] %v2714_v50  ;;  %v2646_v51 = vmul.f32 %v7932_v54, %v2543_v7  ;;  %v2546_v61 = vadd.f32 %v6151_v63, %v7869_v42  ;;  %v2537_v39 = vpop.f32.mrb[139].mxu0  ;;  %v2815_v44 = vld [vmem:[#allocation2 + $0x20] sm:$0xff]  ;;  %v7969_v47 = vpack.c.bf16 %v2818_v24, %v2817_v55  ;;  %v2816_v21 = vld [vmem:[#allocation2 + $0x28] sm:$0x3]  ;;  %v7971_v15 = vpack.c.bf16 %v2819_v38, %v2819_v38  ;;  %v6420_v50 = vld [vmem:[#allocation6 + $0x188] sm:$0xff]  }
 0x262   : > { %2784 = vst [vmem:[#allocation2 + $0x51] sm:$0xff] %v2712_v6  ;;  %v2644_v29 = vmul.f32 %v7932_v54, %v2535_v13  ;;  %v2538_v41 = vadd.f32 %v2537_v39, %v7863_v30  ;;  %v7975_v17 = vpack.c.bf16 %v2815_v44, %v2814_v26  ;;  %v2882_v40 = vpack.c.bf16 %v2816_v21, %v2816_v21 }
 0x263   : > { %v2685_v28 = vadd.f32 %v7940_v56, %v2646_v51  ;;  %v2647_v42 = vmul.f32 %v7932_v54, %v2546_v61  ;;  %v2923_v1 = vshrl.u32 %v7969_v47, 16  ;;  %v2925_v43 = vshll.u32 %v7969_v47, 16  ;;  %v6423_v61 = vld [vmem:[#allocation6 + $0x1d0] sm:$0xff]  }
 0x264   : > { %v2683_v22 = vadd.f32 %v7940_v56, %v2644_v29  ;;  %v2645_v8 = vmul.f32 %v7932_v54, %v2538_v41  ;;  %4014 = vmatprep.mubr.bf16.mxu0 %v7975_v17  ;;  %v2911_v30 = vshrl.u32 %v7975_v17, 16  ;;  %v2913_v27 = vshll.u32 %v7975_v17, 16 }
 0x265   : > { %v2717_v53 = vmax.f32 %v2685_v28, 0.0  ;;  %v2686_v35 = vadd.f32 %v7940_v56, %v2647_v42  ;;  %4015 = vmatmul.mubr.bf16.vlgmr.msra.gmra.mrb[160].mxu0 %v7849_v45  ;;  %v2918_v60 = vshll.u32 %v2882_v40, 16  ;;  %v2927_v10 = vrot.slane %v2925_v43, 1 }
 0x266   : > { %v2715_v4 = vmax.f32 %v2683_v22, 0.0  ;;  %v2684_v46 = vadd.f32 %v7940_v56, %v2645_v8  ;;  %v6154_v58 = vpop.f32.mrb[140].mxu0  ;;  %4022 = vmatprep.mubr.bf16.mxu0 %v7969_v47  ;;  %v2915_v36 = vrot.slane %v2913_v27, 1  ;;  %v2930_v20 = vshll.u32 %v7971_v15, 16  ;;  %5989 = vmatpush3.bf16.msra.mxu0 %v6416_v11 }
 0x267   : > { %2789 = vst [vmem:[#allocation2 + $0x91] sm:$0xff] %v2717_v53  ;;  %v2718_v7 = vmax.f32 %v2686_v35, 0.0  ;;  %v2559_v34 = vadd.f32 %v6154_v58, %v7879_v31  ;;  %v2550_v6 = vpop.f32.mrb[141].mxu0  ;;  %v2920_v13 = vrot.slane %v2918_v60, 1  ;;  %v2928_v45 = vor.u32 %v2927_v10, %v2923_v1  ;;  %5990 = vmatprep.subr.bf16.mxu0 %v6419_v3  ;;  %v2820_v1 = vld [vmem:[#allocation2 + $0x48] sm:$0xff]  ;;  %v2823_v58 = vld [vmem:[#allocation2 + $0x60] sm:$0xff] }
 0x268   : > { %2787 = vst [vmem:[#allocation2 + $0x79] sm:$0xff] %v2715_v4  ;;  %v2716_v63 = vmax.f32 %v2684_v46, 0.0  ;;  %v2551_v55 = vadd.f32 %v2550_v6, %v7873_v0  ;;  %v6155_v24 = vpop.f32.mrb[142].mxu0  ;;  %v2916_v38 = vor.u32 %v2915_v36, %v2911_v30  ;;  %v2932_v51 = vrot.slane %v2930_v20, 1  ;;  %v2824_v35 = vld [vmem:[#allocation2 + $0x68] sm:$0xff] }
 0x269   : > { %2790 = vst [vmem:[#allocation2 + $0x99] sm:$0xff] %v2718_v7  ;;  %v2650_v39 = vmul.f32 %v7932_v54, %v2559_v34  ;;  %v2562_v26 = vadd.f32 %v6155_v24, %v7881_v32  ;;  %v2553_v31 = vpop.f32.mrb[143].mxu0  ;;  %v3142_v44 = vrot.slane %v7975_v17, 1  ;;  %v3143_v21 = vrot.slane %v2882_v40, 1  ;;  %v2821_v29 = vld [vmem:[#allocation2 + $0x50] sm:$0xff]  ;;  %v6424_v32 = vld [vmem:[#allocation6 + $0x190] sm:$0xff]  }
 0x26a   : > { %v2822_v41 = vld [vmem:[#allocation2 + $0x58] sm:$0x3]  ;;  %2788 = vst [vmem:[#allocation2 + $0x81] sm:$0xff] %v2716_v63  ;;  %v2648_v11 = vmul.f32 %v7932_v54, %v2551_v55  ;;  %v2554_v0 = vadd.f32 %v2553_v31, %v7875_v9  ;;  %v8002_v28 = vsel %vm2897_vm6, %v2916_v38, %v2920_v13  ;;  %v8005_v42 = vsel %vm2897_vm6, %v2928_v45, %v2932_v51  ;;  %v6427_v9 = vld [vmem:[#allocation6 + $0x1d8] sm:$0xff]   ;;  %v2825_v6 = vld [vmem:[#allocation2 + $0x70] sm:$0x3] }
 0x26b   : > { %5991 = vmatpush3.bf16.msra.mxu0 %v6420_v50  ;;  %v2689_v43 = vadd.f32 %v7940_v56, %v2650_v39  ;;  %v2651_v40 = vmul.f32 %v7932_v54, %v2562_v26  ;;  %3861 = vmatprep.mubr.bf16.mxu1 %v8002_v28  ;;  %v8011_v3 = vsel %vm3138_vm7, %v3142_v44, %v3143_v21  ;;  %v3145_v53 = vrot.slane %v7969_v47, 1  ;;  %v6428_v36 = vld [vmem:[#allocation6 + $0x198] sm:$0xff]   ;;  %v6431_v38 = vld [vmem:[#allocation6 + $0x1e0] sm:$0xff]  }
 0x26c   : > { %v8013_v22 = vpack.c.bf16 %v2821_v29, %v2820_v1  ;;  %v2687_v8 = vadd.f32 %v7940_v56, %v2648_v11  ;;  %v2649_v30 = vmul.f32 %v7932_v54, %v2554_v0  ;;  %3862 = vmatmul.mubr.bf16.gmra.mrb[132].mxu1 %v7975_v17  ;;  %v8018_v27 = vpack.c.bf16 %v2822_v41, %v2822_v41 }
 0x26d   : > { %5992 = vmatprep.subr.bf16.mxu0 %v6423_v61  ;;  %v2721_v60 = vmax.f32 %v2689_v43, 0.0  ;;  %v2690_v10 = vadd.f32 %v7940_v56, %v2651_v40  ;;  %3869 = vmatprep.mubr.bf16.mxu1 %v8005_v42  ;;  %v3146_v34 = vrot.slane %v7971_v15, 1  ;;  %v8031_v24 = vpack.c.bf16 %v2824_v35, %v2823_v58  ;;  %v6433_v43 = vld [vmem:[#allocation6 + $0x1e8] sm:$0xff]  }
 0x26e   : > { %4023 = vmatmul.mubr.bf16.gmra.mrb[164].mxu0 %v8011_v3  ;;  %v2935_v4 = vshrl.u32 %v8013_v22, 16  ;;  %v2937_v46 = vshll.u32 %v8013_v22, 16  ;;  %v2719_v17 = vmax.f32 %v2687_v8, 0.0  ;;  %v2688_v20 = vadd.f32 %v7940_v56, %v2649_v30  ;;  %v6158_v50 = vpop.f32.mrb[144].mxu0 }
 0x26f   : > { %4030 = vmatprep.mubr.bf16.mxu0 %v8013_v22  ;;  %v2942_v7 = vshll.u32 %v8018_v27, 16  ;;  %5993 = vmatpush3.bf16.msra.mxu0 %v6424_v32  ;;  %2793 = vst [vmem:[#allocation2 + $0xc1] sm:$0xff] %v2721_v60  ;;  %v2722_v13 = vmax.f32 %v2690_v10, 0.0  ;;  %v2575_v45 = vadd.f32 %v6158_v50, %v7891_v16  ;;  %v2566_v63 = vpop.f32.mrb[145].mxu0  ;;  %v8036_v21 = vpack.c.bf16 %v2825_v6, %v2825_v6  ;;  %v2826_v10 = vld [vmem:[#allocation2 + $0x78] sm:$0xff] }
 0x270   : > { %v2939_v55 = vrot.slane %v2937_v46, 1  ;;  %5994 = vmatprep.subr.bf16.mxu0 %v6427_v9  ;;  %2791 = vst [vmem:[#allocation2 + $0xa9] sm:$0xff] %v2719_v17  ;;  %v2720_v51 = vmax.f32 %v2688_v20, 0.0  ;;  %v2567_v61 = vadd.f32 %v2566_v63, %v7885_v59  ;;  %v6159_v39 = vpop.f32.mrb[146].mxu0  ;;  %v2949_v11 = vshll.u32 %v8031_v24, 16  ;;  %v6432_v59 = vld [vmem:[#allocation6 + $0x1a0] sm:$0xff]  }
 0x271   : > { %2794 = vst [vmem:[#allocation2 + $0xc9] sm:$0xff] %v2722_v13  ;;  %v2654_v15 = vmul.f32 %v7932_v54, %v2575_v45  ;;  %v2578_v26 = vadd.f32 %v6159_v39, %v7893_v49  ;;  %v2569_v31 = vpop.f32.mrb[147].mxu0  ;;  %v2944_v41 = vrot.slane %v2942_v7, 1  ;;  %v8044_v49 = vsel %vm3138_vm7, %v3145_v53, %v3146_v34  ;;  %v2827_v32 = vld [vmem:[#allocation2 + $0x80] sm:$0xff]  ;;  %v6434_v20 = vld [vmem:[#allocation6 + $0x1a8] sm:$0xff]  }
 0x272   : > { %v2940_v44 = vor.u32 %v2939_v55, %v2935_v4  ;;  %2792 = vst [vmem:[#allocation2 + $0xb1] sm:$0xff] %v2720_v51  ;;  %v2652_v16 = vmul.f32 %v7932_v54, %v2567_v61  ;;  %v2570_v29 = vadd.f32 %v2569_v31, %v7887_v57  ;;  %v2951_v8 = vrot.slane %v2949_v11, 1  ;;  %v2828_v45 = vld [vmem:[#allocation2 + $0x88] sm:$0x3]  ;;  %v6435_v63 = vld [vmem:[#allocation6 + $0x1f0] sm:$0xff]   ;;  %v2830_v31 = vld [vmem:[#allocation2 + $0x98] sm:$0xff] }
 0x273   : > { %5995 = vmatpush3.bf16.msra.mxu0 %v6428_v36  ;;  %v2693_v0 = vadd.f32 %v7940_v56, %v2654_v15  ;;  %v2655_v1 = vmul.f32 %v7932_v54, %v2578_v26  ;;  %v2947_v53 = vshrl.u32 %v8031_v24, 16  ;;  %v2954_v60 = vshll.u32 %v8036_v21, 16 }
 0x274   : > { %5996 = vmatprep.subr.bf16.mxu0 %v6431_v38  ;;  %v2691_v40 = vadd.f32 %v7940_v56, %v2652_v16  ;;  %v2653_v9 = vmul.f32 %v7932_v54, %v2570_v29  ;;  %3870 = vmatmul.mubr.bf16.gmra.mrb[136].mxu1 %v7969_v47  ;;  %v8050_v57 = vsel %vm2897_vm6, %v2940_v44, %v2944_v41  ;;  %v3148_v36 = vrot.slane %v8013_v22, 1 }
 0x275   : > { %v2725_v30 = vmax.f32 %v2693_v0, 0.0  ;;  %v2694_v35 = vadd.f32 %v7940_v56, %v2655_v1  ;;  %3877 = vmatprep.mubr.bf16.mxu1 %v8050_v57  ;;  %v8060_v17 = vpack.c.bf16 %v2827_v32, %v2826_v10  ;;  %v2952_v6 = vor.u32 %v2951_v8, %v2947_v53  ;;  %v6437_v0 = vld [vmem:[#allocation6 + $0x1f8] sm:$0xff]  }
 0x276   : > { %4031 = vmatmul.mubr.bf16.gmra.mrb[168].mxu0 %v8044_v49  ;;  %v2723_v4 = vmax.f32 %v2691_v40, 0.0  ;;  %v2692_v46 = vadd.f32 %v7940_v56, %v2653_v9  ;;  %v6162_v58 = vpop.f32.mrb[148].mxu0  ;;  %v3149_v13 = vrot.slane %v8018_v27, 1  ;;  %v2956_v26 = vrot.slane %v2954_v60, 1 }
 0x277   : > { %4038 = vmatprep.mubr.bf16.mxu0 %v8031_v24  ;;  %5997 = vmatpush3.bf16.msra.mxu0 %v6432_v59  ;;  %2797 = vst [vmem:[#allocation2 + $0xf1] sm:$0xff] %v2725_v30  ;;  %v2726_v50 = vmax.f32 %v2694_v35, 0.0  ;;  %v2591_v7 = vadd.f32 %v6162_v58, %v7903_v52  ;;  %v2582_v34 = vpop.f32.mrb[149].mxu0  ;;  %v2961_v52 = vshll.u32 %v8060_v17, 16  ;;  %v8070_v16 = vpack.c.bf16 %v2828_v45, %v2828_v45  ;;  %v2829_v59 = vld [vmem:[#allocation2 + $0x90] sm:$0xff]  ;;  %v6438_v30 = vld [vmem:[#allocation6 + $0x1b8] sm:$0xff]  }
 0x278   : > { %5998 = vmatprep.subr.bf16.mxu0 %v6433_v43  ;;  %2795 = vst [vmem:[#allocation2 + $0xd9] sm:$0xff] %v2723_v4  ;;  %v2724_v55 = vmax.f32 %v2692_v46, 0.0  ;;  %v2583_v38 = vadd.f32 %v2582_v34, %v7897_v48  ;;  %v6163_v51 = vpop.f32.mrb[150].mxu0  ;;  %v6436_v48 = vld [vmem:[#allocation6 + $0x1b0] sm:$0xff]   ;;  %v8078_v11 = vsel %vm3138_vm7, %v3148_v36, %v3149_v13  ;;  %v8083_v43 = vpack.c.bf16 %v2830_v31, %v2829_v59 }
 0x279   : > { %2798 = vst [vmem:[#allocation2 + $0xf9] sm:$0xff] %v2726_v50  ;;  %v2658_v61 = vmul.f32 %v7932_v54, %v2591_v7  ;;  %v2594_v39 = vadd.f32 %v6163_v51, %v7905_v25  ;;  %v2585_v15 = vpop.f32.mrb[151].mxu0  ;;  %v8075_v25 = vsel %vm2897_vm6, %v2952_v6, %v2956_v26  ;;  %v2963_v32 = vrot.slane %v2961_v52, 1  ;;  %v2831_v46 = vld [vmem:[#allocation2 + $0xa0] sm:$0x3] }
 0x27a   : > { %2796 = vst [vmem:[#allocation2 + $0xe1] sm:$0xff] %v2724_v55  ;;  %v2656_v27 = vmul.f32 %v7932_v54, %v2583_v38  ;;  %v2586_v44 = vadd.f32 %v2585_v15, %v7899_v33  ;;  %v2959_v8 = vshrl.u32 %v8060_v17, 16  ;;  %v2966_v10 = vshll.u32 %v8070_v16, 16 }
 0x27b   : > { %5999 = vmatpush3.bf16.msra.mxu0 %v6434_v20  ;;  %v2697_v29 = vadd.f32 %v7940_v56, %v2658_v61  ;;  %v2659_v41 = vmul.f32 %v7932_v54, %v2594_v39  ;;  %v3151_v4 = vrot.slane %v8031_v24, 1  ;;  %v3152_v50 = vrot.slane %v8036_v21, 1 }
 0x27c   : > { %6000 = vmatprep.subr.bf16.mxu0 %v6435_v63  ;;  %v2695_v1 = vadd.f32 %v7940_v56, %v2656_v27  ;;  %v2657_v33 = vmul.f32 %v7932_v54, %v2586_v44  ;;  %3878 = vmatmul.mubr.bf16.gmra.mrb[140].mxu1 %v8013_v22  ;;  %v2973_v7 = vshll.u32 %v8083_v43, 16  ;;  %v2964_v45 = vor.u32 %v2963_v32, %v2959_v8 }
 0x27d   : > { %v2729_v40 = vmax.f32 %v2697_v29, 0.0  ;;  %v2698_v9 = vadd.f32 %v7940_v56, %v2659_v41  ;;  %3885 = vmatprep.mubr.bf16.mxu1 %v8075_v25  ;;  %v8099_v51 = vpack.c.bf16 %v2831_v46, %v2831_v46  ;;  %v2968_v39 = vrot.slane %v2966_v10, 1 }
 0x27e   : > { %4039 = vmatmul.mubr.bf16.gmra.mrb[172].mxu0 %v8078_v11  ;;  %v2727_v35 = vmax.f32 %v2695_v1, 0.0  ;;  %v2696_v53 = vadd.f32 %v7940_v56, %v2657_v33  ;;  %v6166_v60 = vpop.f32.mrb[152].mxu0  ;;  %v8106_v26 = vsel %vm3138_vm7, %v3151_v4, %v3152_v50  ;;  %v2975_v52 = vrot.slane %v2973_v7, 1 }
 0x27f   : > { %4046 = vmatprep.mubr.bf16.mxu0 %v8060_v17  ;;  %6001 = vmatpush3.bf16.msra.mxu0 %v6436_v48  ;;  %2801 = vst [vmem:[#allocation2 + $0x121] sm:$0xff] %v2729_v40  ;;  %v2730_v58 = vmax.f32 %v2698_v9, 0.0  ;;  %v2607_v36 = vadd.f32 %v6166_v60, %v7915_v5  ;;  %v2598_v20 = vpop.f32.mrb[153].mxu0  ;;  %v2833_v5 = vld [vmem:[#allocation2 + $0xb0] sm:$0xff]  ;;  %v8112_v44 = vsel %vm2897_vm6, %v2964_v45, %v2968_v39  ;;  %v2971_v41 = vshrl.u32 %v8083_v43, 16 }
 0x280   : > { %6002 = vmatprep.subr.bf16.mxu0 %v6437_v0  ;;  %2799 = vst [vmem:[#allocation2 + $0x109] sm:$0xff] %v2727_v35  ;;  %v2728_v34 = vmax.f32 %v2696_v53, 0.0  ;;  %v2599_v6 = vadd.f32 %v2598_v20, %v7909_v19  ;;  %v6167_v13 = vpop.f32.mrb[154].mxu0  ;;  %v2978_v59 = vshll.u32 %v8099_v51, 16  ;;  %v3154_v32 = vrot.slane %v8060_v17, 1 }
 0x281   : > { %2802 = vst [vmem:[#allocation2 + $0x129] sm:$0xff] %v2730_v58  ;;  %v2662_v63 = vmul.f32 %v7932_v54, %v2607_v36  ;;  %v2610_v55 = vadd.f32 %v6167_v13, %v7917_v18  ;;  %v2601_v38 = vpop.f32.mrb[155].mxu0  ;;  %v2832_v18 = vld [vmem:[#allocation2 + $0xa8] sm:$0xff]  ;;  %v3155_v35 = vrot.slane %v8070_v16, 1  ;;  %v2834_v53 = vld [vmem:[#allocation2 + $0xb8] sm:$0x3] }
 0x282   : > { %2800 = vst [vmem:[#allocation2 + $0x111] sm:$0xff] %v2728_v34  ;;  %v2660_v21 = vmul.f32 %v7932_v54, %v2599_v6  ;;  %v2602_v61 = vadd.f32 %v2601_v38, %v7911_v2  ;;  %v8114_v2 = vpack.c.bf16 %v2833_v5, %v2832_v18  ;;  %v2980_v50 = vrot.slane %v2978_v59, 1  ;;  %v2837_v18 = vld [vmem:[#allocation2 + $0xd0] sm:$0x3] }
 0x283   : > { %6003 = vmatpush3.bf16.msra.mxu0 %v6438_v30  ;;  %v2701_v19 = vadd.f32 %v7940_v56, %v2662_v63  ;;  %v2663_v15 = vmul.f32 %v7932_v54, %v2610_v55  ;;  %v2976_v30 = vor.u32 %v2975_v52, %v2971_v41  ;;  %v2888_v34 = vpack.c.bf16 %v2834_v53, %v2834_v53  ;;  %v2839_v41 = vld [vmem:[#allocation2 + $0xe0] sm:$0xff] }
 0x284   : > { %v2699_v31 = vadd.f32 %v7940_v56, %v2660_v21  ;;  %v2661_v27 = vmul.f32 %v7932_v54, %v2602_v61  ;;  %3886 = vmatmul.mubr.bf16.gmra.mrb[144].mxu1 %v8031_v24  ;;  %v2985_v46 = vshll.u32 %v8114_v2, 16  ;;  %v8138_v45 = vsel %vm3138_vm7, %v3154_v32, %v3155_v35 }
 0x285   : > { %v2733_v48 = vmax.f32 %v2701_v19, 0.0  ;;  %v2702_v29 = vadd.f32 %v7940_v56, %v2663_v15  ;;  %3893 = vmatprep.mubr.bf16.mxu1 %v8112_v44  ;;  %v8135_v13 = vsel %vm2897_vm6, %v2976_v30, %v2980_v50  ;;  %v2983_v19 = vshrl.u32 %v8114_v2, 16 }
 0x286   : > { %4047 = vmatmul.mubr.bf16.gmra.mrb[176].mxu0 %v8106_v26  ;;  %v2731_v0 = vmax.f32 %v2699_v31, 0.0  ;;  %v2700_v1 = vadd.f32 %v7940_v56, %v2661_v27  ;;  %v6170_v33 = vpop.f32.mrb[156].mxu0  ;;  %v2987_v38 = vrot.slane %v2985_v46, 1  ;;  %v3157_v52 = vrot.slane %v8083_v43, 1 }
 0x287   : > { %4054 = vmatprep.mubr.bf16.mxu0 %v8083_v43  ;;  %2805 = vst [vmem:[#allocation2 + $0x151] sm:$0xff] %v2733_v48  ;;  %v2734_v40 = vmax.f32 %v2702_v29, 0.0  ;;  %v2623_v9 = vadd.f32 %v6170_v33, %v7927_v37  ;;  %v2614_v8 = vpop.f32.mrb[157].mxu0  ;;  %v2836_v37 = vld [vmem:[#allocation2 + $0xc8] sm:$0xff]  ;;  %v3158_v48 = vrot.slane %v8099_v51, 1  ;;  %v2889_v59 = vpack.c.bf16 %v2837_v18, %v2837_v18 }
 0x288   : > { %2803 = vst [vmem:[#allocation2 + $0x139] sm:$0xff] %v2731_v0  ;;  %v2732_v60 = vmax.f32 %v2700_v1, 0.0  ;;  %v2615_v10 = vadd.f32 %v2614_v8, %v7921_v62  ;;  %v6171_v4 = vpop.f32.mrb[158].mxu0  ;;  %v2988_v27 = vor.u32 %v2987_v38, %v2983_v19  ;;  %v2838_v0 = vld [vmem:[#allocation2 + $0xd8] sm:$0xff]  ;;  %v2840_v8 = vld [vmem:[#allocation2 + $0xe8] sm:$0x3] }
 0x289   : > { %2806 = vst [vmem:[#allocation2 + $0x159] sm:$0xff] %v2734_v40  ;;  %v2666_v58 = vmul.f32 %v7932_v54, %v2623_v9  ;;  %v2626_v36 = vadd.f32 %v6171_v4, %v7934_v14  ;;  %v2617_v20 = vpop.f32.mrb[159].mxu0  ;;  %v2835_v14 = vld [vmem:[#allocation2 + $0xc0] sm:$0xff]  ;;  %v8159_v33 = vsel %vm3138_vm7, %v3157_v52, %v3158_v48  ;;  %v8161_v40 = vpack.c.bf16 %v2839_v41, %v2838_v0  ;;  %v2846_v18 = vld [vmem:[#allocation2 + $0x118] sm:$0x3]  ;;  %v2848_v41 = vld [vmem:[#allocation2 + $0x128] sm:$0xff] }
 0x28a   : > { %2804 = vst [vmem:[#allocation2 + $0x141] sm:$0xff] %v2732_v60  ;;  %v2664_v7 = vmul.f32 %v7932_v54, %v2615_v10  ;;  %v2618_v16 = vadd.f32 %v2617_v20, %v7923_v23  ;;  %v8143_v23 = vpack.c.bf16 %v2836_v37, %v2835_v14  ;;  %v3002_v9 = vshll.u32 %v2889_v59, 16  ;;  %v2842_v10 = vld [vmem:[#allocation2 + $0xf8] sm:$0xff]  ;;  %v2847_v0 = vld [vmem:[#allocation2 + $0x120] sm:$0xff] }
 0x28b   : > { %v2705_v6 = vadd.f32 %v7940_v56, %v2666_v58  ;;  %v2667_v62 = vmul.f32 %v7932_v54, %v2626_v36  ;;  %v3160_v35 = vrot.slane %v8114_v2, 1  ;;  %v3161_v53 = vrot.slane %v2888_v34, 1  ;;  %v2841_v58 = vld [vmem:[#allocation2 + $0xf0] sm:$0xff] }
 0x28c   : > { %v2703_v63 = vadd.f32 %v7940_v56, %v2664_v7  ;;  %v2665_v55 = vmul.f32 %v7932_v54, %v2618_v16  ;;  %3894 = vmatmul.mubr.bf16.gmra.mrb[148].mxu1 %v8060_v17  ;;  %v2990_v54 = vshll.u32 %v2888_v34, 16  ;;  %v2997_v29 = vshll.u32 %v8143_v23, 16  ;;  %v2843_v34 = vld [vmem:[#allocation2 + $0x100] sm:$0x3] }
 0x28d   : > { %v2737_v5 = vmax.f32 %v2705_v6, 0.0  ;;  %v2706_v21 = vadd.f32 %v7940_v56, %v2667_v62  ;;  %3901 = vmatprep.mubr.bf16.mxu1 %v8135_v13  ;;  %v2995_v51 = vshrl.u32 %v8143_v23, 16  ;;  %v3009_v60 = vshll.u32 %v8161_v40, 16 }
 0x28e   : > { %4055 = vmatmul.mubr.bf16.gmra.mrb[180].mxu0 %v8138_v45  ;;  %v2735_v61 = vmax.f32 %v2703_v63, 0.0  ;;  %v2704_v39 = vadd.f32 %v7940_v56, %v2665_v55  ;;  %v2992_v56 = vrot.slane %v2990_v54, 1  ;;  %v2999_v32 = vrot.slane %v2997_v29, 1  ;;  %v2845_v55 = vld [vmem:[#allocation2 + $0x110] sm:$0xff] }
 0x28f   : > { %4062 = vmatprep.mubr.bf16.mxu0 %v8114_v2  ;;  %2809 = vst [vmem:[#allocation2 + $0x181] sm:$0xff] %v2737_v5  ;;  %v2738_v15 = vmax.f32 %v2706_v21, 0.0  ;;  %v3004_v4 = vrot.slane %v3002_v9, 1  ;;  %v2890_v46 = vpack.c.bf16 %v2840_v8, %v2840_v8  ;;  %v8174_v20 = vsel %vm3138_vm7, %v3160_v35, %v3161_v53  ;;  %v2844_v21 = vld [vmem:[#allocation2 + $0x108] sm:$0xff]  ;;  %v2849_v53 = vld [vmem:[#allocation2 + $0x130] sm:$0x3] }
 0x290   : > { %2807 = vst [vmem:[#allocation2 + $0x169] sm:$0xff] %v2735_v61  ;;  %v2736_v31 = vmax.f32 %v2704_v39, 0.0  ;;  %v8156_v1 = vsel %vm2897_vm6, %v2988_v27, %v2992_v56  ;;  %v3000_v30 = vor.u32 %v2999_v32, %v2995_v51  ;;  %v3011_v50 = vrot.slane %v3009_v60, 1 }
 0x291   : > { %2810 = vst [vmem:[#allocation2 + $0x189] sm:$0xff] %v2738_v15  ;;  %v8176_v37 = vpack.c.bf16 %v2842_v10, %v2841_v58  ;;  %v3007_v7 = vshrl.u32 %v8161_v40, 16  ;;  %v3014_v16 = vshll.u32 %v2890_v46, 16  ;;  %v3163_v62 = vrot.slane %v8143_v23, 1  ;;  %v2851_v58 = vld [vmem:[#allocation2 + $0x140] sm:$0xff] }
 0x292   : > { %2808 = vst [vmem:[#allocation2 + $0x171] sm:$0xff] %v2736_v31  ;;  %v8171_v36 = vsel %vm2897_vm6, %v3000_v30, %v3004_v4  ;;  %v3164_v14 = vrot.slane %v2889_v59, 1  ;;  %v2891_v5 = vpack.c.bf16 %v2843_v34, %v2843_v34  ;;  %v8191_v54 = vpack.c.bf16 %v2845_v55, %v2844_v21 }
 0x293   : > { %v3012_v6 = vor.u32 %v3011_v50, %v3007_v7  ;;  %v3021_v63 = vshll.u32 %v8176_v37, 16  ;;  %v3016_v38 = vrot.slane %v3014_v16, 1  ;;  %v3019_v15 = vshrl.u32 %v8176_v37, 16  ;;  %v2850_v16 = vld [vmem:[#allocation2 + $0x138] sm:$0xff] }
 0x294   : > { %3902 = vmatmul.mubr.bf16.gmra.mrb[152].mxu1 %v8083_v43  ;;  %v8189_v39 = vsel %vm3138_vm7, %v3163_v62, %v3164_v14  ;;  %v3026_v52 = vshll.u32 %v2891_v5, 16  ;;  %v3166_v27 = vrot.slane %v8161_v40, 1  ;;  %v3167_v48 = vrot.slane %v2890_v46, 1 }
 0x295   : > { %3909 = vmatprep.mubr.bf16.mxu1 %v8156_v1  ;;  %v8186_v61 = vsel %vm2897_vm6, %v3012_v6, %v3016_v38  ;;  %v3023_v19 = vrot.slane %v3021_v63, 1  ;;  %v3033_v29 = vshll.u32 %v8191_v54, 16  ;;  %v2892_v59 = vpack.c.bf16 %v2846_v18, %v2846_v18 }
 0x296   : > { %4063 = vmatmul.mubr.bf16.gmra.mrb[184].mxu0 %v8159_v33  ;;  %v3028_v56 = vrot.slane %v3026_v52, 1  ;;  %v8204_v51 = vsel %vm3138_vm7, %v3166_v27, %v3167_v48  ;;  %v8206_v8 = vpack.c.bf16 %v2848_v41, %v2847_v0  ;;  %v3031_v30 = vshrl.u32 %v8191_v54, 16  ;;  %v2852_v52 = vld [vmem:[#allocation2 + $0x148] sm:$0x3]  ;;  %v2854_v41 = vld [vmem:[#allocation2 + $0x158] sm:$0xff] }
 0x297   : > { %4070 = vmatprep.mubr.bf16.mxu0 %v8143_v23  ;;  %v3024_v31 = vor.u32 %v3023_v19, %v3019_v15  ;;  %v3035_v9 = vrot.slane %v3033_v29, 1  ;;  %v3038_v35 = vshll.u32 %v2892_v59, 16  ;;  %v3169_v10 = vrot.slane %v8176_v37, 1 }
 0x298   : > { %v3170_v4 = vrot.slane %v2891_v5, 1  ;;  %v3045_v46 = vshll.u32 %v8206_v8, 16  ;;  %v2893_v7 = vpack.c.bf16 %v2849_v53, %v2849_v53  ;;  %v8221_v14 = vpack.c.bf16 %v2851_v58, %v2850_v16 }
 0x299   : > { %v8201_v32 = vsel %vm2897_vm6, %v3024_v31, %v3028_v56  ;;  %v3036_v60 = vor.u32 %v3035_v9, %v3031_v30  ;;  %v3040_v50 = vrot.slane %v3038_v35, 1  ;;  %v3043_v38 = vshrl.u32 %v8206_v8, 16  ;;  %v2853_v9 = vld [vmem:[#allocation2 + $0x150] sm:$0xff] }
 0x29a   : > { %v8219_v6 = vsel %vm3138_vm7, %v3169_v10, %v3170_v4  ;;  %v3047_v62 = vrot.slane %v3045_v46, 1  ;;  %v3050_v5 = vshll.u32 %v2893_v7, 16  ;;  %v3172_v15 = vrot.slane %v8191_v54, 1  ;;  %v2855_v4 = vld [vmem:[#allocation2 + $0x160] sm:$0x3] }
 0x29b   : > { %v8216_v34 = vsel %vm2897_vm6, %v3036_v60, %v3040_v50  ;;  %v3173_v27 = vrot.slane %v2892_v59, 1  ;;  %v3057_v48 = vshll.u32 %v8221_v14, 16  ;;  %v2894_v0 = vpack.c.bf16 %v2852_v52, %v2852_v52 }
 0x29c   : > { %3910 = vmatmul.mubr.bf16.gmra.mrb[156].mxu1 %v8114_v2  ;;  %v3048_v31 = vor.u32 %v3047_v62, %v3043_v38  ;;  %v3052_v56 = vrot.slane %v3050_v5, 1  ;;  %v8240_v60 = vpack.c.bf16 %v2854_v41, %v2853_v9  ;;  %v3055_v59 = vshrl.u32 %v8221_v14, 16  ;;  %v2857_v62 = vld [vmem:[#allocation2 + $0x170] sm:$0xff]  ;;  %v2856_v38 = vld [vmem:[#allocation2 + $0x168] sm:$0xff] }
 0x29d   : > { %3917 = vmatprep.mubr.bf16.mxu1 %v8171_v36  ;;  %v8238_v35 = vsel %vm3138_vm7, %v3172_v15, %v3173_v27  ;;  %v3059_v53 = vrot.slane %v3057_v48, 1  ;;  %v3062_v10 = vshll.u32 %v2894_v0, 16  ;;  %v3175_v58 = vrot.slane %v8206_v8, 1 }
 0x29e   : > { %4071 = vmatmul.mubr.bf16.gmra.mrb[188].mxu0 %v8174_v20  ;;  %v8235_v30 = vsel %vm2897_vm6, %v3048_v31, %v3052_v56  ;;  %v3176_v50 = vrot.slane %v2893_v7, 1  ;;  %v3069_v16 = vshll.u32 %v8240_v60, 16  ;;  %v8255_v52 = vpack.c.bf16 %v2857_v62, %v2856_v38  ;;  %v2858_v31 = vld [vmem:[#allocation2 + $0x178] sm:$0x3]  ;;  %v2860_v62 = vld [vmem:[#allocation2 + $0x188] sm:$0xff]  ;;  %v2859_v38 = vld [vmem:[#allocation2 + $0x180] sm:$0xff] }
 0x29f   : > { %4078 = vmatprep.mubr.bf16.mxu0 %v8161_v40  ;;  %v3060_v46 = vor.u32 %v3059_v53, %v3055_v59  ;;  %v3067_v7 = vshrl.u32 %v8240_v60, 16  ;;  %v3178_v48 = vrot.slane %v8221_v14, 1  ;;  %v3179_v41 = vrot.slane %v2894_v0, 1 }
 0x2a0   : > { %v3071_v15 = vrot.slane %v3069_v16, 1  ;;  %v3081_v56 = vshll.u32 %v8255_v52, 16  ;;  %v2896_v53 = vpack.c.bf16 %v2858_v31, %v2858_v31  ;;  %v3079_v0 = vshrl.u32 %v8255_v52, 16 }
 0x2a2   : > { %v3072_v27 = vor.u32 %v3071_v15, %v3067_v7  ;;  %v3185_v31 = vrot.slane %v2896_v53, 1 }
 0x2a4   : > { %3918 = vmatmul.mubr.bf16.gmra.mrb[160].mxu1 %v8143_v23 }
 0x2a5   : > { %3925 = vmatprep.mubr.bf16.mxu1 %v8186_v61 }
 0x2a6   : > { %4079 = vmatmul.mubr.bf16.gmra.mrb[192].mxu0 %v8189_v39 }
 0x2a7   : > { %4086 = vmatprep.mubr.bf16.mxu0 %v8176_v37 }
 0x2ac   : > { %3926 = vmatmul.mubr.bf16.gmra.mrb[164].mxu1 %v8161_v40 }
 0x2ad   : > { %3933 = vmatprep.mubr.bf16.mxu1 %v8201_v32 }
 0x2ae   : > { %4087 = vmatmul.mubr.bf16.gmra.mrb[196].mxu0 %v8204_v51 }
 0x2af   : > { %4094 = vmatprep.mubr.bf16.mxu0 %v8191_v54 }
 0x2b0   : > { %v5668_v63 = vpop.f32.mrb[128].mxu1 }
 0x2b1   : > { %v5669_v55 = vpop.f32.mrb[129].mxu1 }
 0x2b2   : > { %v8227_v21 = vadd.f32 %v5669_v55, %v5668_v63  ;;  %v5671_v19 = vpop.f32.mrb[130].mxu1  ;;  %v3064_v63 = vrot.slane %v3062_v10, 1  ;;  %v2895_v55 = vpack.c.bf16 %v2855_v4, %v2855_v4  ;;  %v8268_v10 = vsel %vm3138_vm7, %v3178_v48, %v3179_v41  ;;  %v6440_v48 = vld [vmem:[#allocation6 + $0x208] sm:$0xff]   ;;  %v6441_v41 = vld [vmem:[#allocation6 + $0x210] sm:$0xff]  }
 0x2b3   : > { %v5672_v18 = vpop.f32.mrb[131].mxu1  ;;  %v3083_v4 = vrot.slane %v3081_v56, 1  ;;  %v6442_v56 = vld [vmem:[#allocation6 + $0x218] sm:$0xff]  }
 0x2b4   : > { %3934 = vmatmul.mubr.bf16.gmra.mrb[168].mxu1 %v8176_v37  ;;  %v8231_v29 = vadd.f32 %v5672_v18, %v5671_v19  ;;  %v8250_v5 = vsel %vm2897_vm6, %v3060_v46, %v3064_v63  ;;  %v8253_v19 = vsel %vm3138_vm7, %v3175_v58, %v3176_v50  ;;  %v3074_v18 = vshll.u32 %v2895_v55, 16 }
 0x2b5   : > { %3941 = vmatprep.mubr.bf16.mxu1 %v8216_v34  ;;  %v3086_v46 = vshll.u32 %v2896_v53, 16  ;;  %v3084_v58 = vor.u32 %v3083_v4, %v3079_v0  ;;  %v3181_v50 = vrot.slane %v8240_v60, 1  ;;  %v3182_v16 = vrot.slane %v2895_v55, 1  ;;  %v2864_v4 = vld [vmem:[#allocation2 + $0x1a8] sm:$0x3] }
 0x2b6   : > { %4095 = vmatmul.mubr.bf16.gmra.mrb[200].mxu0 %v8219_v6  ;;  %v3076_v9 = vrot.slane %v3074_v18, 1  ;;  %v8282_v18 = vpack.c.bf16 %v2860_v62, %v2859_v38  ;;  %v3184_v55 = vrot.slane %v8255_v52, 1  ;;  %v8365_v62 = vpack.c.bf16 %v2864_v4, %v2864_v4 }
 0x2b7   : > { %4102 = vmatprep.mubr.bf16.mxu0 %v8206_v8  ;;  %v3088_v63 = vrot.slane %v3086_v46, 1  ;;  %v8280_v7 = vsel %vm3138_vm7, %v3181_v50, %v3182_v16 }
 0x2b8   : > { %v8265_v59 = vsel %vm2897_vm6, %v3072_v27, %v3076_v9  ;;  %v8290_v27 = vsel %vm3138_vm7, %v3184_v55, %v3185_v31  ;;  %v3206_v16 = vshrl.u32 %v8282_v18, 16 }
 0x2b9   : > { %v8277_v15 = vsel %vm2897_vm6, %v3084_v58, %v3088_v63 }
 0x2bc   : > { %3942 = vmatmul.mubr.bf16.gmra.mrb[172].mxu1 %v8191_v54 }
 0x2bd   : > { %3949 = vmatprep.mubr.bf16.mxu1 %v8235_v30 }
 0x2be   : > { %4103 = vmatmul.mubr.bf16.gmra.mrb[204].mxu0 %v8238_v35 }
 0x2bf   : > { %4110 = vmatprep.mubr.bf16.mxu0 %v8221_v14 }
 0x2c4   : > { %3950 = vmatmul.mubr.bf16.gmra.mrb[176].mxu1 %v8206_v8 }
 0x2c5   : > { %3957 = vmatprep.mubr.bf16.mxu1 %v8250_v5 }
 0x2c6   : > { %4111 = vmatmul.mubr.bf16.gmra.mrb[208].mxu0 %v8253_v19 }
 0x2c7   : > { %4118 = vmatprep.mubr.bf16.mxu0 %v8240_v60 }
 0x2cc   : > { %3958 = vmatmul.mubr.bf16.gmra.mrb[180].mxu1 %v8221_v14 }
 0x2cd   : > { %3965 = vmatprep.mubr.bf16.mxu1 %v8265_v59 }
 0x2ce   : > { %4119 = vmatmul.mubr.bf16.gmra.mrb[212].mxu0 %v8268_v10 }
 0x2cf   : > { %4126 = vmatprep.mubr.bf16.mxu0 %v8255_v52 }
 0x2d4   : > { %3966 = vmatmul.mubr.bf16.gmra.mrb[184].mxu1 %v8240_v60 }
 0x2d5   : > { %3973 = vmatprep.mubr.bf16.mxu1 %v8277_v15 }
 0x2d6   : > { %4127 = vmatmul.mubr.bf16.gmra.mrb[216].mxu0 %v8280_v7 }
 0x2d7   : > { %4134 = vmatprep.mubr.bf16.mxu0 %v8282_v18 }
 0x2dc   : > { %3974 = vmatmul.mubr.bf16.gmra.mrb[188].mxu1 %v8255_v52 }
 0x2dd   : > { %4175 = vmatprep.mubr.bf16.mxu1 %v8011_v3 }
 0x2de   : > { %4135 = vmatmul.mubr.bf16.gmra.mrb[220].mxu0 %v8290_v27 }
 0x2df   : > { %4336 = vmatprep.mubr.bf16.mxu0 %v8005_v42 }
 0x2e4   : > { %4176 = vmatmul.mubr.bf16.vlgmr.msra.gmra.mrb[192].mxu1 %v8002_v28  ;;  %v6445_v28 = vld [vmem:[#allocation6 + $0x230] sm:$0xff]  }
 0x2e5   : > { %4183 = vmatprep.mubr.bf16.mxu1 %v8044_v49  ;;  %6173 = vmatpush3.bf16.msra.mxu1 %v7986_v12  ;;  %v6444_v12 = vld [vmem:[#allocation6 + $0x228] sm:$0xff]  }
 0x2e6   : > { %4337 = vmatmul.mubr.bf16.vlgmr.msra.gmra.mrb[224].mxu0 %v7969_v47  ;;  %6174 = vmatprep.subr.bf16.mxu1 %v6440_v48  ;;  %v6443_v47 = vld [vmem:[#allocation6 + $0x220] sm:$0xff]  }
 0x2e7   : > { %4344 = vmatprep.mubr.bf16.mxu0 %v8050_v57 }
 0x2e9   : > { %6175 = vmatpush3.bf16.msra.mxu1 %v6440_v48 }
 0x2ea   : > { %6176 = vmatprep.subr.bf16.mxu1 %v6441_v41 }
 0x2ec   : > { %4184 = vmatmul.mubr.bf16.gmra.mrb[196].mxu1 %v8005_v42  ;;  %v6446_v42 = vld [vmem:[#allocation6 + $0x238] sm:$0xff]  }
 0x2ed   : > { %4191 = vmatprep.mubr.bf16.mxu1 %v8078_v11  ;;  %6177 = vmatpush3.bf16.msra.mxu1 %v6441_v41 }
 0x2ee   : > { %4345 = vmatmul.mubr.bf16.gmra.mrb[228].mxu0 %v8013_v22  ;;  %6178 = vmatprep.subr.bf16.mxu1 %v6442_v56 }
 0x2ef   : > { %4352 = vmatprep.mubr.bf16.mxu0 %v8075_v25 }
 0x2f1   : > { %6179 = vmatpush3.bf16.msra.mxu1 %v6442_v56 }
 0x2f2   : > { %6180 = vmatprep.subr.bf16.mxu1 %v6443_v47 }
 0x2f4   : > { %4192 = vmatmul.mubr.bf16.gmra.mrb[200].mxu1 %v8050_v57 }
 0x2f5   : > { %4199 = vmatprep.mubr.bf16.mxu1 %v8106_v26  ;;  %6181 = vmatpush3.bf16.msra.mxu1 %v6443_v47 }
 0x2f6   : > { %4353 = vmatmul.mubr.bf16.gmra.mrb[232].mxu0 %v8031_v24  ;;  %6182 = vmatprep.subr.bf16.mxu1 %v6444_v12 }
 0x2f7   : > { %4360 = vmatprep.mubr.bf16.mxu0 %v8112_v44 }
 0x2f9   : > { %6183 = vmatpush3.bf16.msra.mxu1 %v6444_v12 }
 0x2fa   : > { %6184 = vmatprep.subr.bf16.mxu1 %v6445_v28 }
 0x2fc   : > { %4200 = vmatmul.mubr.bf16.gmra.mrb[204].mxu1 %v8075_v25 }
 0x2fd   : > { %4207 = vmatprep.mubr.bf16.mxu1 %v8138_v45  ;;  %6185 = vmatpush3.bf16.msra.mxu1 %v6445_v28 }
 0x2fe   : > { %4361 = vmatmul.mubr.bf16.gmra.mrb[236].mxu0 %v8060_v17  ;;  %6186 = vmatprep.subr.bf16.mxu1 %v6446_v42 }
 0x2ff   : > { %4368 = vmatprep.mubr.bf16.mxu0 %v8135_v13 }
 0x301   : > { %6187 = vmatpush3.bf16.msra.mxu1 %v6446_v42 }
 0x304   : > { %4208 = vmatmul.mubr.bf16.gmra.mrb[208].mxu1 %v8112_v44 }
 0x305   : > { %4215 = vmatprep.mubr.bf16.mxu1 %v8159_v33 }
 0x306   : > { %4369 = vmatmul.mubr.bf16.gmra.mrb[240].mxu0 %v8083_v43 }
 0x307   : > { %4376 = vmatprep.mubr.bf16.mxu0 %v8156_v1 }
 0x30c   : > { %4216 = vmatmul.mubr.bf16.gmra.mrb[212].mxu1 %v8135_v13  ;;  %v2861_v13 = vld [vmem:[#allocation2 + $0x190] sm:$0x3] }
 0x30d   : > { %4223 = vmatprep.mubr.bf16.mxu1 %v8174_v20 }
 0x30e   : > { %4377 = vmatmul.mubr.bf16.gmra.mrb[244].mxu0 %v8114_v2 }
 0x30f   : > { %4384 = vmatprep.mubr.bf16.mxu0 %v8171_v36 }
 0x314   : > { %4224 = vmatmul.mubr.bf16.gmra.mrb[216].mxu1 %v8156_v1 }
 0x315   : > { %4231 = vmatprep.mubr.bf16.mxu1 %v8189_v39 }
 0x316   : > { %4385 = vmatmul.mubr.bf16.gmra.mrb[248].mxu0 %v8143_v23 }
 0x317   : > { %4392 = vmatprep.mubr.bf16.mxu0 %v8186_v61 }
 0x31c   : > { %4232 = vmatmul.mubr.bf16.gmra.mrb[220].mxu1 %v8171_v36 }
 0x31d   : > { %4239 = vmatprep.mubr.bf16.mxu1 %v8204_v51 }
 0x31e   : > { %4393 = vmatmul.mubr.bf16.gmra.mrb[252].mxu0 %v8161_v40 }
 0x31f   : > { %4400 = vmatprep.mubr.bf16.mxu0 %v8201_v32 }
 0x324   : > { %4240 = vmatmul.mubr.bf16.gmra.mrb[224].mxu1 %v8186_v61  ;;  %v3208_v61 = vshll.u32 %v8282_v18, 16 }
 0x325   : > { %4247 = vmatprep.mubr.bf16.mxu1 %v8219_v6 }
 0x326   : > { %4401 = vmatmul.mubr.bf16.gmra.mrb[0].mxu0 %v8176_v37  ;;  %v3210_v0 = vrot.slane %v3208_v61, 1 }
 0x327   : > { %4408 = vmatprep.mubr.bf16.mxu0 %v8216_v34 }
 0x32c   : > { %4248 = vmatmul.mubr.bf16.gmra.mrb[228].mxu1 %v8201_v32 }
 0x32d   : > { %4255 = vmatprep.mubr.bf16.mxu1 %v8238_v35 }
 0x32e   : > { %4409 = vmatmul.mubr.bf16.gmra.mrb[4].mxu0 %v8191_v54 }
 0x32f   : > { %4416 = vmatprep.mubr.bf16.mxu0 %v8235_v30 }
 0x334   : > { %4256 = vmatmul.mubr.bf16.gmra.mrb[232].mxu1 %v8216_v34  ;;  %v8351_v34 = vpack.c.bf16 %v2861_v13, %v2861_v13 }
 0x335   : > { %4263 = vmatprep.mubr.bf16.mxu1 %v8253_v19 }
 0x336   : > { %4417 = vmatmul.mubr.bf16.gmra.mrb[8].mxu0 %v8206_v8  ;;  %v3213_v58 = vshll.u32 %v8351_v34, 16  ;;  %v3221_v61 = vrot.slane %v8351_v34, 1 }
 0x337   : > { %4424 = vmatprep.mubr.bf16.mxu0 %v8250_v5 }
 0x338   : > { %v5780_v3 = vpop.f32.mrb[160].mxu0  ;;  %v3215_v12 = vrot.slane %v3213_v58, 1 }
 0x339   : > { %v5781_v22 = vpop.f32.mrb[161].mxu0 }
 0x33a   : > { %v5782_v24 = vadd.f32 %v5781_v22, %v5780_v3  ;;  %v5783_v57 = vpop.f32.mrb[162].mxu0 }
 0x33b   : > { %v5784_v17 = vpop.f32.mrb[163].mxu0 }
 0x33c   : > { %v8341_v25 = vadd.f32 %v5782_v24, %v8227_v21  ;;  %v5785_v43 = vadd.f32 %v5784_v17, %v5783_v57  ;;  %4264 = vmatmul.mubr.bf16.gmra.mrb[236].mxu1 %v8235_v30  ;;  %v3234_v24 = vshll.u32 %v8365_v62, 16 }
 0x33d   : > { %4271 = vmatprep.mubr.bf16.mxu1 %v8268_v10 }
 0x33e   : > { %4425 = vmatmul.mubr.bf16.gmra.mrb[12].mxu0 %v8221_v14  ;;  %v8347_v44 = vadd.f32 %v5785_v43, %v8231_v29  ;;  %v6447_v29 = vld [vmem:[#allocation2] sm:$0xff] }
 0x33f   : > { %4432 = vmatprep.mubr.bf16.mxu0 %v8265_v59  ;;  %v5674_v2 = vpop.f32.mrb[132].mxu1  ;;  %v8353_v30 = vpack.c.bf16 %v6447_v29, %v6447_v29 }
 0x340   : > { %v5675_v23 = vpop.f32.mrb[133].mxu1 }
 0x341   : > { %v5786_v1 = vpop.f32.mrb[164].mxu0  ;;  %v5676_v40 = vadd.f32 %v5675_v23, %v5674_v2  ;;  %v5677_v36 = vpop.f32.mrb[134].mxu1  ;;  %v3229_v63 = vshll.u32 %v8353_v30, 16  ;;  %v3227_v3 = vshrl.u32 %v8353_v30, 16 }
 0x342   : > { %v5787_v37 = vpop.f32.mrb[165].mxu0  ;;  %v5678_v32 = vpop.f32.mrb[135].mxu1 }
 0x343   : > { %v5788_v54 = vadd.f32 %v5787_v37, %v5786_v1  ;;  %v5789_v8 = vpop.f32.mrb[166].mxu0  ;;  %v5679_v14 = vadd.f32 %v5678_v32, %v5677_v36  ;;  %v3231_v22 = vrot.slane %v3229_v63, 1  ;;  %v3236_v1 = vrot.slane %v3234_v24, 1 }
 0x344   : > { %v5790_v21 = vpop.f32.mrb[167].mxu0  ;;  %4272 = vmatmul.mubr.bf16.gmra.mrb[240].mxu1 %v8250_v5  ;;  %v3220_v37 = vrot.slane %v8282_v18, 1 }
 0x345   : > { %v8355_v9 = vadd.f32 %v5788_v54, %v5676_v40  ;;  %v5791_v53 = vadd.f32 %v5790_v21, %v5789_v8  ;;  %4279 = vmatprep.mubr.bf16.mxu1 %v8280_v7  ;;  %v3232_v23 = vor.u32 %v3231_v22, %v3227_v3 }
 0x346   : > { %4433 = vmatmul.mubr.bf16.gmra.mrb[16].mxu0 %v8240_v60  ;;  %v3211_v60 = vor.u32 %v3210_v0, %v3206_v16  ;;  %v8385_v58 = vsel %vm3138_vm7, %v3220_v37, %v3221_v61 }
 0x347   : > { %v8360_v46 = vadd.f32 %v5791_v53, %v5679_v14  ;;  %4440 = vmatprep.mubr.bf16.mxu0 %v8277_v15  ;;  %v5680_v50 = vpop.f32.mrb[136].mxu1  ;;  %v3237_v53 = vsel %vm2897_vm6, %v3232_v23, %v3236_v1 }
 0x348   : > { %v5681_v5 = vpop.f32.mrb[137].mxu1  ;;  %v3216_v43 = vsel %vm2897_vm6, %v3211_v60, %v3215_v12 }
 0x349   : > { %v5792_v38 = vpop.f32.mrb[168].mxu0  ;;  %v5682_v55 = vadd.f32 %v5681_v5, %v5680_v50  ;;  %v5683_v31 = vpop.f32.mrb[138].mxu1 }
 0x34a   : > { %v5793_v48 = vpop.f32.mrb[169].mxu0  ;;  %v5684_v56 = vpop.f32.mrb[139].mxu1 }
 0x34b   : > { %v5794_v41 = vadd.f32 %v5793_v48, %v5792_v38  ;;  %v5795_v47 = vpop.f32.mrb[170].mxu0  ;;  %v5685_v28 = vadd.f32 %v5684_v56, %v5683_v31 }
 0x34c   : > { %v5796_v42 = vpop.f32.mrb[171].mxu0  ;;  %4280 = vmatmul.mubr.bf16.gmra.mrb[244].mxu1 %v8265_v59 }
 0x34d   : > { %v8370_v57 = vadd.f32 %v5794_v41, %v5682_v55  ;;  %v5797_v17 = vadd.f32 %v5796_v42, %v5795_v47  ;;  %4287 = vmatprep.mubr.bf16.mxu1 %v8290_v27 }
 0x34e   : > { %4441 = vmatmul.mubr.bf16.gmra.mrb[20].mxu0 %v8255_v52 }
 0x34f   : > { %v8376_v2 = vadd.f32 %v5797_v17, %v5685_v28  ;;  %4448 = vmatprep.mubr.bf16.mxu0 %v3216_v43  ;;  %v5686_v13 = vpop.f32.mrb[140].mxu1 }
 0x350   : > { %v5687_v40 = vpop.f32.mrb[141].mxu1 }
 0x351   : > { %v5798_v36 = vpop.f32.mrb[172].mxu0  ;;  %v5688_v54 = vadd.f32 %v5687_v40, %v5686_v13  ;;  %v5689_v59 = vpop.f32.mrb[142].mxu1 }
 0x352   : > { %v5799_v32 = vpop.f32.mrb[173].mxu0  ;;  %v5690_v14 = vpop.f32.mrb[143].mxu1 }
 0x353   : > { %v5800_v8 = vadd.f32 %v5799_v32, %v5798_v36  ;;  %v5801_v52 = vpop.f32.mrb[174].mxu0  ;;  %v5691_v21 = vadd.f32 %v5690_v14, %v5689_v59 }
 0x354   : > { %v5802_v29 = vpop.f32.mrb[175].mxu0  ;;  %4288 = vmatmul.mubr.bf16.gmra.mrb[248].mxu1 %v8277_v15 }
 0x355   : > { %v8381_v4 = vadd.f32 %v5800_v8, %v5688_v54  ;;  %v5803_v0 = vadd.f32 %v5802_v29, %v5801_v52  ;;  %4295 = vmatprep.mubr.bf16.mxu1 %v8385_v58 }
 0x356   : > { %4449 = vmatmul.mubr.bf16.gmra.mrb[24].mxu0 %v8282_v18 }
 0x357   : > { %v8389_v34 = vadd.f32 %v5803_v0, %v5691_v21  ;;  %4456 = vmatprep.mubr.bf16.mxu0 %v3237_v53  ;;  %v5692_v50 = vpop.f32.mrb[144].mxu1 }
 0x358   : > { %v5693_v16 = vpop.f32.mrb[145].mxu1 }
 0x359   : > { %v5804_v63 = vpop.f32.mrb[176].mxu0  ;;  %v5694_v5 = vadd.f32 %v5693_v16, %v5692_v50  ;;  %v5695_v38 = vpop.f32.mrb[146].mxu1 }
 0x35a   : > { %v5805_v55 = vpop.f32.mrb[177].mxu0  ;;  %v5696_v48 = vpop.f32.mrb[147].mxu1 }
 0x35b   : > { %v5806_v31 = vadd.f32 %v5805_v55, %v5804_v63  ;;  %v5807_v60 = vpop.f32.mrb[178].mxu0  ;;  %v5697_v15 = vadd.f32 %v5696_v48, %v5695_v38 }
 0x35c   : > { %v5808_v41 = vpop.f32.mrb[179].mxu0  ;;  %4296 = vmatmul.mubr.bf16.gmra.mrb[252].mxu1 %v3216_v43 }
 0x35d   : > { %v8391_v56 = vadd.f32 %v5806_v31, %v5694_v5  ;;  %v5809_v47 = vadd.f32 %v5808_v41, %v5807_v60  ;;  %6188 = vmatprep.mubr.bf16.mxu1 %v8044_v49 }
 0x35e   : > { %4457 = vmatmul.mubr.bf16.gmra.mrb[28].mxu0 %v8353_v30 }
 0x35f   : > { %v8395_v18 = vadd.f32 %v5809_v47, %v5697_v15  ;;  %v5698_v12 = vpop.f32.mrb[148].mxu1 }
 0x360   : > { %v5699_v28 = vpop.f32.mrb[149].mxu1 }
 0x361   : > { %v5810_v42 = vpop.f32.mrb[180].mxu0  ;;  %v5700_v3 = vadd.f32 %v5699_v28, %v5698_v12  ;;  %v5701_v22 = vpop.f32.mrb[150].mxu1 }
 0x362   : > { %v5811_v24 = vpop.f32.mrb[181].mxu0  ;;  %v5702_v13 = vpop.f32.mrb[151].mxu1 }
 0x363   : > { %v5812_v17 = vadd.f32 %v5811_v24, %v5810_v42  ;;  %v5813_v23 = vpop.f32.mrb[182].mxu0  ;;  %v5703_v1 = vadd.f32 %v5702_v13, %v5701_v22 }
 0x364   : > { %v5814_v40 = vpop.f32.mrb[183].mxu0  ;;  %6189 = vmatmul.mubr.bf16.vlgmr.msra.gmra.mrb[0].mxu1 %v8078_v11 }
 0x365   : > { %v8397_v36 = vadd.f32 %v5812_v17, %v5700_v3  ;;  %v5815_v43 = vadd.f32 %v5814_v40, %v5813_v23  ;;  %6192 = vmatprep.mubr.bf16.mxu1 %v8106_v26 }
 0x367   : > { %v8401_v49 = vadd.f32 %v5815_v43, %v5703_v1  ;;  %v5704_v37 = vpop.f32.mrb[152].mxu1 }
 0x368   : > { %v5705_v61 = vpop.f32.mrb[153].mxu1 }
 0x369   : > { %v5816_v54 = vpop.f32.mrb[184].mxu0  ;;  %v5706_v59 = vadd.f32 %v5705_v61, %v5704_v37  ;;  %v5707_v32 = vpop.f32.mrb[154].mxu1 }
 0x36a   : > { %v5817_v8 = vpop.f32.mrb[185].mxu0  ;;  %v5708_v52 = vpop.f32.mrb[155].mxu1 }
 0x36b   : > { %v5818_v14 = vadd.f32 %v5817_v8, %v5816_v54  ;;  %v5819_v21 = vpop.f32.mrb[186].mxu0  ;;  %v5709_v29 = vadd.f32 %v5708_v52, %v5707_v32 }
 0x36c   : > { %v5820_v53 = vpop.f32.mrb[187].mxu0  ;;  %6193 = vmatmul.mubr.bf16.gmra.mrb[4].mxu1 %v8138_v45 }
 0x36d   : > { %v8403_v0 = vadd.f32 %v5818_v14, %v5706_v59  ;;  %v5821_v50 = vadd.f32 %v5820_v53, %v5819_v21  ;;  %6196 = vmatprep.mubr.bf16.mxu1 %v8159_v33 }
 0x36f   : > { %v8407_v11 = vadd.f32 %v5821_v50, %v5709_v29  ;;  %v5710_v26 = vpop.f32.mrb[156].mxu1 }
 0x370   : > { %v5711_v16 = vpop.f32.mrb[157].mxu1 }
 0x371   : > { %v5822_v63 = vpop.f32.mrb[188].mxu0  ;;  %v5712_v5 = vadd.f32 %v5711_v16, %v5710_v26  ;;  %v5713_v38 = vpop.f32.mrb[158].mxu1 }
 0x372   : > { %v5823_v55 = vpop.f32.mrb[189].mxu0  ;;  %v5714_v48 = vpop.f32.mrb[159].mxu1 }
 0x373   : > { %v5824_v31 = vadd.f32 %v5823_v55, %v5822_v63  ;;  %v5825_v60 = vpop.f32.mrb[190].mxu0  ;;  %v5715_v15 = vadd.f32 %v5714_v48, %v5713_v38 }
 0x374   : > { %v5826_v41 = vpop.f32.mrb[191].mxu0  ;;  %6197 = vmatmul.mubr.bf16.gmra.mrb[8].mxu1 %v8174_v20 }
 0x375   : > { %v8409_v47 = vadd.f32 %v5824_v31, %v5712_v5  ;;  %v5827_v12 = vadd.f32 %v5826_v41, %v5825_v60  ;;  %6200 = vmatprep.mubr.bf16.mxu1 %v8189_v39 }
 0x377   : > { %v8413_v45 = vadd.f32 %v5827_v12, %v5715_v15  ;;  %v5716_v33 = vpop.f32.mrb[160].mxu1 }
 0x378   : > { %v5717_v28 = vpop.f32.mrb[161].mxu1 }
 0x379   : > { %v5828_v42 = vpop.f32.mrb[192].mxu0  ;;  %v5718_v3 = vadd.f32 %v5717_v28, %v5716_v33  ;;  %v5719_v22 = vpop.f32.mrb[162].mxu1 }
 0x37a   : > { %v5829_v24 = vpop.f32.mrb[193].mxu0  ;;  %v5720_v13 = vpop.f32.mrb[163].mxu1 }
 0x37b   : > { %v5830_v17 = vadd.f32 %v5829_v24, %v5828_v42  ;;  %v5831_v23 = vpop.f32.mrb[194].mxu0  ;;  %v5721_v1 = vadd.f32 %v5720_v13, %v5719_v22 }
 0x37c   : > { %v5832_v40 = vpop.f32.mrb[195].mxu0  ;;  %6201 = vmatmul.mubr.bf16.gmra.mrb[12].mxu1 %v8204_v51 }
 0x37d   : > { %v8415_v43 = vadd.f32 %v5830_v17, %v5718_v3  ;;  %v5833_v37 = vadd.f32 %v5832_v40, %v5831_v23  ;;  %6204 = vmatprep.mubr.bf16.mxu1 %v8219_v6 }
 0x37f   : > { %v8419_v20 = vadd.f32 %v5833_v37, %v5721_v1  ;;  %v5722_v39 = vpop.f32.mrb[164].mxu1 }
 0x380   : > { %v5723_v61 = vpop.f32.mrb[165].mxu1 }
 0x381   : > { %v5834_v54 = vpop.f32.mrb[196].mxu0  ;;  %v5724_v59 = vadd.f32 %v5723_v61, %v5722_v39  ;;  %v5725_v32 = vpop.f32.mrb[166].mxu1 }
 0x382   : > { %v5835_v8 = vpop.f32.mrb[197].mxu0  ;;  %v5726_v52 = vpop.f32.mrb[167].mxu1 }
 0x383   : > { %v5836_v14 = vadd.f32 %v5835_v8, %v5834_v54  ;;  %v5837_v21 = vpop.f32.mrb[198].mxu0  ;;  %v5727_v29 = vadd.f32 %v5726_v52, %v5725_v32 }
 0x384   : > { %v5838_v53 = vpop.f32.mrb[199].mxu0  ;;  %6205 = vmatmul.mubr.bf16.gmra.mrb[16].mxu1 %v8238_v35 }
 0x385   : > { %v8421_v50 = vadd.f32 %v5836_v14, %v5724_v59  ;;  %v5839_v26 = vadd.f32 %v5838_v53, %v5837_v21  ;;  %6208 = vmatprep.mubr.bf16.mxu1 %v8253_v19 }
 0x387   : > { %v8425_v51 = vadd.f32 %v5839_v26, %v5727_v29  ;;  %v5728_v6 = vpop.f32.mrb[168].mxu1 }
 0x388   : > { %v5729_v16 = vpop.f32.mrb[169].mxu1 }
 0x389   : > { %v5840_v63 = vpop.f32.mrb[200].mxu0  ;;  %v5730_v5 = vadd.f32 %v5729_v16, %v5728_v6  ;;  %v5731_v38 = vpop.f32.mrb[170].mxu1 }
 0x38a   : > { %v5841_v55 = vpop.f32.mrb[201].mxu0  ;;  %v5732_v48 = vpop.f32.mrb[171].mxu1 }
 0x38b   : > { %v5842_v31 = vadd.f32 %v5841_v55, %v5840_v63  ;;  %v5843_v60 = vpop.f32.mrb[202].mxu0  ;;  %v5733_v15 = vadd.f32 %v5732_v48, %v5731_v38 }
 0x38c   : > { %v5844_v41 = vpop.f32.mrb[203].mxu0  ;;  %6209 = vmatmul.mubr.bf16.gmra.mrb[20].mxu1 %v8268_v10  ;;  %v3242_v10 = vrot.slane %v8365_v62, 1 }
 0x38d   : > { %v8427_v12 = vadd.f32 %v5842_v31, %v5730_v5  ;;  %v5845_v33 = vadd.f32 %v5844_v41, %v5843_v60  ;;  %6212 = vmatprep.mubr.bf16.mxu1 %v8280_v7  ;;  %v3241_v7 = vrot.slane %v8353_v30, 1 }
 0x38f   : > { %v8431_v35 = vadd.f32 %v5845_v33, %v5733_v15  ;;  %v5734_v19 = vpop.f32.mrb[172].mxu1  ;;  %v3243_v21 = vsel %vm3138_vm7, %v3241_v7, %v3242_v10 }
 0x390   : > { %v5735_v28 = vpop.f32.mrb[173].mxu1 }
 0x391   : > { %v5846_v42 = vpop.f32.mrb[204].mxu0  ;;  %v5736_v3 = vadd.f32 %v5735_v28, %v5734_v19  ;;  %v5737_v22 = vpop.f32.mrb[174].mxu1 }
 0x392   : > { %v5847_v24 = vpop.f32.mrb[205].mxu0  ;;  %v5738_v13 = vpop.f32.mrb[175].mxu1 }
 0x393   : > { %v5848_v17 = vadd.f32 %v5847_v24, %v5846_v42  ;;  %v5849_v23 = vpop.f32.mrb[206].mxu0  ;;  %v5739_v1 = vadd.f32 %v5738_v13, %v5737_v22 }
 0x394   : > { %v5850_v40 = vpop.f32.mrb[207].mxu0  ;;  %6213 = vmatmul.mubr.bf16.gmra.mrb[24].mxu1 %v8290_v27 }
 0x395   : > { %v8433_v37 = vadd.f32 %v5848_v17, %v5736_v3  ;;  %v5851_v39 = vadd.f32 %v5850_v40, %v5849_v23  ;;  %6216 = vmatprep.mubr.bf16.mxu1 %v8385_v58 }
 0x397   : > { %v8439_v61 = vadd.f32 %v5851_v39, %v5739_v1  ;;  %v5740_v54 = vpop.f32.mrb[176].mxu1 }
 0x398   : > { %v5741_v59 = vpop.f32.mrb[177].mxu1 }
 0x399   : > { %v5852_v32 = vpop.f32.mrb[208].mxu0  ;;  %v5742_v8 = vadd.f32 %v5741_v59, %v5740_v54  ;;  %v5743_v14 = vpop.f32.mrb[178].mxu1 }
 0x39a   : > { %v5853_v52 = vpop.f32.mrb[209].mxu0  ;;  %v5744_v53 = vpop.f32.mrb[179].mxu1 }
 0x39b   : > { %v5854_v29 = vadd.f32 %v5853_v52, %v5852_v32  ;;  %v5855_v26 = vpop.f32.mrb[210].mxu0  ;;  %v5745_v27 = vadd.f32 %v5744_v53, %v5743_v14 }
 0x39c   : > { %v5856_v6 = vpop.f32.mrb[211].mxu0  ;;  %6217 = vmatmul.mubr.bf16.gmra.mrb[28].mxu1 %v3243_v21 }
 0x39d   : > { %v8442_v62 = vadd.f32 %v5854_v29, %v5742_v8  ;;  %v5857_v58 = vadd.f32 %v5856_v6, %v5855_v26 }
 0x39f   : > { %v8444_v30 = vadd.f32 %v5857_v58, %v5745_v27  ;;  %v5746_v16 = vpop.f32.mrb[180].mxu1 }
 0x3a0   : > { %v5747_v63 = vpop.f32.mrb[181].mxu1 }
 0x3a1   : > { %v5858_v5 = vpop.f32.mrb[212].mxu0  ;;  %v5748_v38 = vadd.f32 %v5747_v63, %v5746_v16  ;;  %v5749_v55 = vpop.f32.mrb[182].mxu1 }
 0x3a2   : > { %v5859_v31 = vpop.f32.mrb[213].mxu0  ;;  %v5750_v60 = vpop.f32.mrb[183].mxu1 }
 0x3a3   : > { %v5860_v48 = vadd.f32 %v5859_v31, %v5858_v5  ;;  %v5861_v15 = vpop.f32.mrb[214].mxu0  ;;  %v5751_v41 = vadd.f32 %v5750_v60, %v5749_v55 }
 0x3a4   : > { %v5862_v33 = vpop.f32.mrb[215].mxu0 }
 0x3a5   : > { %v8446_v19 = vadd.f32 %v5860_v48, %v5748_v38  ;;  %v5863_v28 = vadd.f32 %v5862_v33, %v5861_v15 }
 0x3a7   : > { %v8448_v42 = vadd.f32 %v5863_v28, %v5751_v41  ;;  %v5752_v3 = vpop.f32.mrb[184].mxu1 }
 0x3a8   : > { %v5753_v22 = vpop.f32.mrb[185].mxu1 }
 0x3a9   : > { %v5864_v24 = vpop.f32.mrb[216].mxu0  ;;  %v5754_v17 = vadd.f32 %v5753_v22, %v5752_v3  ;;  %v5755_v13 = vpop.f32.mrb[186].mxu1 }
 0x3aa   : > { %v5865_v23 = vpop.f32.mrb[217].mxu0  ;;  %v5756_v40 = vpop.f32.mrb[187].mxu1 }
 0x3ab   : > { %v5866_v1 = vadd.f32 %v5865_v23, %v5864_v24  ;;  %v5867_v39 = vpop.f32.mrb[218].mxu0  ;;  %v5757_v10 = vadd.f32 %v5756_v40, %v5755_v13 }
 0x3ac   : > { %v5868_v7 = vpop.f32.mrb[219].mxu0 }
 0x3ad   : > { %v8450_v54 = vadd.f32 %v5866_v1, %v5754_v17  ;;  %v5869_v59 = vadd.f32 %v5868_v7, %v5867_v39 }
 0x3af   : > { %v8452_v32 = vadd.f32 %v5869_v59, %v5757_v10  ;;  %v5758_v8 = vpop.f32.mrb[188].mxu1 }
 0x3b0   : > { %v5759_v14 = vpop.f32.mrb[189].mxu1 }
 0x3b1   : > { %v5870_v52 = vpop.f32.mrb[220].mxu0  ;;  %v5760_v21 = vadd.f32 %v5759_v14, %v5758_v8  ;;  %v5761_v29 = vpop.f32.mrb[190].mxu1 }
 0x3b2   : > { %v5871_v53 = vpop.f32.mrb[221].mxu0  ;;  %v5762_v27 = vpop.f32.mrb[191].mxu1 }
 0x3b3   : > { %v5872_v26 = vadd.f32 %v5871_v53, %v5870_v52  ;;  %v5873_v6 = vpop.f32.mrb[222].mxu0  ;;  %v5763_v58 = vadd.f32 %v5762_v27, %v5761_v29 }
 0x3b4   : > { %v5874_v16 = vpop.f32.mrb[223].mxu0 }
 0x3b5   : > { %v8454_v63 = vadd.f32 %v5872_v26, %v5760_v21  ;;  %v5875_v5 = vadd.f32 %v5874_v16, %v5873_v6 }
 0x3b7   : > { %v8456_v38 = vadd.f32 %v5875_v5, %v5763_v58  ;;  %v5892_v55 = vpop.f32.mrb[192].mxu1 }
 0x3b8   : > { %v5893_v31 = vpop.f32.mrb[193].mxu1 }
 0x3b9   : > { %v6004_v48 = vpop.f32.mrb[224].mxu0  ;;  %v5894_v60 = vadd.f32 %v5893_v31, %v5892_v55  ;;  %v5895_v15 = vpop.f32.mrb[194].mxu1 }
 0x3ba   : > { %v6005_v41 = vpop.f32.mrb[225].mxu0  ;;  %v5896_v28 = vpop.f32.mrb[195].mxu1 }
 0x3bb   : > { %v6006_v33 = vadd.f32 %v6005_v41, %v6004_v48  ;;  %v6007_v3 = vpop.f32.mrb[226].mxu0  ;;  %v4178_v22 = vadd.f32 %v5894_v60, %v8341_v25  ;;  %v5897_v24 = vadd.f32 %v5896_v28, %v5895_v15 }
 0x3bc   : > { %v6008_v17 = vpop.f32.mrb[227].mxu0 }
 0x3bd   : > { %v6009_v13 = vadd.f32 %v6008_v17, %v6007_v3  ;;  %v4181_v23 = vadd.f32 %v5897_v24, %v8347_v44  ;;  %v8460_v1 = vadd.f32 %v6006_v33, %v4178_v22 }
 0x3bf   : > { %v5898_v40 = vpop.f32.mrb[196].mxu1  ;;  %v8462_v39 = vadd.f32 %v6009_v13, %v4181_v23 }
 0x3c0   : > { %v5899_v10 = vpop.f32.mrb[197].mxu1 }
 0x3c1   : > { %v6010_v7 = vpop.f32.mrb[228].mxu0  ;;  %v5900_v59 = vadd.f32 %v5899_v10, %v5898_v40  ;;  %v5901_v8 = vpop.f32.mrb[198].mxu1 }
 0x3c2   : > { %v6011_v14 = vpop.f32.mrb[229].mxu0  ;;  %v5902_v21 = vpop.f32.mrb[199].mxu1 }
 0x3c3   : > { %v6012_v52 = vadd.f32 %v6011_v14, %v6010_v7  ;;  %v6013_v29 = vpop.f32.mrb[230].mxu0  ;;  %v4186_v25 = vadd.f32 %v5900_v59, %v8355_v9  ;;  %v5903_v53 = vadd.f32 %v5902_v21, %v5901_v8 }
 0x3c4   : > { %v6014_v26 = vpop.f32.mrb[231].mxu0 }
 0x3c5   : > { %v6015_v27 = vadd.f32 %v6014_v26, %v6013_v29  ;;  %v4189_v44 = vadd.f32 %v5903_v53, %v8360_v46  ;;  %v8466_v6 = vadd.f32 %v6012_v52, %v4186_v25 }
 0x3c7   : > { %v5904_v58 = vpop.f32.mrb[200].mxu1  ;;  %v8468_v16 = vadd.f32 %v6015_v27, %v4189_v44 }
 0x3c8   : > { %v5905_v5 = vpop.f32.mrb[201].mxu1 }
 0x3c9   : > { %v6016_v55 = vpop.f32.mrb[232].mxu0  ;;  %v5906_v31 = vadd.f32 %v5905_v5, %v5904_v58  ;;  %v5907_v48 = vpop.f32.mrb[202].mxu1 }
 0x3ca   : > { %v6017_v60 = vpop.f32.mrb[233].mxu0  ;;  %v5908_v41 = vpop.f32.mrb[203].mxu1 }
 0x3cb   : > { %v6018_v15 = vadd.f32 %v6017_v60, %v6016_v55  ;;  %v6019_v33 = vpop.f32.mrb[234].mxu0  ;;  %v4194_v9 = vadd.f32 %v5906_v31, %v8370_v57  ;;  %v5909_v28 = vadd.f32 %v5908_v41, %v5907_v48 }
 0x3cc   : > { %v6020_v3 = vpop.f32.mrb[235].mxu0 }
 0x3cd   : > { %v6021_v22 = vadd.f32 %v6020_v3, %v6019_v33  ;;  %v4197_v46 = vadd.f32 %v5909_v28, %v8376_v2  ;;  %v8472_v24 = vadd.f32 %v6018_v15, %v4194_v9 }
 0x3cf   : > { %v5910_v17 = vpop.f32.mrb[204].mxu1  ;;  %v8474_v13 = vadd.f32 %v6021_v22, %v4197_v46 }
 0x3d0   : > { %v5911_v23 = vpop.f32.mrb[205].mxu1 }
 0x3d1   : > { %v6022_v40 = vpop.f32.mrb[236].mxu0  ;;  %v5912_v10 = vadd.f32 %v5911_v23, %v5910_v17  ;;  %v5913_v7 = vpop.f32.mrb[206].mxu1 }
 0x3d2   : > { %v6023_v59 = vpop.f32.mrb[237].mxu0  ;;  %v5914_v14 = vpop.f32.mrb[207].mxu1 }
 0x3d3   : > { %v6024_v8 = vadd.f32 %v6023_v59, %v6022_v40  ;;  %v6025_v52 = vpop.f32.mrb[238].mxu0  ;;  %v4202_v57 = vadd.f32 %v5912_v10, %v8381_v4  ;;  %v5915_v21 = vadd.f32 %v5914_v14, %v5913_v7 }
 0x3d4   : > { %v6026_v29 = vpop.f32.mrb[239].mxu0 }
 0x3d5   : > { %v6027_v25 = vadd.f32 %v6026_v29, %v6025_v52  ;;  %v4205_v2 = vadd.f32 %v5915_v21, %v8389_v34  ;;  %v8478_v53 = vadd.f32 %v6024_v8, %v4202_v57 }
 0x3d7   : > { %v5916_v26 = vpop.f32.mrb[208].mxu1  ;;  %v8480_v27 = vadd.f32 %v6027_v25, %v4205_v2 }
 0x3d8   : > { %v5917_v44 = vpop.f32.mrb[209].mxu1 }
 0x3d9   : > { %v6028_v58 = vpop.f32.mrb[240].mxu0  ;;  %v5918_v5 = vadd.f32 %v5917_v44, %v5916_v26  ;;  %v5919_v55 = vpop.f32.mrb[210].mxu1 }
 0x3da   : > { %v6029_v31 = vpop.f32.mrb[241].mxu0  ;;  %v5920_v60 = vpop.f32.mrb[211].mxu1 }
 0x3db   : > { %v6030_v48 = vadd.f32 %v6029_v31, %v6028_v58  ;;  %v6031_v15 = vpop.f32.mrb[242].mxu0  ;;  %v4210_v4 = vadd.f32 %v5918_v5, %v8391_v56  ;;  %v5921_v41 = vadd.f32 %v5920_v60, %v5919_v55 }
 0x3dc   : > { %v6032_v33 = vpop.f32.mrb[243].mxu0 }
 0x3dd   : > { %v6033_v9 = vadd.f32 %v6032_v33, %v6031_v15  ;;  %v4213_v34 = vadd.f32 %v5921_v41, %v8395_v18  ;;  %v8484_v28 = vadd.f32 %v6030_v48, %v4210_v4 }
 0x3df   : > { %v5922_v3 = vpop.f32.mrb[212].mxu1  ;;  %v8486_v22 = vadd.f32 %v6033_v9, %v4213_v34 }
 0x3e0   : > { %v5923_v46 = vpop.f32.mrb[213].mxu1 }
 0x3e1   : > { %v6034_v17 = vpop.f32.mrb[244].mxu0  ;;  %v5924_v23 = vadd.f32 %v5923_v46, %v5922_v3  ;;  %v5925_v40 = vpop.f32.mrb[214].mxu1 }
 0x3e2   : > { %v6035_v10 = vpop.f32.mrb[245].mxu0  ;;  %v5926_v59 = vpop.f32.mrb[215].mxu1 }
 0x3e3   : > { %v6036_v7 = vadd.f32 %v6035_v10, %v6034_v17  ;;  %v6037_v8 = vpop.f32.mrb[246].mxu0  ;;  %v4218_v56 = vadd.f32 %v5924_v23, %v8397_v36  ;;  %v5927_v14 = vadd.f32 %v5926_v59, %v5925_v40 }
 0x3e4   : > { %v6038_v52 = vpop.f32.mrb[247].mxu0 }
 0x3e5   : > { %v6039_v57 = vadd.f32 %v6038_v52, %v6037_v8  ;;  %v4221_v18 = vadd.f32 %v5927_v14, %v8401_v49  ;;  %v8490_v21 = vadd.f32 %v6036_v7, %v4218_v56 }
 0x3e7   : > { %v5928_v29 = vpop.f32.mrb[216].mxu1  ;;  %v8492_v25 = vadd.f32 %v6039_v57, %v4221_v18 }
 0x3e8   : > { %v5929_v2 = vpop.f32.mrb[217].mxu1 }
 0x3e9   : > { %v6040_v26 = vpop.f32.mrb[248].mxu0  ;;  %v5930_v44 = vadd.f32 %v5929_v2, %v5928_v29  ;;  %v5931_v58 = vpop.f32.mrb[218].mxu1 }
 0x3ea   : > { %v6041_v5 = vpop.f32.mrb[249].mxu0  ;;  %v5932_v31 = vpop.f32.mrb[219].mxu1 }
 0x3eb   : > { %v6042_v55 = vadd.f32 %v6041_v5, %v6040_v26  ;;  %v6043_v48 = vpop.f32.mrb[250].mxu0  ;;  %v4226_v36 = vadd.f32 %v5930_v44, %v8403_v0  ;;  %v5933_v60 = vadd.f32 %v5932_v31, %v5931_v58 }
 0x3ec   : > { %v6044_v15 = vpop.f32.mrb[251].mxu0 }
 0x3ed   : > { %v6045_v4 = vadd.f32 %v6044_v15, %v6043_v48  ;;  %v4229_v49 = vadd.f32 %v5933_v60, %v8407_v11  ;;  %v8496_v41 = vadd.f32 %v6042_v55, %v4226_v36 }
 0x3ef   : > { %v5934_v33 = vpop.f32.mrb[220].mxu1  ;;  %v8498_v9 = vadd.f32 %v6045_v4, %v4229_v49 }
 0x3f0   : > { %v5935_v34 = vpop.f32.mrb[221].mxu1 }
 0x3f1   : > { %v6046_v3 = vpop.f32.mrb[252].mxu0  ;;  %v5936_v46 = vadd.f32 %v5935_v34, %v5934_v33  ;;  %v5937_v17 = vpop.f32.mrb[222].mxu1 }
 0x3f2   : > { %v6047_v23 = vpop.f32.mrb[253].mxu0  ;;  %v5938_v10 = vpop.f32.mrb[223].mxu1 }
 0x3f3   : > { %v6048_v40 = vadd.f32 %v6047_v23, %v6046_v3  ;;  %v6049_v7 = vpop.f32.mrb[254].mxu0  ;;  %v4234_v0 = vadd.f32 %v5936_v46, %v8409_v47  ;;  %v5939_v59 = vadd.f32 %v5938_v10, %v5937_v17 }
 0x3f4   : > { %v6050_v8 = vpop.f32.mrb[255].mxu0 }
 0x3f5   : > { %v6051_v56 = vadd.f32 %v6050_v8, %v6049_v7  ;;  %v4237_v11 = vadd.f32 %v5939_v59, %v8413_v45  ;;  %v8502_v14 = vadd.f32 %v6048_v40, %v4234_v0 }
 0x3f7   : > { %v5940_v52 = vpop.f32.mrb[224].mxu1  ;;  %v8504_v57 = vadd.f32 %v6051_v56, %v4237_v11 }
 0x3f8   : > { %v5941_v18 = vpop.f32.mrb[225].mxu1 }
 0x3f9   : > { %v6052_v29 = vpop.f32.mrb[0].mxu0  ;;  %v5942_v2 = vadd.f32 %v5941_v18, %v5940_v52  ;;  %v5943_v26 = vpop.f32.mrb[226].mxu1 }
 0x3fa   : > { %v6053_v44 = vpop.f32.mrb[1].mxu0  ;;  %v5944_v5 = vpop.f32.mrb[227].mxu1 }
 0x3fb   : > { %v6054_v58 = vadd.f32 %v6053_v44, %v6052_v29  ;;  %v6055_v55 = vpop.f32.mrb[2].mxu0  ;;  %v4242_v47 = vadd.f32 %v5942_v2, %v8415_v43  ;;  %v5945_v31 = vadd.f32 %v5944_v5, %v5943_v26 }
 0x3fc   : > { %v6056_v48 = vpop.f32.mrb[3].mxu0 }
 0x3fd   : > { %v6057_v36 = vadd.f32 %v6056_v48, %v6055_v55  ;;  %v4245_v45 = vadd.f32 %v5945_v31, %v8419_v20  ;;  %v8508_v60 = vadd.f32 %v6054_v58, %v4242_v47 }
 0x3ff   : > { %v5946_v15 = vpop.f32.mrb[228].mxu1  ;;  %v8510_v4 = vadd.f32 %v6057_v36, %v4245_v45 }
 0x400   : > { %v5947_v49 = vpop.f32.mrb[229].mxu1 }
 0x401   : > { %v6058_v33 = vpop.f32.mrb[4].mxu0  ;;  %v5948_v34 = vadd.f32 %v5947_v49, %v5946_v15  ;;  %v5949_v3 = vpop.f32.mrb[230].mxu1 }
 0x402   : > { %v6059_v46 = vpop.f32.mrb[5].mxu0  ;;  %v5950_v23 = vpop.f32.mrb[231].mxu1 }
 0x403   : > { %v6060_v17 = vadd.f32 %v6059_v46, %v6058_v33  ;;  %v6061_v40 = vpop.f32.mrb[6].mxu0  ;;  %v4250_v43 = vadd.f32 %v5948_v34, %v8421_v50  ;;  %v5951_v10 = vadd.f32 %v5950_v23, %v5949_v3 }
 0x404   : > { %v6062_v7 = vpop.f32.mrb[7].mxu0 }
 0x405   : > { %v6063_v0 = vadd.f32 %v6062_v7, %v6061_v40  ;;  %v4253_v20 = vadd.f32 %v5951_v10, %v8425_v51  ;;  %v8514_v59 = vadd.f32 %v6060_v17, %v4250_v43 }
 0x407   : > { %v5952_v8 = vpop.f32.mrb[232].mxu1  ;;  %v8516_v56 = vadd.f32 %v6063_v0, %v4253_v20 }
 0x408   : > { %v5953_v11 = vpop.f32.mrb[233].mxu1 }
 0x409   : > { %v6064_v52 = vpop.f32.mrb[8].mxu0  ;;  %v5954_v18 = vadd.f32 %v5953_v11, %v5952_v8  ;;  %v5955_v29 = vpop.f32.mrb[234].mxu1 }
 0x40a   : > { %v6065_v2 = vpop.f32.mrb[9].mxu0  ;;  %v5956_v44 = vpop.f32.mrb[235].mxu1 }
 0x40b   : > { %v6066_v26 = vadd.f32 %v6065_v2, %v6064_v52  ;;  %v6067_v58 = vpop.f32.mrb[10].mxu0  ;;  %v4258_v50 = vadd.f32 %v5954_v18, %v8427_v12  ;;  %v5957_v5 = vadd.f32 %v5956_v44, %v5955_v29 }
 0x40c   : > { %v6068_v55 = vpop.f32.mrb[11].mxu0 }
 0x40d   : > { %v6069_v47 = vadd.f32 %v6068_v55, %v6067_v58  ;;  %v4261_v51 = vadd.f32 %v5957_v5, %v8431_v35  ;;  %v8520_v31 = vadd.f32 %v6066_v26, %v4258_v50 }
 0x40f   : > { %v5958_v48 = vpop.f32.mrb[236].mxu1  ;;  %v8522_v36 = vadd.f32 %v6069_v47, %v4261_v51 }
 0x410   : > { %v5959_v45 = vpop.f32.mrb[237].mxu1 }
 0x411   : > { %v6070_v15 = vpop.f32.mrb[12].mxu0  ;;  %v5960_v49 = vadd.f32 %v5959_v45, %v5958_v48  ;;  %v5961_v33 = vpop.f32.mrb[238].mxu1 }
 0x412   : > { %v6071_v34 = vpop.f32.mrb[13].mxu0  ;;  %v5962_v46 = vpop.f32.mrb[239].mxu1 }
 0x413   : > { %v6072_v3 = vadd.f32 %v6071_v34, %v6070_v15  ;;  %v6073_v17 = vpop.f32.mrb[14].mxu0  ;;  %v4266_v12 = vadd.f32 %v5960_v49, %v8433_v37  ;;  %v5963_v23 = vadd.f32 %v5962_v46, %v5961_v33 }
 0x414   : > { %v6074_v40 = vpop.f32.mrb[15].mxu0 }
 0x415   : > { %v6075_v43 = vadd.f32 %v6074_v40, %v6073_v17  ;;  %v4269_v35 = vadd.f32 %v5963_v23, %v8439_v61  ;;  %v8526_v10 = vadd.f32 %v6072_v3, %v4266_v12 }
 0x417   : > { %v5964_v7 = vpop.f32.mrb[240].mxu1  ;;  %v8528_v0 = vadd.f32 %v6075_v43, %v4269_v35 }
 0x418   : > { %v5965_v20 = vpop.f32.mrb[241].mxu1 }
 0x419   : > { %v6076_v8 = vpop.f32.mrb[16].mxu0  ;;  %v5966_v11 = vadd.f32 %v5965_v20, %v5964_v7  ;;  %v5967_v52 = vpop.f32.mrb[242].mxu1 }
 0x41a   : > { %v6077_v18 = vpop.f32.mrb[17].mxu0  ;;  %v5968_v2 = vpop.f32.mrb[243].mxu1 }
 0x41b   : > { %v6078_v29 = vadd.f32 %v6077_v18, %v6076_v8  ;;  %v6079_v26 = vpop.f32.mrb[18].mxu0  ;;  %v4274_v37 = vadd.f32 %v5966_v11, %v8442_v62  ;;  %v5969_v44 = vadd.f32 %v5968_v2, %v5967_v52 }
 0x41c   : > { %v6080_v58 = vpop.f32.mrb[19].mxu0 }
 0x41d   : > { %v6081_v50 = vadd.f32 %v6080_v58, %v6079_v26  ;;  %v4277_v61 = vadd.f32 %v5969_v44, %v8444_v30  ;;  %v8532_v5 = vadd.f32 %v6078_v29, %v4274_v37 }
 0x41f   : > { %v5970_v55 = vpop.f32.mrb[244].mxu1  ;;  %v8534_v47 = vadd.f32 %v6081_v50, %v4277_v61 }
 0x420   : > { %v5971_v51 = vpop.f32.mrb[245].mxu1 }
 0x421   : > { %v6082_v48 = vpop.f32.mrb[20].mxu0  ;;  %v5972_v45 = vadd.f32 %v5971_v51, %v5970_v55  ;;  %v5973_v15 = vpop.f32.mrb[246].mxu1 }
 0x422   : > { %v6083_v49 = vpop.f32.mrb[21].mxu0  ;;  %v5974_v34 = vpop.f32.mrb[247].mxu1 }
 0x423   : > { %v6084_v33 = vadd.f32 %v6083_v49, %v6082_v48  ;;  %v6085_v3 = vpop.f32.mrb[22].mxu0  ;;  %v4282_v62 = vadd.f32 %v5972_v45, %v8446_v19  ;;  %v5975_v46 = vadd.f32 %v5974_v34, %v5973_v15 }
 0x424   : > { %v6086_v17 = vpop.f32.mrb[23].mxu0 }
 0x425   : > { %v6087_v12 = vadd.f32 %v6086_v17, %v6085_v3  ;;  %v4285_v30 = vadd.f32 %v5975_v46, %v8448_v42  ;;  %v8538_v23 = vadd.f32 %v6084_v33, %v4282_v62 }
 0x427   : > { %v5976_v40 = vpop.f32.mrb[248].mxu1  ;;  %v8540_v43 = vadd.f32 %v6087_v12, %v4285_v30  ;;  %v8555_v12 = vld [vmem:[%s8785_s6] ss:$0 sm:$0xff] }
 0x428   : > { %v5977_v35 = vpop.f32.mrb[249].mxu1 }
 0x429   : > { %v6088_v7 = vpop.f32.mrb[24].mxu0  ;;  %v5978_v20 = vadd.f32 %v5977_v35, %v5976_v40  ;;  %v5979_v8 = vpop.f32.mrb[250].mxu1  ;;  %v8563_v35 = vld [vmem:[%s8786_s7] ss:$0 sm:$0xff] }
 0x42a   : > { %v6089_v11 = vpop.f32.mrb[25].mxu0  ;;  %v5980_v18 = vpop.f32.mrb[251].mxu1 }
 0x42b   : > { %v6090_v52 = vadd.f32 %v6089_v11, %v6088_v7  ;;  %v6091_v29 = vpop.f32.mrb[26].mxu0  ;;  %v4290_v19 = vadd.f32 %v5978_v20, %v8450_v54  ;;  %v5981_v2 = vadd.f32 %v5980_v18, %v5979_v8 }
 0x42c   : > { %v6092_v26 = vpop.f32.mrb[27].mxu0 }
 0x42d   : > { %v6093_v37 = vadd.f32 %v6092_v26, %v6091_v29  ;;  %v4293_v42 = vadd.f32 %v5981_v2, %v8452_v32  ;;  %v8544_v44 = vadd.f32 %v6090_v52, %v4290_v19  ;;  %v4706_v52 = vld [vmem:[%s6780_s15 + $0x10] sm:$0xff]  ;;  %v4704_v19 = vld [vmem:[%s6780_s15] sm:$0xff] }
 0x42f   : > { %v5982_v58 = vpop.f32.mrb[252].mxu1  ;;  %v8546_v50 = vadd.f32 %v6093_v37, %v4293_v42 }
 0x430   : > { %v5983_v61 = vpop.f32.mrb[253].mxu1 }
 0x431   : > { %v6094_v55 = vpop.f32.mrb[28].mxu0  ;;  %v5984_v51 = vadd.f32 %v5983_v61, %v5982_v58  ;;  %v5985_v48 = vpop.f32.mrb[254].mxu1  ;;  %v4705_v58 = vld [vmem:[%s6780_s15 + $0x8] sm:$0xff] }
 0x432   : > { %v6095_v45 = vpop.f32.mrb[29].mxu0  ;;  %v5986_v15 = vpop.f32.mrb[255].mxu1 }
 0x433   : > { %v6096_v49 = vadd.f32 %v6095_v45, %v6094_v55  ;;  %v6097_v33 = vpop.f32.mrb[30].mxu0  ;;  %v4298_v54 = vadd.f32 %v5984_v51, %v8454_v63  ;;  %v5987_v34 = vadd.f32 %v5986_v15, %v5985_v48 }
 0x434   : > { %v6098_v3 = vpop.f32.mrb[31].mxu0 }
 0x435   : > { %v6099_v62 = vadd.f32 %v6098_v3, %v6097_v33  ;;  %v4301_v32 = vadd.f32 %v5987_v34, %v8456_v38  ;;  %v8550_v46 = vadd.f32 %v6096_v49, %v4298_v54 }
 0x437   : > { %v6190_v17 = vpop.f32.mrb[0].mxu1  ;;  %v8557_v30 = vadd.f32 %v6099_v62, %v4301_v32 }
 0x438   : > { %v4508_v63 = vadd.f32 %v6190_v17, %v8466_v6  ;;  %v4499_v40 = vpop.f32.mrb[1].mxu1 }
 0x439   : > { %v4500_v38 = vadd.f32 %v4499_v40, %v8460_v1  ;;  %v6191_v7 = vpop.f32.mrb[2].mxu1  ;;  %v4707_v1 = vld [vmem:[%s6780_s15 + $0x18] sm:$0xff] }
 0x43a   : > { %v4635_v20 = vmul.f32 %v8555_v12, %v4508_v63  ;;  %v4511_v8 = vadd.f32 %v6191_v7, %v8468_v16  ;;  %v4502_v11 = vpop.f32.mrb[3].mxu1  ;;  %v4708_v7 = vld [vmem:[%s6780_s15 + $0x20] sm:$0xff] }
 0x43b   : > { %v4633_v18 = vmul.f32 %v8555_v12, %v4500_v38  ;;  %v4503_v6 = vadd.f32 %v4502_v11, %v8462_v39  ;;  %v4711_v11 = vld [vmem:[%s6780_s15 + $0x38] sm:$0xff] }
 0x43c   : > { %v4674_v29 = vadd.f32 %v8563_v35, %v4635_v20  ;;  %v4636_v2 = vmul.f32 %v8555_v12, %v4511_v8 }
 0x43d   : > { %v4672_v26 = vadd.f32 %v8563_v35, %v4633_v18  ;;  %v4634_v37 = vmul.f32 %v8555_v12, %v4503_v6  ;;  %v4709_v6 = vld [vmem:[%s6780_s15 + $0x28] sm:$0xff] }
 0x43e   : > { %v4738_v42 = vadd.f32 %v4706_v52, %v4674_v29  ;;  %v4675_v16 = vadd.f32 %v8563_v35, %v4636_v2 }
 0x43f   : > { %v4736_v61 = vadd.f32 %v4704_v19, %v4672_v26  ;;  %v4673_v55 = vadd.f32 %v8563_v35, %v4634_v37  ;;  %v6194_v51 = vpop.f32.mrb[4].mxu1 }
 0x440   : > { %v4770_v39 = vmax.f32 %v4738_v42, 0.0  ;;  %v4739_v48 = vadd.f32 %v4707_v1, %v4675_v16  ;;  %v4524_v45 = vadd.f32 %v6194_v51, %v8478_v53  ;;  %v4515_v15 = vpop.f32.mrb[5].mxu1 }
 0x441   : > { %v4768_v49 = vmax.f32 %v4736_v61, 0.0  ;;  %v4737_v33 = vadd.f32 %v4705_v58, %v4673_v55  ;;  %v4516_v54 = vadd.f32 %v4515_v15, %v8472_v24  ;;  %v6195_v34 = vpop.f32.mrb[6].mxu1  ;;  %v4710_v24 = vld [vmem:[%s6780_s15 + $0x30] sm:$0xff] }
 0x442   : > { %4802 = vst [vmem:[%s8584_s18 + $0x10] sm:$0xff] %v4770_v39  ;;  %v4771_v3 = vmax.f32 %v4739_v48, 0.0  ;;  %v4639_v62 = vmul.f32 %v8555_v12, %v4524_v45  ;;  %v4527_v53 = vadd.f32 %v6195_v34, %v8480_v27  ;;  %v4518_v32 = vpop.f32.mrb[7].mxu1  ;;  %v4714_v45 = vld [vmem:[%s6780_s15 + $0x50] sm:$0xff] }
 0x443   : > { %4800 = vst [vmem:[%s8584_s18] sm:$0xff] %v4768_v49  ;;  %v4769_v17 = vmax.f32 %v4737_v33, 0.0  ;;  %v4637_v63 = vmul.f32 %v8555_v12, %v4516_v54  ;;  %v4519_v40 = vadd.f32 %v4518_v32, %v8474_v13  ;;  %v4712_v33 = vld [vmem:[%s6780_s15 + $0x40] sm:$0xff]  ;;  %v4713_v32 = vld [vmem:[%s6780_s15 + $0x48] sm:$0xff] }
 0x444   : > { %4803 = vst [vmem:[%s8584_s18 + $0x18] sm:$0xff] %v4771_v3  ;;  %v4678_v38 = vadd.f32 %v8563_v35, %v4639_v62  ;;  %v4640_v20 = vmul.f32 %v8555_v12, %v4527_v53  ;;  %v4715_v3 = vld [vmem:[%s6780_s15 + $0x58] sm:$0xff] }
 0x445   : > { %4801 = vst [vmem:[%s8584_s18 + $0x8] sm:$0xff] %v4769_v17  ;;  %v4676_v8 = vadd.f32 %v8563_v35, %v4637_v63  ;;  %v4638_v27 = vmul.f32 %v8555_v12, %v4519_v40 }
 0x446   : > { %v4742_v52 = vadd.f32 %v4710_v24, %v4678_v38  ;;  %v4679_v18 = vadd.f32 %v8563_v35, %v4640_v20 }
 0x447   : > { %v4740_v29 = vadd.f32 %v4708_v7, %v4676_v8  ;;  %v4677_v13 = vadd.f32 %v8563_v35, %v4638_v27  ;;  %v6198_v19 = vpop.f32.mrb[8].mxu1 }
 0x448   : > { %v4774_v2 = vmax.f32 %v4742_v52, 0.0  ;;  %v4743_v26 = vadd.f32 %v4711_v11, %v4679_v18  ;;  %v4540_v1 = vadd.f32 %v6198_v19, %v8490_v21  ;;  %v4531_v37 = vpop.f32.mrb[9].mxu1 }
 0x449   : > { %v4772_v42 = vmax.f32 %v4740_v29, 0.0  ;;  %v4741_v16 = vadd.f32 %v4709_v6, %v4677_v13  ;;  %v4532_v58 = vadd.f32 %v4531_v37, %v8484_v28  ;;  %v6199_v61 = vpop.f32.mrb[10].mxu1  ;;  %v4718_v13 = vld [vmem:[%s6780_s15 + $0x70] sm:$0xff] }
 0x44a   : > { %4806 = vst [vmem:[%s8584_s18 + $0x30] sm:$0xff] %v4774_v2  ;;  %v4775_v55 = vmax.f32 %v4743_v26, 0.0  ;;  %v4643_v51 = vmul.f32 %v8555_v12, %v4540_v1  ;;  %v4543_v39 = vadd.f32 %v6199_v61, %v8492_v25  ;;  %v4534_v48 = vpop.f32.mrb[11].mxu1  ;;  %v4716_v26 = vld [vmem:[%s6780_s15 + $0x60] sm:$0xff]  ;;  %v4717_v61 = vld [vmem:[%s6780_s15 + $0x68] sm:$0xff] }
 0x44b   : > { %4804 = vst [vmem:[%s8584_s18 + $0x20] sm:$0xff] %v4772_v42  ;;  %v4773_v21 = vmax.f32 %v4741_v16, 0.0  ;;  %v4641_v15 = vmul.f32 %v8555_v12, %v4532_v58  ;;  %v4535_v49 = vadd.f32 %v4534_v48, %v8486_v22  ;;  %v4719_v42 = vld [vmem:[%s6780_s15 + $0x78] sm:$0xff] }
 0x44c   : > { %4807 = vst [vmem:[%s8584_s18 + $0x38] sm:$0xff] %v4775_v55  ;;  %v4682_v28 = vadd.f32 %v8563_v35, %v4643_v51  ;;  %v4644_v54 = vmul.f32 %v8555_v12, %v4543_v39 }
 0x44d   : > { %4805 = vst [vmem:[%s8584_s18 + $0x28] sm:$0xff] %v4773_v21  ;;  %v4680_v34 = vadd.f32 %v8563_v35, %v4641_v15  ;;  %v4642_v25 = vmul.f32 %v8555_v12, %v4535_v49 }
 0x44e   : > { %v4746_v62 = vadd.f32 %v4714_v45, %v4682_v28  ;;  %v4683_v53 = vadd.f32 %v8563_v35, %v4644_v54 }
 0x44f   : > { %v4744_v17 = vadd.f32 %v4712_v33, %v4680_v34  ;;  %v4681_v22 = vadd.f32 %v8563_v35, %v4642_v25  ;;  %v6202_v24 = vpop.f32.mrb[12].mxu1 }
 0x450   : > { %v4778_v63 = vmax.f32 %v4746_v62, 0.0  ;;  %v4747_v40 = vadd.f32 %v4715_v3, %v4683_v53  ;;  %v4556_v38 = vadd.f32 %v6202_v24, %v8502_v14  ;;  %v4547_v7 = vpop.f32.mrb[13].mxu1  ;;  %v4722_v62 = vld [vmem:[%s6780_s15 + $0x90] sm:$0xff] }
 0x451   : > { %v4776_v20 = vmax.f32 %v4744_v17, 0.0  ;;  %v4745_v8 = vadd.f32 %v4713_v32, %v4681_v22  ;;  %v4548_v11 = vadd.f32 %v4547_v7, %v8496_v41  ;;  %v6203_v27 = vpop.f32.mrb[14].mxu1  ;;  %v4720_v17 = vld [vmem:[%s6780_s15 + $0x80] sm:$0xff]  ;;  %v4721_v7 = vld [vmem:[%s6780_s15 + $0x88] sm:$0xff] }
 0x452   : > { %4810 = vst [vmem:[%s8584_s18 + $0x50] sm:$0xff] %v4778_v63  ;;  %v4779_v52 = vmax.f32 %v4747_v40, 0.0  ;;  %v4647_v18 = vmul.f32 %v8555_v12, %v4556_v38  ;;  %v4559_v6 = vadd.f32 %v6203_v27, %v8504_v57  ;;  %v4550_v29 = vpop.f32.mrb[15].mxu1  ;;  %v4723_v63 = vld [vmem:[%s6780_s15 + $0x98] sm:$0xff] }
 0x453   : > { %4808 = vst [vmem:[%s8584_s18 + $0x40] sm:$0xff] %v4776_v20  ;;  %v4777_v14 = vmax.f32 %v4745_v8, 0.0  ;;  %v4645_v19 = vmul.f32 %v8555_v12, %v4548_v11  ;;  %v4551_v2 = vadd.f32 %v4550_v29, %v8498_v9 }
 0x454   : > { %4811 = vst [vmem:[%s8584_s18 + $0x58] sm:$0xff] %v4779_v52  ;;  %v4686_v41 = vadd.f32 %v8563_v35, %v4647_v18  ;;  %v4648_v1 = vmul.f32 %v8555_v12, %v4559_v6 }
 0x455   : > { %4809 = vst [vmem:[%s8584_s18 + $0x48] sm:$0xff] %v4777_v14  ;;  %v4684_v37 = vadd.f32 %v8563_v35, %v4645_v19  ;;  %v4646_v57 = vmul.f32 %v8555_v12, %v4551_v2 }
 0x456   : > { %v4750_v16 = vadd.f32 %v4718_v13, %v4686_v41  ;;  %v4687_v58 = vadd.f32 %v8563_v35, %v4648_v1  ;;  %v4726_v1 = vld [vmem:[%s6780_s15 + $0xb0] sm:$0xff] }
 0x457   : > { %v4748_v55 = vadd.f32 %v4716_v26, %v4684_v37  ;;  %v4685_v9 = vadd.f32 %v8563_v35, %v4646_v57  ;;  %v6206_v51 = vpop.f32.mrb[16].mxu1  ;;  %v4724_v57 = vld [vmem:[%s6780_s15 + $0xa0] sm:$0xff] }
 0x458   : > { %v4782_v39 = vmax.f32 %v4750_v16, 0.0  ;;  %v4751_v48 = vadd.f32 %v4719_v42, %v4687_v58  ;;  %v4572_v21 = vadd.f32 %v6206_v51, %v8514_v59  ;;  %v4563_v45 = vpop.f32.mrb[17].mxu1  ;;  %v4725_v51 = vld [vmem:[%s6780_s15 + $0xa8] sm:$0xff] }
 0x459   : > { %v4780_v15 = vmax.f32 %v4748_v55, 0.0  ;;  %v4749_v49 = vadd.f32 %v4717_v61, %v4685_v9  ;;  %v4564_v28 = vadd.f32 %v4563_v45, %v8508_v60  ;;  %v6207_v33 = vpop.f32.mrb[18].mxu1  ;;  %v4727_v61 = vld [vmem:[%s6780_s15 + $0xb8] sm:$0xff] }
 0x45a   : > { %4814 = vst [vmem:[%s8584_s18 + $0x70] sm:$0xff] %v4782_v39  ;;  %v4783_v54 = vmax.f32 %v4751_v48, 0.0  ;;  %v4651_v34 = vmul.f32 %v8555_v12, %v4572_v21  ;;  %v4575_v3 = vadd.f32 %v6207_v33, %v8516_v56  ;;  %v4566_v25 = vpop.f32.mrb[19].mxu1 }
 0x45b   : > { %4812 = vst [vmem:[%s8584_s18 + $0x60] sm:$0xff] %v4780_v15  ;;  %v4781_v59 = vmax.f32 %v4749_v49, 0.0  ;;  %v4649_v53 = vmul.f32 %v8555_v12, %v4564_v28  ;;  %v4567_v32 = vadd.f32 %v4566_v25, %v8510_v4 }
 0x45c   : > { %4815 = vst [vmem:[%s8584_s18 + $0x78] sm:$0xff] %v4783_v54  ;;  %v4690_v60 = vadd.f32 %v8563_v35, %v4651_v34  ;;  %v4652_v22 = vmul.f32 %v8555_v12, %v4575_v3 }
 0x45d   : > { %4813 = vst [vmem:[%s8584_s18 + $0x68] sm:$0xff] %v4781_v59  ;;  %v4688_v24 = vadd.f32 %v8563_v35, %v4649_v53  ;;  %v4650_v56 = vmul.f32 %v8555_v12, %v4567_v32  ;;  %v4730_v53 = vld [vmem:[%s6780_s15 + $0xd0] sm:$0xff] }
 0x45e   : > { %v4754_v40 = vadd.f32 %v4722_v62, %v4690_v60  ;;  %v4691_v38 = vadd.f32 %v8563_v35, %v4652_v22 }
 0x45f   : > { %v4752_v20 = vadd.f32 %v4720_v17, %v4688_v24  ;;  %v4689_v4 = vadd.f32 %v8563_v35, %v4650_v56  ;;  %v6210_v8 = vpop.f32.mrb[20].mxu1  ;;  %v4728_v17 = vld [vmem:[%s6780_s15 + $0xc0] sm:$0xff] }
 0x460   : > { %v4786_v11 = vmax.f32 %v4754_v40, 0.0  ;;  %v4755_v27 = vadd.f32 %v4723_v63, %v4691_v38  ;;  %v4588_v52 = vadd.f32 %v6210_v8, %v8526_v10  ;;  %v4579_v18 = vpop.f32.mrb[21].mxu1  ;;  %v4731_v63 = vld [vmem:[%s6780_s15 + $0xd8] sm:$0xff]  ;;  %v4729_v38 = vld [vmem:[%s6780_s15 + $0xc8] sm:$0xff] }
 0x461   : > { %v4784_v6 = vmax.f32 %v4752_v20, 0.0  ;;  %v4753_v29 = vadd.f32 %v4721_v7, %v4689_v4  ;;  %v4580_v14 = vadd.f32 %v4579_v18, %v8520_v31  ;;  %v6211_v13 = vpop.f32.mrb[22].mxu1 }
 0x462   : > { %4818 = vst [vmem:[%s8584_s18 + $0x90] sm:$0xff] %v4786_v11  ;;  %v4787_v19 = vmax.f32 %v4755_v27, 0.0  ;;  %v4655_v2 = vmul.f32 %v8555_v12, %v4588_v52  ;;  %v4591_v41 = vadd.f32 %v6211_v13, %v8528_v0  ;;  %v4582_v26 = vpop.f32.mrb[23].mxu1 }
 0x463   : > { %4816 = vst [vmem:[%s8584_s18 + $0x80] sm:$0xff] %v4784_v6  ;;  %v4785_v10 = vmax.f32 %v4753_v29, 0.0  ;;  %v4653_v37 = vmul.f32 %v8555_v12, %v4580_v14  ;;  %v4583_v42 = vadd.f32 %v4582_v26, %v8522_v36 }
 0x464   : > { %4819 = vst [vmem:[%s8584_s18 + $0x98] sm:$0xff] %v4787_v19  ;;  %v4694_v31 = vadd.f32 %v8563_v35, %v4655_v2  ;;  %v4656_v16 = vmul.f32 %v8555_v12, %v4591_v41  ;;  %v4734_v41 = vld [vmem:[%s6780_s15 + $0xf0] sm:$0xff] }
 0x465   : > { %4817 = vst [vmem:[%s8584_s18 + $0x88] sm:$0xff] %v4785_v10  ;;  %v4692_v58 = vadd.f32 %v8563_v35, %v4653_v37  ;;  %v4654_v0 = vmul.f32 %v8555_v12, %v4583_v42  ;;  %v4735_v42 = vld [vmem:[%s6780_s15 + $0xf8] sm:$0xff] }
 0x466   : > { %v4758_v55 = vadd.f32 %v4726_v1, %v4694_v31  ;;  %v4695_v9 = vadd.f32 %v8563_v35, %v4656_v16  ;;  %v4732_v1 = vld [vmem:[%s6780_s15 + $0xe0] sm:$0xff] }
 0x467   : > { %v4756_v39 = vadd.f32 %v4724_v57, %v4692_v58  ;;  %v4693_v36 = vadd.f32 %v8563_v35, %v4654_v0  ;;  %v6214_v48 = vpop.f32.mrb[24].mxu1  ;;  %v4733_v58 = vld [vmem:[%s6780_s15 + $0xe8] sm:$0xff]  ;;  %s6506_s15 = scalar_lea.vmem %s8732_s19, 4096 }
 0x468   : > { %v4790_v21 = vmax.f32 %v4758_v55, 0.0  ;;  %v4759_v45 = vadd.f32 %v4727_v61, %v4695_v9  ;;  %v4604_v15 = vadd.f32 %v6214_v48, %v8538_v23  ;;  %v4595_v49 = vpop.f32.mrb[25].mxu1  ;;  %p6507_p6 = scmp.ne.s32.totalorder %s8732_s19, %s6506_s15  ;;  %p6514_p3 = scmp.lt.s32.totalorder %s6512_s13, %s6506_s15 }
 0x469   : > { %v4788_v28 = vmax.f32 %v4756_v39, 0.0  ;;  %v4757_v33 = vadd.f32 %v4725_v51, %v4693_v36  ;;  %v4596_v54 = vadd.f32 %v4595_v49, %v8532_v5  ;;  %v6215_v34 = vpop.f32.mrb[26].mxu1 }
 0x46a   : > { %4822 = vst [vmem:[%s8584_s18 + $0xb0] sm:$0xff] %v4790_v21  ;;  %v4791_v3 = vmax.f32 %v4759_v45, 0.0  ;;  %v4659_v25 = vmul.f32 %v8555_v12, %v4604_v15  ;;  %v4607_v59 = vadd.f32 %v6215_v34, %v8540_v43  ;;  %v4598_v62 = vpop.f32.mrb[27].mxu1  ;;  %p6508_p8 = pnand %p6507_p6, %p6726_p12  ;;  %p6515_p7 = por %p6514_p3, %p6513_p13 }
 0x46b   : > { %4820 = vst [vmem:[%s8584_s18 + $0xa0] sm:$0xff] %v4788_v28  ;;  %v4789_v23 = vmax.f32 %v4757_v33, 0.0  ;;  %v4657_v32 = vmul.f32 %v8555_v12, %v4596_v54  ;;  %v4599_v60 = vadd.f32 %v4598_v62, %v8534_v47 }
 0x46c   : > { %4823 = vst [vmem:[%s8584_s18 + $0xb8] sm:$0xff] %v4791_v3  ;;  %v4698_v5 = vadd.f32 %v8563_v35, %v4659_v25  ;;  %v4660_v22 = vmul.f32 %v8555_v12, %v4607_v59  ;;  %p6509_p10 = pneg %p6508_p8 }
 0x46d   : > { %4821 = vst [vmem:[%s8584_s18 + $0xa8] sm:$0xff] %v4789_v23  ;;  %v4696_v24 = vadd.f32 %v8563_v35, %v4657_v32  ;;  %v4658_v43 = vmul.f32 %v8555_v12, %v4599_v60 }
 0x46e   : > { %v4762_v56 = vadd.f32 %v4730_v53, %v4698_v5  ;;  %v4699_v40 = vadd.f32 %v8563_v35, %v4660_v22  ;;  %p6516_p9 = pnand %p6515_p7, %p6509_p10 }
 0x46f   : > { %v4760_v7 = vadd.f32 %v4728_v17, %v4696_v24  ;;  %v4697_v47 = vadd.f32 %v8563_v35, %v4658_v43  ;;  %v6218_v20 = vpop.f32.mrb[28].mxu1 }
 0x470   : > { %v4794_v4 = vmax.f32 %v4762_v56, 0.0  ;;  %v4763_v8 = vadd.f32 %v4731_v63, %v4699_v40  ;;  %v4620_v11 = vadd.f32 %v6218_v20, %v8550_v46  ;;  %v4611_v27 = vpop.f32.mrb[29].mxu1 }
 0x471   : > { %v4792_v52 = vmax.f32 %v4760_v7, 0.0  ;;  %v4761_v18 = vadd.f32 %v4729_v38, %v4697_v47  ;;  %v4612_v6 = vadd.f32 %v4611_v27, %v8544_v44  ;;  %v6219_v29 = vpop.f32.mrb[30].mxu1 }
 0x472   : > { %4826 = vst [vmem:[%s8584_s18 + $0xd0] sm:$0xff] %v4794_v4  ;;  %v4795_v14 = vmax.f32 %v4763_v8, 0.0  ;;  %v4663_v13 = vmul.f32 %v8555_v12, %v4620_v11  ;;  %v4623_v19 = vadd.f32 %v6219_v29, %v8557_v30  ;;  %v4614_v2 = vpop.f32.mrb[31].mxu1 }
 0x473   : > { %4824 = vst [vmem:[%s8584_s18 + $0xc0] sm:$0xff] %v4792_v52  ;;  %v4793_v46 = vmax.f32 %v4761_v18, 0.0  ;;  %v4661_v26 = vmul.f32 %v8555_v12, %v4612_v6  ;;  %v4615_v44 = vadd.f32 %v4614_v2, %v8546_v50 }
 0x474   : > { %4827 = vst [vmem:[%s8584_s18 + $0xd8] sm:$0xff] %v4795_v14  ;;  %v4702_v10 = vadd.f32 %v8563_v35, %v4663_v13  ;;  %v4664_v37 = vmul.f32 %v8555_v12, %v4623_v19 }
 0x475   : > { %4825 = vst [vmem:[%s8584_s18 + $0xc8] sm:$0xff] %v4793_v46  ;;  %v4700_v30 = vadd.f32 %v8563_v35, %v4661_v26  ;;  %v4662_v31 = vmul.f32 %v8555_v12, %v4615_v44 }
 0x476   : > { %v4766_v57 = vadd.f32 %v4734_v41, %v4702_v10  ;;  %v4703_v16 = vadd.f32 %v8563_v35, %v4664_v37 }
 0x477   : > { %v4764_v50 = vadd.f32 %v4732_v1, %v4700_v30  ;;  %v4701_v61 = vadd.f32 %v8563_v35, %v4662_v31 }
 0x478   : > { %v4798_v0 = vmax.f32 %v4766_v57, 0.0  ;;  %v4767_v55 = vadd.f32 %v4735_v42, %v4703_v16 }
 0x479   : > { %v4796_v9 = vmax.f32 %v4764_v50, 0.0  ;;  %v4765_v51 = vadd.f32 %v4733_v58, %v4701_v61 }
 0x47a   : > { %4830 = vst [vmem:[%s8584_s18 + $0xf0] sm:$0xff] %v4798_v0  ;;  %v4799_v12 = vmax.f32 %v4767_v55, 0.0 }
 0x47b   : > { %4828 = vst [vmem:[%s8584_s18 + $0xe0] sm:$0xff] %v4796_v9  ;;  %v4797_v35 = vmax.f32 %v4765_v51, 0.0 }
 0x47c   : > { %4831 = vst [vmem:[%s8584_s18 + $0xf8] sm:$0xff] %v4799_v12 }
 0x47d   : > { %4829 = vst [vmem:[%s8584_s18 + $0xe8] sm:$0xff] %v4797_v35 }
 0x47e   : > { %6519 = shalt.err (!%p6516_p9)
}
 0x47f   : > { %s6520_s22 = scalar_lea.hbm %s8730_s26, 4096  ;;  %s6524_s18 = scalar_lea.hbm %s8787_s8, 8192 }
 0x480   : > { %p6521_p2 = scmp.ne.s32.totalorder %s8730_s26, %s6520_s22  ;;  %p6525_p11 = scmp.lt.u32.totalorder %s8730_s26, %s8787_s8 }
 0x481   : > { %p6526_p1 = scmp.lt.u32.totalorder %s6524_s18, %s6520_s22  ;;  %p6528_p6 = scmp.lt.u32.totalorder %s6520_s22, %s8730_s26 }
 0x482   : > { %p6522_p0 = pnand %p6521_p2, %p6726_p12 }
 0x483   : > { %p6527_p4 = por %p6526_p1, %p6525_p11 }
 0x484   : > { %p6523_p5 = pneg %p6522_p0 }
 0x485   : > { %p6529_p8 = por %p6528_p6, %p6527_p4 }
 0x487   : > { %p6530_p10 = pnand %p6529_p8, %p6523_p5 }
 0x489   : > { %6533 = shalt.err (!%p6530_p10)
}
 0x48a   : > { %s6588_s25 = smov 128   ;;  %s6589_s15 = smov 8  }
 0x48b   : > { %6227 = dma.vmem_to_hbm [thread:$0]  (%p6726_p12), %s8732_s19, 4096, %s8730_s26, %s4833_s9, %s6588_s25, %s6588_s25, %s6589_s15  }
 0x48c PF: > { %s4861_s17 = sand.u32 1, %s6564_s27   ;;  %p8876_p13 = scmp.ne.s32.totalorder %s8823_s12, 0 }
 0x48d   : > { %p8877_p3 = scmp.ge.s32.totalorder %s6576_s30, 2  ;;  %s4862_s11 = scalar_lea.sflag [#allocation5], %s4861_s17 }
 0x48f   : > { %p6238_p7 = pnand %p8877_p3, %p8876_p13 }
 0x491   : > { %6559 = dma.done.wait (!%p6238_p7), %s4862_s11, 4096  }
 0x492   : > { %6561 = vsyncadd (!%p6238_p7), %s4862_s11, 4294963200  ;;  %s8878_s30 = sld [smem:[#allocation12_spill]]  ;;  %s8879_s27 = smov %s6568_s28 }
 0x493   : > { %s8880_s28 = smov %s6572_s29  ;;  %s8881_s29 = smov %s6722_s23 }
 0x498   : > { %p22_p9 = scmp.ge.s32.totalorder %s8878_s30, 4  }
 0x49a   :  { %24 = sbr.rel (!%p22_p9) target bundleno = 6 (0x6), region = 106 }
 0x4a1   :  { %4867 = vsyncpa [#allocation4], 1 }
 0x4a2   :  { %4869 = vsyncpa [#allocation4 + $0x1], 1 }
 0x4a3   :  { %4870 = vsyncpa [#allocation7], 1 }
 0x4a4   :  { %4871 = vsyncpa [#allocation5], 1 }
 0x4a5   :  { %4873 = vsyncpa [#allocation5 + $0x1], 1 }

</bundles_post_ra>
